<compile_context>
chip_gen: v6e
topology: v6e:2x2x1
jax: 0.10.0
libtpu: 0.0.40
codegen_flags: <defaults>
</compile_context>

<pallas_src>
import functools

import jax
import jax.numpy as jnp
from jax.experimental import pallas as pl
from jax.experimental.pallas import tpu as pltpu

N_EMBD = 464            # from the PyTorch module
HIDDEN = 4 * N_EMBD     # 1856
DROPOUT = 0.1           # unused at eval time

C_PAD = 512             # output lanes: next multiple of 128 above 464
H_PAD = 1920            # hidden units: next multiple of 128 above 1856


def _round_up(a, b):
    return (a + b - 1) // b * b


def _pad_to(a, shape):
    return jnp.pad(a, [(0, t - s) for s, t in zip(a.shape, shape)])


def ffn_kernel(x_ref, w1_ref, b1_ref, w2_ref, b2_ref, o_ref):
    # x_ref:  (TM, 464)      f32 row tile (cast to bf16 in-kernel)
    # w1_ref: (464, H_PAD)   bf16, b1_ref: (1, H_PAD) f32
    # w2_ref: (H_PAD, C_PAD) bf16, b2_ref: (1, C_PAD) f32
    x = x_ref[...].astype(jnp.bfloat16)            # cheap VPU cast, hidden under MXU
    h = jnp.dot(x, w1_ref[...], preferred_element_type=jnp.float32)
    h = jnp.maximum(h + b1_ref[...], 0.0)          # bias + ReLU in f32
    y = jnp.dot(h.astype(jnp.bfloat16), w2_ref[...],
                preferred_element_type=jnp.float32)
    # Dropout: eval-mode identity.
    o_ref[...] = (y + b2_ref[...]).astype(o_ref.dtype)


def prepare_params(w1, b1, w2, b2):
    """One-time pad + bf16 cast of weights (hoisted out of the per-call path).

    Zero padding is exact: padded hidden units see zero W1 columns / zero b1
    (ReLU(0)=0) and zero W2 rows; padded output channels come from zero W2
    columns / zero b2 and are sliced off by the wrapper.
    """
    w1p = _pad_to(w1.astype(jnp.bfloat16), (N_EMBD, H_PAD))
    b1p = _pad_to(b1.astype(jnp.float32), (1, H_PAD))
    w2p = _pad_to(w2.astype(jnp.bfloat16), (H_PAD, C_PAD))
    b2p = _pad_to(b2.astype(jnp.float32), (1, C_PAD))
    return w1p, b1p, w2p, b2p


@functools.partial(jax.jit, static_argnames=("tm",))
def feed_forward(x, w1p, b1p, w2p, b2p, *, tm=512):
    """x: [B, T, 464] f32; pre-padded params from prepare_params. Returns [B, T, 464]."""
    B, T, C = x.shape
    assert C == N_EMBD
    assert w1p.shape == (N_EMBD, H_PAD) and b1p.shape == (1, H_PAD)
    assert w2p.shape == (H_PAD, C_PAD) and b2p.shape == (1, C_PAD)
    M = B * T
    x2 = x.reshape(M, C)   # contiguous reshape: no pad, no cast, no extra HBM pass

    # Row tile: large tiles amortize the ~0.35us/step overhead and fill the
    # MXU; tiny inputs get a single >=16-row step (bf16 sublane packing floor,
    # and no megacore split that would double weight DMA on v7x).
    if M <= 256:
        tm_eff = max(16, _round_up(M, 16))
    else:
        tm_eff = tm
    grid_m = pl.cdiv(M, tm_eff)   # ragged trailing block is masked by Pallas

    rows = grid_m * tm_eff
    flops = 2 * rows * (N_EMBD * H_PAD + H_PAD * C_PAD)
    bytes_accessed = (M * N_EMBD * 4                    # x read (f32)
                      + w1p.size * 2 + w2p.size * 2     # bf16 weights, read once
                      + b1p.size * 4 + b2p.size * 4
                      + M * C_PAD * 4)                  # f32 output write

    def weight_spec(shape):
        # Grid-invariant operands: keep resident, single-buffered.
        return pl.BlockSpec(shape, lambda i: (0, 0), pipeline_mode=pl.Buffered(1))

    out = pl.pallas_call(
        ffn_kernel,
        out_shape=jax.ShapeDtypeStruct((M, C_PAD), jnp.float32),
        grid_spec=pltpu.PrefetchScalarGridSpec(
            num_scalar_prefetch=0,
            grid=(grid_m,),
            in_specs=[
                pl.BlockSpec((tm_eff, N_EMBD), lambda i: (i, 0)),   # x rows (f32)
                weight_spec((N_EMBD, H_PAD)),                       # W1 (resident)
                weight_spec((1, H_PAD)),                            # b1
                weight_spec((H_PAD, C_PAD)),                        # W2 (resident)
                weight_spec((1, C_PAD)),                            # b2
            ],
            out_specs=pl.BlockSpec((tm_eff, C_PAD), lambda i: (i, 0)),
        ),
        compiler_params=pltpu.CompilerParams(
            dimension_semantics=("parallel",),
            vmem_limit_bytes=48 << 20,   # fits v7x's 64 MiB physical VMEM
        ),
        cost_estimate=pl.CostEstimate(
            flops=flops, transcendentals=0, bytes_accessed=bytes_accessed),
    )(x2, w1p, b1p, w2p, b2p)

    return out[:, :C].reshape(B, T, C)


def init_params(key):
    """Deterministic init matching PyTorch Linear's U(-1/sqrt(in), 1/sqrt(in))."""
    k1, k2, k3, k4 = jax.random.split(key, 4)
    bound1 = 1.0 / jnp.sqrt(N_EMBD)
    bound2 = 1.0 / jnp.sqrt(HIDDEN)
    # stored as [in, out] (already transposed relative to torch's [out, in])
    w1 = jax.random.uniform(k1, (N_EMBD, HIDDEN), jnp.float32, -bound1, bound1)
    b1 = jax.random.uniform(k2, (1, HIDDEN), jnp.float32, -bound1, bound1)
    w2 = jax.random.uniform(k3, (HIDDEN, N_EMBD), jnp.float32, -bound2, bound2)
    b2 = jax.random.uniform(k4, (1, N_EMBD), jnp.float32, -bound2, bound2)
    return w1, b1, w2, b2


if __name__ == "__main__":
    key = jax.random.PRNGKey(0)
    kx, kp = jax.random.split(key)

    B, T = 2, 8
    x = jax.random.normal(kx, (B, T, N_EMBD), dtype=jnp.float32)
    w1, b1, w2, b2 = init_params(kp)

    # One-time weight preparation (padding + bf16 cast hoisted out of the call path).
    w1p, b1p, w2p, b2p = prepare_params(w1, b1, w2, b2)
    w1p, b1p, w2p, b2p = jax.block_until_ready((w1p, b1p, w2p, b2p))

    y = feed_forward(x, w1p, b1p, w2p, b2p)
    y = jax.block_until_ready(y)
    assert y.shape == (B, T, N_EMBD)

    # Reference mirroring the kernel's bf16-input / f32-accumulate precision.
    xb = x.astype(jnp.bfloat16).astype(jnp.float32)
    w1b = w1.astype(jnp.bfloat16).astype(jnp.float32)
    w2b = w2.astype(jnp.bfloat16).astype(jnp.float32)
    h_ref = jnp.maximum(xb @ w1b + b1[0], 0.0)
    ref = h_ref.astype(jnp.bfloat16).astype(jnp.float32) @ w2b + b2[0]
    assert jnp.allclose(y, ref, atol=2e-3, rtol=2e-3)

    # Loose check against the full-f32 reference (bf16 matmul error budget).
    ref_f32 = jnp.maximum(x @ w1 + b1[0], 0.0) @ w2 + b2[0]
    assert jnp.max(jnp.abs(y - ref_f32)) < 5e-2

    print("KERNEL_OK")
</pallas_src>

<mosaic_0001>
module attributes {stable_mosaic.version = 11 : i64} {
  func.func @ffn_kernel(%arg0: i32, %arg1: memref<16x464xf32, #tpu.memory_space<vmem>>, %arg2: memref<464x1920xbf16, #tpu.memory_space<vmem>>, %arg3: memref<1x1920xf32, #tpu.memory_space<vmem>>, %arg4: memref<1920x512xbf16, #tpu.memory_space<vmem>>, %arg5: memref<1x512xf32, #tpu.memory_space<vmem>>, %arg6: memref<16x512xf32, #tpu.memory_space<vmem>>) attributes {dimension_semantics = [#tpu.dimension_semantics<parallel>], iteration_bounds = array<i64: 1>, scalar_prefetch = 0 : i64, scratch_operands = 0 : i64, tpu.core_type = #tpu.core_type<tc>, window_params = [{transform_indices = @transform_0, window_bounds = array<i64: 16, 464>}, {pipeline_mode = #tpu.pipeline_mode<synchronous>, transform_indices = @transform_1, window_bounds = array<i64: 464, 1920>}, {pipeline_mode = #tpu.pipeline_mode<synchronous>, transform_indices = @transform_2, window_bounds = array<i64: 1, 1920>}, {pipeline_mode = #tpu.pipeline_mode<synchronous>, transform_indices = @transform_3, window_bounds = array<i64: 1920, 512>}, {pipeline_mode = #tpu.pipeline_mode<synchronous>, transform_indices = @transform_4, window_bounds = array<i64: 1, 512>}, {transform_indices = @transform_5, window_bounds = array<i64: 16, 512>}]} {
    %c0 = arith.constant 0 : index
    %c0_0 = arith.constant 0 : index
    %0 = vector.load %arg1[%c0, %c0_0] : memref<16x464xf32, #tpu.memory_space<vmem>>, vector<16x464xf32>
    %1 = arith.truncf %0 : vector<16x464xf32> to vector<16x464xbf16>
    %c0_1 = arith.constant 0 : index
    %c0_2 = arith.constant 0 : index
    %2 = vector.load %arg2[%c0_1, %c0_2] : memref<464x1920xbf16, #tpu.memory_space<vmem>>, vector<464x1920xbf16>
    %cst = arith.constant dense<0.000000e+00> : vector<16x1920xf32>
    %3 = tpu.matmul %1, %2, %cst {dimension_numbers = #tpu.dot_dimension_numbers<[1], [0], [0], [1], [0, 0, 1, 1], [], []>} : vector<16x464xbf16>, vector<464x1920xbf16>, vector<16x1920xf32> -> vector<16x1920xf32>
    %c0_3 = arith.constant 0 : index
    %c0_4 = arith.constant 0 : index
    %4 = vector.load %arg3[%c0_3, %c0_4] : memref<1x1920xf32, #tpu.memory_space<vmem>>, vector<1x1920xf32>
    %5 = vector.broadcast %4 : vector<1x1920xf32> to vector<16x1920xf32>
    %6 = arith.addf %3, %5 : vector<16x1920xf32>
    %cst_5 = arith.constant 0.000000e+00 : f32
    %7 = vector.broadcast %cst_5 : f32 to vector<16x1920xf32>
    %8 = arith.maximumf %6, %7 : vector<16x1920xf32>
    %9 = arith.truncf %8 : vector<16x1920xf32> to vector<16x1920xbf16>
    %c0_6 = arith.constant 0 : index
    %c0_7 = arith.constant 0 : index
    %10 = vector.load %arg4[%c0_6, %c0_7] : memref<1920x512xbf16, #tpu.memory_space<vmem>>, vector<1920x512xbf16>
    %cst_8 = arith.constant dense<0.000000e+00> : vector<16x512xf32>
    %11 = tpu.matmul %9, %10, %cst_8 {dimension_numbers = #tpu.dot_dimension_numbers<[1], [0], [0], [1], [0, 0, 1, 1], [], []>} : vector<16x1920xbf16>, vector<1920x512xbf16>, vector<16x512xf32> -> vector<16x512xf32>
    %c0_9 = arith.constant 0 : index
    %c0_10 = arith.constant 0 : index
    %12 = vector.load %arg5[%c0_9, %c0_10] : memref<1x512xf32, #tpu.memory_space<vmem>>, vector<1x512xf32>
    %13 = vector.broadcast %12 : vector<1x512xf32> to vector<16x512xf32>
    %14 = arith.addf %11, %13 : vector<16x512xf32>
    %c0_11 = arith.constant 0 : index
    %c0_12 = arith.constant 0 : index
    %15 = vector.load %arg6[%c0_11, %c0_12] : memref<16x512xf32, #tpu.memory_space<vmem>>, vector<16x512xf32>
    tpu.vector_store %arg6[%c0_11, %c0_12], %14 {strides = array<i32>} : memref<16x512xf32, #tpu.memory_space<vmem>>, vector<16x512xf32>,
    return
  }
  func.func @transform_0(%arg0: i32) -> (i32, i32) {
    %c0_i32 = arith.constant 0 : i32
    %c0_i32_0 = arith.constant 0 : i32
    return %arg0, %c0_i32 : i32, i32
  }
  func.func @transform_1(%arg0: i32) -> (i32, i32) {
    %c0_i32 = arith.constant 0 : i32
    %c0_i32_0 = arith.constant 0 : i32
    %c0_i32_1 = arith.constant 0 : i32
    return %c0_i32, %c0_i32_0 : i32, i32
  }
  func.func @transform_2(%arg0: i32) -> (i32, i32) {
    %c0_i32 = arith.constant 0 : i32
    %c0_i32_0 = arith.constant 0 : i32
    %c0_i32_1 = arith.constant 0 : i32
    return %c0_i32, %c0_i32_0 : i32, i32
  }
  func.func @transform_3(%arg0: i32) -> (i32, i32) {
    %c0_i32 = arith.constant 0 : i32
    %c0_i32_0 = arith.constant 0 : i32
    %c0_i32_1 = arith.constant 0 : i32
    return %c0_i32, %c0_i32_0 : i32, i32
  }
  func.func @transform_4(%arg0: i32) -> (i32, i32) {
    %c0_i32 = arith.constant 0 : i32
    %c0_i32_0 = arith.constant 0 : i32
    %c0_i32_1 = arith.constant 0 : i32
    return %c0_i32, %c0_i32_0 : i32, i32
  }
  func.func @transform_5(%arg0: i32) -> (i32, i32) {
    %c0_i32 = arith.constant 0 : i32
    %c0_i32_0 = arith.constant 0 : i32
    return %arg0, %c0_i32 : i32, i32
  }
}

</mosaic_0001>

<bundles_post_ra>
// kernel: feed_forward.1
= control target key start
LH: loop header
LB: loop body
LE: loop exit
PB: predicated region body
PF: predicated region fallthrough
CT: control target
= control target key end

     0   :  { %10 = vsyncpa [#allocation3], 0  ;;  %s9973_s0 = inlined_call_operand.hbm [shape: f32[16,464], index: 0, kind: input, shape index: {}]   ;;  %s9974_s1 = inlined_call_operand.hbm [shape: bf16[464,1920], index: 1, kind: input, shape index: {}]   ;;  %s9975_s2 = inlined_call_operand.hbm [shape: f32[1,1920], index: 2, kind: input, shape index: {}]   ;;  %s9976_s3 = inlined_call_operand.hbm [shape: bf16[1920,512], index: 3, kind: input, shape index: {}]   ;;  %s9977_s4 = inlined_call_operand.hbm [shape: f32[1,512], index: 4, kind: input, shape index: {}]   ;;  %s9978_s5 = inlined_call_operand.vmem [shape: f32[16,512], index: 5, kind: output, shape index: {}]  }
   0x1   :  { %11 = vsyncpa [#allocation5], 0 }
   0x2   :  { %12 = vsyncpa [#allocation8], 0  ;;  %s9606_s18 = smov [#allocation4]  }
   0x3   :  { %s30_s19 = sshll.u32 %s9606_s18, 4  ;;  %s31_s19 = int_to_ptr.vmem [resolvable:$true] %s30_s19 }
   0x4   :  { %s9508_s20 = scalar_lea.vmem %s31_s19, 55680  ;;  %p9513_p1 = scmp.lt.s32.totalorder %s31_s19, %s31_s19 }
   0x5   :  { %p9509_p0 = scmp.ne.s32.totalorder %s31_s19, %s9508_s20  ;;  %p9514_p2 = scmp.lt.s32.totalorder %s9508_s20, %s9508_s20 }
   0x7   :  { %p9515_p3 = por %p9514_p2, %p9513_p1 }
   0x9   :  { %p9516_p4 = pnand %p9515_p3, %p9509_p0 }
   0xb   :  { %9519 = shalt.err (!%p9516_p4)
}
   0xc   :  { %s9607_s21 = smov 960   ;;  %s9608_s22 = smov 60  }
   0xd   :  { %36 = dma.hbm_to_vmem [thread:$0]  %s9974_s1, 55680, %s31_s19, [#allocation5], %s9607_s21, %s9607_s21, %s9608_s22  }
   0xe   :  { %s9609_s25 = smov [#allocation7]  }
   0xf   :  { %s52_s26 = sshll.u32 %s9609_s25, 4  ;;  %s53_s26 = int_to_ptr.vmem [resolvable:$true] %s52_s26 }
  0x10   :  { %s9528_s27 = scalar_lea.vmem %s53_s26, 61440  ;;  %p9533_p6 = scmp.lt.s32.totalorder %s53_s26, %s53_s26 }
  0x11   :  { %p9529_p5 = scmp.ne.s32.totalorder %s53_s26, %s9528_s27  ;;  %p9534_p7 = scmp.lt.s32.totalorder %s9528_s27, %s9528_s27 }
  0x13   :  { %p9535_p8 = por %p9534_p7, %p9533_p6 }
  0x15   :  { %p9536_p9 = pnand %p9535_p8, %p9529_p5 }
  0x17   :  { %9539 = shalt.err (!%p9536_p9)
}
  0x18   :  { %s9610_s28 = smov 256   ;;  %s9611_s29 = smov 16  }
  0x19   :  { %58 = dma.hbm_to_vmem [thread:$0]  %s9976_s3, 61440, %s53_s26, [#allocation8], %s9610_s28, %s9610_s28, %s9611_s29  }
  0x1a   :  { %s9612_s7 = smov [#allocation2]  }
  0x1b   :  { %s18_s8 = sshll.u32 %s9612_s7, 4  ;;  %s19_s8 = int_to_ptr.vmem [resolvable:$true] %s18_s8 }
  0x1c   :  { %s9548_s1 = scalar_lea.vmem %s19_s8, 1024  ;;  %p9553_p11 = scmp.lt.s32.totalorder %s19_s8, %s19_s8 }
  0x1d   :  { %p9549_p10 = scmp.ne.s32.totalorder %s19_s8, %s9548_s1  ;;  %p9554_p12 = scmp.lt.s32.totalorder %s9548_s1, %s9548_s1 }
  0x1f   :  { %p9555_p13 = por %p9554_p12, %p9553_p11 }
  0x21   :  { %p9556_p0 = pnand %p9555_p13, %p9549_p10 }
  0x23   :  { %9559 = shalt.err (!%p9556_p0)
}
  0x24   :  { %s9613_s9 = smov 512   ;;  %s9614_s10 = smov 32  }
  0x25   :  { %24 = dma.hbm_to_vmem [thread:$0]  %s9973_s0, 1024, %s19_s8, [#allocation3], %s9613_s9, %s9613_s9, %s9614_s10  }
  0x26   :  { %s9615_s13 = smov [#allocation6]   ;;  %s9616_s3 = smov [#allocation9]  }
  0x27   :  { %s43_s14 = sshll.u32 %s9615_s13, 4  ;;  %s65_s15 = sshll.u32 %s9616_s3, 4  ;;  %s44_s14 = int_to_ptr.vmem [resolvable:$true] %s43_s14  ;;  %s66_s15 = int_to_ptr.vmem [resolvable:$true] %s65_s15 }
  0x28   :  { %s9568_s16 = scalar_lea.vmem %s44_s14, 240  ;;  %s9572_s17 = scalar_lea.vmem %s44_s14, 256 }
  0x29   :  { %p9569_p1 = scmp.ne.s32.totalorder %s44_s14, %s9568_s16  ;;  %p9573_p2 = scmp.lt.s32.totalorder %s44_s14, %s44_s14 }
  0x2a   :  { %p9574_p3 = scmp.lt.s32.totalorder %s9572_s17, %s9568_s16 }
  0x2c   :  { %p9575_p4 = por %p9574_p3, %p9573_p2 }
  0x2e   :  { %p9576_p5 = pnand %p9575_p4, %p9569_p1 }
  0x30   :  { %9579 = shalt.err (!%p9576_p5)
}
  0x31   :  { %46 = dma.hbm_to_vmem [thread:$0]  %s9975_s2, 240, %s44_s14, [#allocation5]  }
  0x32   :  { %s9588_s20 = scalar_lea.vmem %s66_s15, 64  ;;  %p9593_p7 = scmp.lt.s32.totalorder %s66_s15, %s66_s15 }
  0x33   :  { %p9589_p6 = scmp.ne.s32.totalorder %s66_s15, %s9588_s20  ;;  %p9594_p8 = scmp.lt.s32.totalorder %s9588_s20, %s9588_s20 }
  0x35   :  { %p9595_p9 = por %p9594_p8, %p9593_p7 }
  0x37   :  { %p9596_p10 = pnand %p9595_p9, %p9589_p6 }
  0x39   :  { %9599 = shalt.err (!%p9596_p10)
}
  0x3a   :  { %68 = dma.hbm_to_vmem [thread:$0]  %s9977_s4, 64, %s66_s15, [#allocation8]  }
  0x3b   :  { %9600 = dma.done.wait [#allocation3], 1024  }
  0x3c   :  { %9601 = vsyncadd [#allocation3], 4294966272 }
  0x3d   :  { %9602 = dma.done.wait [#allocation5], 55920  }
  0x3e   :  { %9603 = vsyncadd [#allocation5], 4294911376 }
  0x3f   :  { %9604 = dma.done.wait [#allocation8], 61504  }
  0x40   :  { %9605 = vsyncadd [#allocation8], 4294905792  ;;  %v8139_v0 = vld [vmem:[#allocation4 + $0x34c] ss:$60 sps:$4 sm:$0xff]   ;;  %v8145_v4 = vld [vmem:[#allocation4 + $0x2d4] ss:$60 sps:$4 sm:$0xff]  }
  0x41   :  { %v8141_v1 = vld [vmem:[#allocation4 + $0xacc] ss:$60 sps:$4 sm:$0xff]   ;;  %2848 = vmatprep.subr.bf16.mxu0 %v8139_v0  ;;  %v8147_v5 = vld [vmem:[#allocation4 + $0xa54] ss:$60 sps:$4 sm:$0xff]   ;;  %v8151_v8 = vld [vmem:[#allocation4 + $0x25c] ss:$60 sps:$4 sm:$0xff]  }
  0x42   :  { %v8143_v2 = vld [vmem:[#allocation4 + $0x348] ss:$60 sps:$4 sm:$0xff]   ;;  %2891 = vmatprep.subr.bf16.mxu1 %v8141_v1  ;;  %v8149_v6 = vld [vmem:[#allocation4 + $0x2d0] ss:$60 sps:$4 sm:$0xff]   ;;  %v8153_v9 = vld [vmem:[#allocation4 + $0x9dc] ss:$60 sps:$4 sm:$0xff]  }
  0x43   :  { %v8144_v3 = vld [vmem:[#allocation4 + $0xac8] ss:$60 sps:$4 sm:$0xff]   ;;  %2849 = vmatpush1.bf16.msra.mxu0 %v8143_v2  ;;  %v8150_v7 = vld [vmem:[#allocation4 + $0xa50] ss:$60 sps:$4 sm:$0xff]   ;;  %v8155_v10 = vld [vmem:[#allocation4 + $0x258] ss:$60 sps:$4 sm:$0xff]  }
  0x44   :  { %2892 = vmatpush1.bf16.msra.mxu1 %v8144_v3  ;;  %2850 = vmatprep.subr.bf16.mxu0 %v8145_v4  ;;  %v8156_v11 = vld [vmem:[#allocation4 + $0x9d8] ss:$60 sps:$4 sm:$0xff]   ;;  %v8157_v12 = vld [vmem:[#allocation4 + $0x1e4] ss:$60 sps:$4 sm:$0xff]   ;;  %v8163_v16 = vld [vmem:[#allocation4 + $0x16c] ss:$60 sps:$4 sm:$0xff]  }
  0x45   :  { %2893 = vmatprep.subr.bf16.mxu1 %v8147_v5  ;;  %v8159_v13 = vld [vmem:[#allocation4 + $0x964] ss:$60 sps:$4 sm:$0xff]   ;;  %v8165_v17 = vld [vmem:[#allocation4 + $0x8ec] ss:$60 sps:$4 sm:$0xff]   ;;  %v8169_v20 = vld [vmem:[#allocation4 + $0xf4] ss:$60 sps:$4 sm:$0xff]  }
  0x46   :  { %v8161_v14 = vld [vmem:[#allocation4 + $0x1e0] ss:$60 sps:$4 sm:$0xff]   ;;  %v8167_v18 = vld [vmem:[#allocation4 + $0x168] ss:$60 sps:$4 sm:$0xff]   ;;  %v8171_v21 = vld [vmem:[#allocation4 + $0x874] ss:$60 sps:$4 sm:$0xff]  }
  0x47   :  { %2851 = vmatpush1.bf16.msra.mxu0 %v8149_v6  ;;  %v8162_v15 = vld [vmem:[#allocation4 + $0x960] ss:$60 sps:$4 sm:$0xff]   ;;  %v8168_v19 = vld [vmem:[#allocation4 + $0x8e8] ss:$60 sps:$4 sm:$0xff]   ;;  %v8173_v22 = vld [vmem:[#allocation4 + $0xf0] ss:$60 sps:$4 sm:$0xff]  }
  0x48   :  { %2894 = vmatpush1.bf16.msra.mxu1 %v8150_v7  ;;  %2852 = vmatprep.subr.bf16.mxu0 %v8151_v8  ;;  %v8174_v23 = vld [vmem:[#allocation4 + $0x870] ss:$60 sps:$4 sm:$0xff]   ;;  %v8175_v24 = vld [vmem:[#allocation4 + $0x7c] ss:$60 sps:$4 sm:$0xff]   ;;  %v8181_v28 = vld [vmem:[#allocation4 + $0x4] ss:$60 sps:$4 sm:$0xff]  }
  0x49   :  { %2895 = vmatprep.subr.bf16.mxu1 %v8153_v9  ;;  %v8177_v25 = vld [vmem:[#allocation4 + $0x7fc] ss:$60 sps:$4 sm:$0xff]   ;;  %v8183_v29 = vld [vmem:[#allocation4 + $0x784] ss:$60 sps:$4 sm:$0xff]   ;;  %v8187_v32 = vld [vmem:[#allocation4 + $0x70c] ss:$60 sps:$4 sm:$0xff]  }
  0x4a   :  { %v8179_v26 = vld [vmem:[#allocation4 + $0x78] ss:$60 sps:$4 sm:$0xff]   ;;  %v8185_v30 = vld [vmem:[#allocation4] ss:$60 sps:$4 sm:$0xff]   ;;  %v8191_v34 = vld [vmem:[#allocation4 + $0x708] ss:$60 sps:$4 sm:$0xff]  }
  0x4b   :  { %2853 = vmatpush1.bf16.msra.mxu0 %v8155_v10  ;;  %v8180_v27 = vld [vmem:[#allocation4 + $0x7f8] ss:$60 sps:$4 sm:$0xff]   ;;  %v8186_v31 = vld [vmem:[#allocation4 + $0x780] ss:$60 sps:$4 sm:$0xff]   ;;  %v8195_v37 = vld [vmem:[#allocation4 + $0xcac] ss:$60 sps:$4 sm:$0xff]  }
  0x4c   :  { %2896 = vmatpush1.bf16.msra.mxu1 %v8156_v11  ;;  %2854 = vmatprep.subr.bf16.mxu0 %v8157_v12  ;;  %v8189_v33 = vld [vmem:[#allocation4 + $0xd24] ss:$60 sps:$4 sm:$0xff]   ;;  %v8193_v36 = vld [vmem:[#allocation4 + $0x694] ss:$60 sps:$4 sm:$0xff]   ;;  %v88_v40 = vld [vmem:[#allocation2 + $0x18] sm:$0xff]  ;;  %vm2844_vm0 = vcmask 654336  }
  0x4d   :  { %2897 = vmatprep.subr.bf16.mxu1 %v8159_v13  ;;  %v8192_v35 = vld [vmem:[#allocation4 + $0xd20] ss:$60 sps:$4 sm:$0xff]   ;;  %v8197_v38 = vld [vmem:[#allocation4 + $0x690] ss:$60 sps:$4 sm:$0xff]   ;;  %v8198_v39 = vld [vmem:[#allocation4 + $0xca8] ss:$60 sps:$4 sm:$0xff]  }
  0x4e   :  { %v92_v41 = vld [vmem:[#allocation2 + $0x38] sm:$0xff]  ;;  %v8201_v43 = vld [vmem:[#allocation4 + $0xc34] ss:$60 sps:$4 sm:$0xff]   ;;  %v8205_v47 = vld [vmem:[#allocation4 + $0x5a4] ss:$60 sps:$4 sm:$0xff]  }
  0x4f   :  { %2855 = vmatpush1.bf16.msra.mxu0 %v8161_v14  ;;  %v8199_v42 = vld [vmem:[#allocation4 + $0x61c] ss:$60 sps:$4 sm:$0xff]   ;;  %v9663_v44 = vpack.c.bf16 %v92_v41, %v88_v40  ;;  %v8204_v46 = vld [vmem:[#allocation4 + $0xc30] ss:$60 sps:$4 sm:$0xff]   ;;  %v8213_v54 = vld [vmem:[#allocation4 + $0xb44] ss:$60 sps:$4 sm:$0xff]  }
  0x50   :  { %2898 = vmatpush1.bf16.msra.mxu1 %v8162_v15  ;;  %2856 = vmatprep.subr.bf16.mxu0 %v8163_v16  ;;  %v8203_v45 = vld [vmem:[#allocation4 + $0x618] ss:$60 sps:$4 sm:$0xff]   ;;  %v8209_v49 = vld [vmem:[#allocation4 + $0x5a0] ss:$60 sps:$4 sm:$0xff]   ;;  %v8211_v51 = vld [vmem:[#allocation4 + $0x52c] ss:$60 sps:$4 sm:$0xff]  }
  0x51   :  { %2899 = vmatprep.subr.bf16.mxu1 %v8165_v17  ;;  %7617 = vmatprep.mubr.msk.bf16.mxu1 %vm2844_vm0, %v9663_v44  ;;  %v8207_v48 = vld [vmem:[#allocation4 + $0xbbc] ss:$60 sps:$4 sm:$0xff]   ;;  %v86_v52 = vld [vmem:[#allocation2 + $0x8] sm:$0xff]  ;;  %v8217_v58 = vld [vmem:[#allocation4 + $0x4b4] ss:$60 sps:$4 sm:$0xff]  }
  0x52   :  { %v8210_v50 = vld [vmem:[#allocation4 + $0xbb8] ss:$60 sps:$4 sm:$0xff]   ;;  %v90_v53 = vld [vmem:[#allocation2 + $0x28] sm:$0xff]  ;;  %v8216_v57 = vld [vmem:[#allocation4 + $0xb40] ss:$60 sps:$4 sm:$0xff]  }
  0x53   :  { %2857 = vmatpush1.bf16.msra.mxu0 %v8167_v18  ;;  %v9667_v55 = vpack.c.bf16 %v90_v53, %v86_v52  ;;  %v8215_v56 = vld [vmem:[#allocation4 + $0x528] ss:$60 sps:$4 sm:$0xff]   ;;  %v87_v59 = vld [vmem:[#allocation2 + $0x10] sm:$0xff]  ;;  %v8223_v1 = vld [vmem:[#allocation4 + $0x43c] ss:$60 sps:$4 sm:$0xff]  }
  0x54   :  { %2900 = vmatpush1.bf16.msra.mxu1 %v8168_v19  ;;  %2858 = vmatprep.subr.bf16.mxu0 %v8169_v20  ;;  %v91_v60 = vld [vmem:[#allocation2 + $0x30] sm:$0xff]  ;;  %v8227_v2 = vld [vmem:[#allocation4 + $0x2dc] ss:$60 sps:$4 sm:$0xff]   ;;  %v8229_v5 = vld [vmem:[#allocation4 + $0x3c4] ss:$60 sps:$4 sm:$0xff]  }
  0x55   :  { %2901 = vmatprep.subr.bf16.mxu1 %v8171_v21  ;;  %2880 = vmatprep.mubr.bf16.mxu0 %v9667_v55  ;;  %v8221_v61 = vld [vmem:[#allocation4 + $0x354] ss:$60 sps:$4 sm:$0xff]   ;;  %v9670_v0 = vpack.c.bf16 %v91_v60, %v87_v59  ;;  %v8233_v6 = vld [vmem:[#allocation4 + $0x264] ss:$60 sps:$4 sm:$0xff]   ;;  %v8237_v11 = vld [vmem:[#allocation4 + $0x1ec] ss:$60 sps:$4 sm:$0xff]  }
  0x56   :  { %v8219_v62 = vld [vmem:[#allocation4 + $0x350] ss:$60 sps:$4 sm:$0xff]   ;;  %v8225_v3 = vld [vmem:[#allocation4 + $0x2d8] ss:$60 sps:$4 sm:$0xff]   ;;  %v8231_v7 = vld [vmem:[#allocation4 + $0x260] ss:$60 sps:$4 sm:$0xff]  }
  0x57   :  { %2859 = vmatpush1.bf16.msra.mxu0 %v8173_v22  ;;  %v8222_v63 = vld [vmem:[#allocation4 + $0x4b0] ss:$60 sps:$4 sm:$0xff]   ;;  %v8228_v4 = vld [vmem:[#allocation4 + $0x438] ss:$60 sps:$4 sm:$0xff]   ;;  %v8234_v8 = vld [vmem:[#allocation4 + $0x3c0] ss:$60 sps:$4 sm:$0xff]  }
  0x58   :  { %2902 = vmatpush1.bf16.msra.mxu1 %v8174_v23  ;;  %2860 = vmatprep.subr.bf16.mxu0 %v8175_v24  ;;  %v85_v9 = vld [vmem:[#allocation2] sm:$0xff]  ;;  %v8240_v12 = vld [vmem:[#allocation4 + $0xad4] ss:$60 sps:$4 sm:$0xff]   ;;  %v8246_v17 = vld [vmem:[#allocation4 + $0xa5c] ss:$60 sps:$4 sm:$0xff]  }
  0x59   :  { %2903 = vmatprep.subr.bf16.mxu1 %v8177_v25  ;;  %v89_v10 = vld [vmem:[#allocation2 + $0x20] sm:$0xff]  ;;  %v8238_v15 = vld [vmem:[#allocation4 + $0xad0] ss:$60 sps:$4 sm:$0xff]   ;;  %v8244_v19 = vld [vmem:[#allocation4 + $0xa58] ss:$60 sps:$4 sm:$0xff]  }
  0x5a   :  { %v9674_v13 = vpack.c.bf16 %v89_v10, %v85_v9  ;;  %v8235_v14 = vld [vmem:[#allocation4 + $0x1e8] ss:$60 sps:$4 sm:$0xff]   ;;  %v8243_v16 = vld [vmem:[#allocation4 + $0x174] ss:$60 sps:$4 sm:$0xff]   ;;  %v8249_v20 = vld [vmem:[#allocation4 + $0xfc] ss:$60 sps:$4 sm:$0xff]  }
  0x5b   :  { %2861 = vmatpush1.bf16.msra.mxu0 %v8179_v26  ;;  %v8241_v18 = vld [vmem:[#allocation4 + $0x170] ss:$60 sps:$4 sm:$0xff]   ;;  %v8252_v21 = vld [vmem:[#allocation4 + $0x9e4] ss:$60 sps:$4 sm:$0xff]   ;;  %v8247_v22 = vld [vmem:[#allocation4 + $0xf8] ss:$60 sps:$4 sm:$0xff]  }
  0x5c   :  { %2904 = vmatpush1.bf16.msra.mxu1 %v8180_v27  ;;  %2862 = vmatprep.subr.bf16.mxu0 %v8181_v28  ;;  %v8250_v23 = vld [vmem:[#allocation4 + $0x9e0] ss:$60 sps:$4 sm:$0xff]   ;;  %v8258_v25 = vld [vmem:[#allocation4 + $0x96c] ss:$60 sps:$4 sm:$0xff]  }
  0x5d   :  { %2905 = vmatprep.subr.bf16.mxu1 %v8183_v29  ;;  %v8255_v24 = vld [vmem:[#allocation4 + $0x84] ss:$60 sps:$4 sm:$0xff]   ;;  %v8261_v28 = vld [vmem:[#allocation4 + $0xc] ss:$60 sps:$4 sm:$0xff]   ;;  %v8264_v29 = vld [vmem:[#allocation4 + $0x8f4] ss:$60 sps:$4 sm:$0xff]  }
  0x5e   :  { %v8253_v26 = vld [vmem:[#allocation4 + $0x80] ss:$60 sps:$4 sm:$0xff]   ;;  %v8256_v27 = vld [vmem:[#allocation4 + $0x968] ss:$60 sps:$4 sm:$0xff]   ;;  %v8292_v52 = vld [vmem:[#allocation4 + $0xcb0] ss:$60 sps:$4 sm:$0xff]  }
  0x5f   :  { %2863 = vmatpush1.bf16.msra.mxu0 %v8185_v30  ;;  %v8259_v30 = vld [vmem:[#allocation4 + $0x8] ss:$60 sps:$4 sm:$0xff]   ;;  %v8297_v53 = vld [vmem:[#allocation4 + $0x4bc] ss:$60 sps:$4 sm:$0xff]  }
  0x60   :  { %2906 = vmatpush1.bf16.msra.mxu1 %v8186_v31  ;;  %2864 = vmatprep.subr.bf16.mxu0 %v8187_v32  ;;  %v8262_v31 = vld [vmem:[#allocation4 + $0x8f0] ss:$60 sps:$4 sm:$0xff]   ;;  %v8279_v40 = vld [vmem:[#allocation4 + $0x624] ss:$60 sps:$4 sm:$0xff]  }
  0x61   :  { %2913 = vmatprep.subr.bf16.mxu1 %v8189_v33  ;;  %v8267_v32 = vld [vmem:[#allocation4 + $0x714] ss:$60 sps:$4 sm:$0xff]   ;;  %v8270_v33 = vld [vmem:[#allocation4 + $0x87c] ss:$60 sps:$4 sm:$0xff]   ;;  %v8282_v41 = vld [vmem:[#allocation4 + $0x78c] ss:$60 sps:$4 sm:$0xff]  }
  0x62   :  { %v8306_v59 = vld [vmem:[#allocation4 + $0xbc4] ss:$60 sps:$4 sm:$0xff]  }
  0x63   :  { %2865 = vmatpush2.bf16.msra.mxu0 %v8191_v34  ;;  %v8265_v34 = vld [vmem:[#allocation4 + $0x710] ss:$60 sps:$4 sm:$0xff]   ;;  %v8301_v60 = vld [vmem:[#allocation4 + $0x440] ss:$60 sps:$4 sm:$0xff]  }
  0x64   :  { %2914 = vmatpush2.bf16.msra.mxu1 %v8192_v35  ;;  %2866 = vmatprep.subr.bf16.mxu0 %v8193_v36  ;;  %v8268_v35 = vld [vmem:[#allocation4 + $0x878] ss:$60 sps:$4 sm:$0xff]   ;;  %v8319_v9 = vld [vmem:[#allocation4 + $0x2e0] ss:$60 sps:$4 sm:$0xff]  }
  0x65   :  { %2915 = vmatprep.subr.bf16.mxu1 %v8195_v37  ;;  %v8273_v36 = vld [vmem:[#allocation4 + $0x69c] ss:$60 sps:$4 sm:$0xff]   ;;  %v8276_v37 = vld [vmem:[#allocation4 + $0x804] ss:$60 sps:$4 sm:$0xff]  }
  0x66   :  { %v8322_v10 = vld [vmem:[#allocation4 + $0xa60] ss:$60 sps:$4 sm:$0xff]  }
  0x67   :  { %2867 = vmatpush2.bf16.msra.mxu0 %v8197_v38  ;;  %v8271_v38 = vld [vmem:[#allocation4 + $0x698] ss:$60 sps:$4 sm:$0xff]  }
  0x68   :  { %2916 = vmatpush2.bf16.msra.mxu1 %v8198_v39  ;;  %2868 = vmatprep.subr.bf16.mxu0 %v8199_v42  ;;  %v8274_v39 = vld [vmem:[#allocation4 + $0x800] ss:$60 sps:$4 sm:$0xff]  }
  0x69   :  { %2917 = vmatprep.subr.bf16.mxu1 %v8201_v43  ;;  %v8277_v42 = vld [vmem:[#allocation4 + $0x620] ss:$60 sps:$4 sm:$0xff]   ;;  %v8280_v43 = vld [vmem:[#allocation4 + $0x788] ss:$60 sps:$4 sm:$0xff]  }
  0x6b   :  { %2869 = vmatpush2.bf16.msra.mxu0 %v8203_v45  ;;  %v8285_v45 = vld [vmem:[#allocation4 + $0x5ac] ss:$60 sps:$4 sm:$0xff]  }
  0x6c   :  { %2918 = vmatpush2.bf16.msra.mxu1 %v8204_v46  ;;  %2870 = vmatprep.subr.bf16.mxu0 %v8205_v47  ;;  %v8288_v46 = vld [vmem:[#allocation4 + $0xd2c] ss:$60 sps:$4 sm:$0xff]  }
  0x6d   :  { %2919 = vmatprep.subr.bf16.mxu1 %v8207_v48  ;;  %v8283_v47 = vld [vmem:[#allocation4 + $0x5a8] ss:$60 sps:$4 sm:$0xff]  }
  0x6e   :  { %v8286_v48 = vld [vmem:[#allocation4 + $0xd28] ss:$60 sps:$4 sm:$0xff]  }
  0x6f   :  { %2871 = vmatpush2.bf16.msra.mxu0 %v8209_v49  ;;  %v8291_v49 = vld [vmem:[#allocation4 + $0x534] ss:$60 sps:$4 sm:$0xff]  }
  0x70   :  { %2920 = vmatpush2.bf16.msra.mxu1 %v8210_v50  ;;  %2872 = vmatprep.subr.bf16.mxu0 %v8211_v51  ;;  %v8294_v50 = vld [vmem:[#allocation4 + $0xcb4] ss:$60 sps:$4 sm:$0xff]  }
  0x71   :  { %2921 = vmatprep.subr.bf16.mxu1 %v8213_v54  ;;  %v8289_v51 = vld [vmem:[#allocation4 + $0x530] ss:$60 sps:$4 sm:$0xff]   ;;  %v8300_v54 = vld [vmem:[#allocation4 + $0xc3c] ss:$60 sps:$4 sm:$0xff]  }
  0x73   :  { %2873 = vmatpush2.bf16.msra.mxu0 %v8215_v56  ;;  %v8295_v56 = vld [vmem:[#allocation4 + $0x4b8] ss:$60 sps:$4 sm:$0xff]  }
  0x74   :  { %2922 = vmatpush2.bf16.msra.mxu1 %v8216_v57  ;;  %2874 = vmatprep.subr.bf16.mxu0 %v8217_v58  ;;  %v8298_v57 = vld [vmem:[#allocation4 + $0xc38] ss:$60 sps:$4 sm:$0xff]   ;;  %v8303_v58 = vld [vmem:[#allocation4 + $0x444] ss:$60 sps:$4 sm:$0xff]  }
  0x75   :  { %2934 = vmatprep.subr.bf16.mxu1 %v8221_v61  ;;  %v8304_v61 = vld [vmem:[#allocation4 + $0xbc0] ss:$60 sps:$4 sm:$0xff]  }
  0x77   :  { %2924 = vmatmul.mubr.bf16.vlgmr.msra.gmra.mxu1 %v9670_v0  ;;  %2875 = vmatpush2.bf16.msra.mxu0 %v8222_v63  ;;  %v8312_v63 = vld [vmem:[#allocation4 + $0xb4c] ss:$60 sps:$4 sm:$0xff]  }
  0x78   :  { %2935 = vmatpush1.bf16.msra.mxu1 %v8219_v62  ;;  %2876 = vmatprep.subr.bf16.mxu0 %v8223_v1  ;;  %v8309_v62 = vld [vmem:[#allocation4 + $0x3cc] ss:$60 sps:$4 sm:$0xff]  }
  0x79   :  { %2936 = vmatprep.subr.bf16.mxu1 %v8227_v2  ;;  %2966 = vmatprep.mubr.bf16.mxu1 %v9667_v55  ;;  %v8307_v1 = vld [vmem:[#allocation4 + $0x3c8] ss:$60 sps:$4 sm:$0xff]  }
  0x7a   :  { %v8310_v2 = vld [vmem:[#allocation4 + $0xb48] ss:$60 sps:$4 sm:$0xff]  }
  0x7b   :  { %2877 = vmatpush2.bf16.msra.mxu0 %v8228_v4  ;;  %v8318_v4 = vld [vmem:[#allocation4 + $0xadc] ss:$60 sps:$4 sm:$0xff]  }
  0x7c   :  { %2937 = vmatpush1.bf16.msra.mxu1 %v8225_v3  ;;  %2878 = vmatprep.subr.bf16.mxu0 %v8229_v5  ;;  %v8315_v3 = vld [vmem:[#allocation4 + $0x35c] ss:$60 sps:$4 sm:$0xff]  }
  0x7d   :  { %2938 = vmatprep.subr.bf16.mxu1 %v8233_v6  ;;  %v8313_v5 = vld [vmem:[#allocation4 + $0x358] ss:$60 sps:$4 sm:$0xff]  }
  0x7e   :  { %v8316_v6 = vld [vmem:[#allocation4 + $0xad8] ss:$60 sps:$4 sm:$0xff]  }
  0x7f   :  { %2879 = vmatpush2.bf16.msra.mxu0 %v8234_v8  ;;  %v8324_v8 = vld [vmem:[#allocation4 + $0xa64] ss:$60 sps:$4 sm:$0xff]  }
  0x80   :  { %2939 = vmatpush1.bf16.msra.mxu1 %v8231_v7  ;;  %2977 = vmatprep.subr.bf16.mxu0 %v8240_v12  ;;  %v8321_v7 = vld [vmem:[#allocation4 + $0x2e4] ss:$60 sps:$4 sm:$0xff]   ;;  %v8330_v12 = vld [vmem:[#allocation4 + $0x9ec] ss:$60 sps:$4 sm:$0xff]  }
  0x81   :  { %2940 = vmatprep.subr.bf16.mxu1 %v8237_v11  ;;  %v8327_v11 = vld [vmem:[#allocation4 + $0x26c] ss:$60 sps:$4 sm:$0xff]  }
  0x82   :  { %2881 = vmatmul.mubr.bf16.vlgmr.msra.gmra.mxu0 %v9674_v13 }
  0x83   :  { %2978 = vmatpush1.bf16.msra.mxu0 %v8238_v15  ;;  %7618 = vmatprep.mubr.msk.bf16.mxu0 %vm2844_vm0, %v9663_v44  ;;  %v8328_v15 = vld [vmem:[#allocation4 + $0x9e8] ss:$60 sps:$4 sm:$0xff]  }
  0x84   :  { %2941 = vmatpush1.bf16.msra.mxu1 %v8235_v14  ;;  %2979 = vmatprep.subr.bf16.mxu0 %v8246_v17  ;;  %v8325_v14 = vld [vmem:[#allocation4 + $0x268] ss:$60 sps:$4 sm:$0xff]   ;;  %v8336_v17 = vld [vmem:[#allocation4 + $0x974] ss:$60 sps:$4 sm:$0xff]  }
  0x85   :  { %2942 = vmatprep.subr.bf16.mxu1 %v8243_v16  ;;  %v8333_v16 = vld [vmem:[#allocation4 + $0x1f4] ss:$60 sps:$4 sm:$0xff]  }
  0x87   :  { %2980 = vmatpush1.bf16.msra.mxu0 %v8244_v19  ;;  %v8334_v19 = vld [vmem:[#allocation4 + $0x970] ss:$60 sps:$4 sm:$0xff]  }
  0x88   :  { %2943 = vmatpush1.bf16.msra.mxu1 %v8241_v18  ;;  %2981 = vmatprep.subr.bf16.mxu0 %v8252_v21  ;;  %v8331_v18 = vld [vmem:[#allocation4 + $0x1f0] ss:$60 sps:$4 sm:$0xff]   ;;  %v8342_v21 = vld [vmem:[#allocation4 + $0x8fc] ss:$60 sps:$4 sm:$0xff]  }
  0x89   :  { %2944 = vmatprep.subr.bf16.mxu1 %v8249_v20  ;;  %v8339_v20 = vld [vmem:[#allocation4 + $0x17c] ss:$60 sps:$4 sm:$0xff]  }
  0x8b   :  { %2982 = vmatpush1.bf16.msra.mxu0 %v8250_v23  ;;  %v8340_v23 = vld [vmem:[#allocation4 + $0x8f8] ss:$60 sps:$4 sm:$0xff]  }
  0x8c   :  { %2945 = vmatpush1.bf16.msra.mxu1 %v8247_v22  ;;  %2983 = vmatprep.subr.bf16.mxu0 %v8258_v25  ;;  %v8337_v22 = vld [vmem:[#allocation4 + $0x178] ss:$60 sps:$4 sm:$0xff]   ;;  %v8348_v25 = vld [vmem:[#allocation4 + $0x884] ss:$60 sps:$4 sm:$0xff]  }
  0x8d   :  { %2946 = vmatprep.subr.bf16.mxu1 %v8255_v24  ;;  %v8345_v24 = vld [vmem:[#allocation4 + $0x104] ss:$60 sps:$4 sm:$0xff]  }
  0x8f   :  { %2984 = vmatpush1.bf16.msra.mxu0 %v8256_v27  ;;  %v8346_v27 = vld [vmem:[#allocation4 + $0x880] ss:$60 sps:$4 sm:$0xff]  }
  0x90   :  { %2947 = vmatpush1.bf16.msra.mxu1 %v8253_v26  ;;  %2985 = vmatprep.subr.bf16.mxu0 %v8264_v29  ;;  %v8343_v26 = vld [vmem:[#allocation4 + $0x100] ss:$60 sps:$4 sm:$0xff]   ;;  %v8354_v29 = vld [vmem:[#allocation4 + $0x80c] ss:$60 sps:$4 sm:$0xff]  }
  0x91   :  { %2948 = vmatprep.subr.bf16.mxu1 %v8261_v28  ;;  %v8351_v28 = vld [vmem:[#allocation4 + $0x8c] ss:$60 sps:$4 sm:$0xff]  }
  0x93   :  { %2986 = vmatpush1.bf16.msra.mxu0 %v8262_v31  ;;  %v8352_v31 = vld [vmem:[#allocation4 + $0x808] ss:$60 sps:$4 sm:$0xff]  }
  0x94   :  { %2949 = vmatpush1.bf16.msra.mxu1 %v8259_v30  ;;  %2987 = vmatprep.subr.bf16.mxu0 %v8270_v33  ;;  %v8349_v30 = vld [vmem:[#allocation4 + $0x88] ss:$60 sps:$4 sm:$0xff]   ;;  %v8360_v33 = vld [vmem:[#allocation4 + $0x794] ss:$60 sps:$4 sm:$0xff]  }
  0x95   :  { %2950 = vmatprep.subr.bf16.mxu1 %v8267_v32  ;;  %v8357_v32 = vld [vmem:[#allocation4 + $0x14] ss:$60 sps:$4 sm:$0xff]  }
  0x97   :  { %2988 = vmatpush1.bf16.msra.mxu0 %v8268_v35  ;;  %v8358_v35 = vld [vmem:[#allocation4 + $0x790] ss:$60 sps:$4 sm:$0xff]  }
  0x98   :  { %2951 = vmatpush2.bf16.msra.mxu1 %v8265_v34  ;;  %2989 = vmatprep.subr.bf16.mxu0 %v8276_v37  ;;  %v8355_v34 = vld [vmem:[#allocation4 + $0x10] ss:$60 sps:$4 sm:$0xff]  }
  0x99   :  { %2952 = vmatprep.subr.bf16.mxu1 %v8273_v36  ;;  %v8363_v36 = vld [vmem:[#allocation4 + $0x71c] ss:$60 sps:$4 sm:$0xff]   ;;  %v8366_v37 = vld [vmem:[#allocation4 + $0xd34] ss:$60 sps:$4 sm:$0xff]  }
  0x9b   :  { %2990 = vmatpush1.bf16.msra.mxu0 %v8274_v39  ;;  %v8364_v39 = vld [vmem:[#allocation4 + $0xd30] ss:$60 sps:$4 sm:$0xff]  }
  0x9c   :  { %2953 = vmatpush2.bf16.msra.mxu1 %v8271_v38  ;;  %2991 = vmatprep.subr.bf16.mxu0 %v8282_v41  ;;  %v8361_v38 = vld [vmem:[#allocation4 + $0x718] ss:$60 sps:$4 sm:$0xff]  }
  0x9d   :  { %2954 = vmatprep.subr.bf16.mxu1 %v8279_v40  ;;  %v8369_v40 = vld [vmem:[#allocation4 + $0x6a4] ss:$60 sps:$4 sm:$0xff]   ;;  %v8372_v41 = vld [vmem:[#allocation4 + $0xcbc] ss:$60 sps:$4 sm:$0xff]  }
  0x9f   :  { %2992 = vmatpush1.bf16.msra.mxu0 %v8280_v43  ;;  %v8370_v43 = vld [vmem:[#allocation4 + $0xcb8] ss:$60 sps:$4 sm:$0xff]  }
  0xa0   :  { %2955 = vmatpush2.bf16.msra.mxu1 %v8277_v42  ;;  %2999 = vmatprep.subr.bf16.mxu0 %v8288_v46  ;;  %v8367_v42 = vld [vmem:[#allocation4 + $0x6a0] ss:$60 sps:$4 sm:$0xff]  }
  0xa1   :  { %2956 = vmatprep.subr.bf16.mxu1 %v8285_v45  ;;  %v8375_v45 = vld [vmem:[#allocation4 + $0x62c] ss:$60 sps:$4 sm:$0xff]   ;;  %v8378_v46 = vld [vmem:[#allocation4 + $0xc44] ss:$60 sps:$4 sm:$0xff]  }
  0xa3   :  { %3000 = vmatpush2.bf16.msra.mxu0 %v8286_v48  ;;  %v8376_v48 = vld [vmem:[#allocation4 + $0xc40] ss:$60 sps:$4 sm:$0xff]  }
  0xa4   :  { %2957 = vmatpush2.bf16.msra.mxu1 %v8283_v47  ;;  %3001 = vmatprep.subr.bf16.mxu0 %v8294_v50  ;;  %v8373_v47 = vld [vmem:[#allocation4 + $0x628] ss:$60 sps:$4 sm:$0xff]  }
  0xa5   :  { %2958 = vmatprep.subr.bf16.mxu1 %v8291_v49  ;;  %v8381_v49 = vld [vmem:[#allocation4 + $0x5b4] ss:$60 sps:$4 sm:$0xff]   ;;  %v8384_v50 = vld [vmem:[#allocation4 + $0xbcc] ss:$60 sps:$4 sm:$0xff]  }
  0xa7   :  { %3002 = vmatpush2.bf16.msra.mxu0 %v8292_v52  ;;  %v8382_v52 = vld [vmem:[#allocation4 + $0xbc8] ss:$60 sps:$4 sm:$0xff]  }
  0xa8   :  { %2959 = vmatpush2.bf16.msra.mxu1 %v8289_v51  ;;  %3003 = vmatprep.subr.bf16.mxu0 %v8300_v54  ;;  %v8379_v51 = vld [vmem:[#allocation4 + $0x5b0] ss:$60 sps:$4 sm:$0xff]  }
  0xa9   :  { %2960 = vmatprep.subr.bf16.mxu1 %v8297_v53  ;;  %v8387_v53 = vld [vmem:[#allocation4 + $0x53c] ss:$60 sps:$4 sm:$0xff]   ;;  %v8390_v54 = vld [vmem:[#allocation4 + $0xb54] ss:$60 sps:$4 sm:$0xff]  }
  0xab   :  { %3004 = vmatpush2.bf16.msra.mxu0 %v8298_v57  ;;  %v8388_v57 = vld [vmem:[#allocation4 + $0xb50] ss:$60 sps:$4 sm:$0xff]  }
  0xac   :  { %2961 = vmatpush2.bf16.msra.mxu1 %v8295_v56  ;;  %3005 = vmatprep.subr.bf16.mxu0 %v8306_v59  ;;  %v8385_v56 = vld [vmem:[#allocation4 + $0x538] ss:$60 sps:$4 sm:$0xff]   ;;  %v8396_v59 = vld [vmem:[#allocation4 + $0x364] ss:$60 sps:$4 sm:$0xff]  }
  0xad   :  { %2962 = vmatprep.subr.bf16.mxu1 %v8303_v58  ;;  %v8393_v58 = vld [vmem:[#allocation4 + $0x4c4] ss:$60 sps:$4 sm:$0xff]  }
  0xaf   :  { %3006 = vmatpush2.bf16.msra.mxu0 %v8304_v61  ;;  %v8394_v61 = vld [vmem:[#allocation4 + $0x360] ss:$60 sps:$4 sm:$0xff]  }
  0xb0   :  { %2963 = vmatpush2.bf16.msra.mxu1 %v8301_v60  ;;  %3007 = vmatprep.subr.bf16.mxu0 %v8312_v63  ;;  %v8391_v60 = vld [vmem:[#allocation4 + $0x4c0] ss:$60 sps:$4 sm:$0xff]   ;;  %v8402_v63 = vld [vmem:[#allocation4 + $0x2ec] ss:$60 sps:$4 sm:$0xff]  }
  0xb1   :  { %2964 = vmatprep.subr.bf16.mxu1 %v8309_v62  ;;  %v8399_v62 = vld [vmem:[#allocation4 + $0x44c] ss:$60 sps:$4 sm:$0xff]  }
  0xb3   :  { %3008 = vmatpush2.bf16.msra.mxu0 %v8310_v2  ;;  %v8400_v2 = vld [vmem:[#allocation4 + $0x2e8] ss:$60 sps:$4 sm:$0xff]  }
  0xb4   :  { %2965 = vmatpush2.bf16.msra.mxu1 %v8307_v1  ;;  %3020 = vmatprep.subr.bf16.mxu0 %v8315_v3  ;;  %v8397_v1 = vld [vmem:[#allocation4 + $0x448] ss:$60 sps:$4 sm:$0xff]   ;;  %v8405_v3 = vld [vmem:[#allocation4 + $0x3d4] ss:$60 sps:$4 sm:$0xff]  }
  0xb5   :  { %3063 = vmatprep.subr.bf16.mxu1 %v8318_v4  ;;  %v8408_v4 = vld [vmem:[#allocation4 + $0x274] ss:$60 sps:$4 sm:$0xff]  }
  0xb6   :  { %3010 = vmatmul.mubr.bf16.vlgmr.msra.gmra.mxu0 %v9670_v0 }
  0xb7   :  { %2967 = vmatmul.mubr.bf16.vlgmr.msra.gmra.mxu1 %v9674_v13  ;;  %3021 = vmatpush1.bf16.msra.mxu0 %v8313_v5  ;;  %v8403_v5 = vld [vmem:[#allocation4 + $0x3d0] ss:$60 sps:$4 sm:$0xff]  }
  0xb8   :  { %3064 = vmatpush1.bf16.msra.mxu1 %v8316_v6  ;;  %3022 = vmatprep.subr.bf16.mxu0 %v8321_v7  ;;  %v8406_v6 = vld [vmem:[#allocation4 + $0x270] ss:$60 sps:$4 sm:$0xff]   ;;  %v8411_v7 = vld [vmem:[#allocation4 + $0x1fc] ss:$60 sps:$4 sm:$0xff]  }
  0xb9   :  { %3065 = vmatprep.subr.bf16.mxu1 %v8324_v8  ;;  %7619 = vmatprep.mubr.msk.bf16.mxu1 %vm2844_vm0, %v9663_v44  ;;  %v8414_v8 = vld [vmem:[#allocation4 + $0xae4] ss:$60 sps:$4 sm:$0xff]  }
  0xba   :  { %3052 = vmatprep.mubr.bf16.mxu0 %v9667_v55 }
  0xbb   :  { %3023 = vmatpush1.bf16.msra.mxu0 %v8319_v9  ;;  %v8409_v9 = vld [vmem:[#allocation4 + $0x1f8] ss:$60 sps:$4 sm:$0xff]  }
  0xbc   :  { %3066 = vmatpush1.bf16.msra.mxu1 %v8322_v10  ;;  %3024 = vmatprep.subr.bf16.mxu0 %v8327_v11  ;;  %v8412_v10 = vld [vmem:[#allocation4 + $0xae0] ss:$60 sps:$4 sm:$0xff]  }
  0xbd   :  { %3067 = vmatprep.subr.bf16.mxu1 %v8330_v12  ;;  %v8417_v11 = vld [vmem:[#allocation4 + $0x184] ss:$60 sps:$4 sm:$0xff]   ;;  %v8420_v12 = vld [vmem:[#allocation4 + $0xa6c] ss:$60 sps:$4 sm:$0xff]  }
  0xbf   :  { %3025 = vmatpush1.bf16.msra.mxu0 %v8325_v14  ;;  %v8415_v14 = vld [vmem:[#allocation4 + $0x180] ss:$60 sps:$4 sm:$0xff]  }
  0xc0   :  { %3068 = vmatpush1.bf16.msra.mxu1 %v8328_v15  ;;  %3026 = vmatprep.subr.bf16.mxu0 %v8333_v16  ;;  %v8418_v15 = vld [vmem:[#allocation4 + $0xa68] ss:$60 sps:$4 sm:$0xff]  }
  0xc1   :  { %3069 = vmatprep.subr.bf16.mxu1 %v8336_v17  ;;  %v8423_v16 = vld [vmem:[#allocation4 + $0x10c] ss:$60 sps:$4 sm:$0xff]   ;;  %v8426_v17 = vld [vmem:[#allocation4 + $0x9f4] ss:$60 sps:$4 sm:$0xff]  }
  0xc3   :  { %3027 = vmatpush1.bf16.msra.mxu0 %v8331_v18  ;;  %v8421_v18 = vld [vmem:[#allocation4 + $0x108] ss:$60 sps:$4 sm:$0xff]  }
  0xc4   :  { %3070 = vmatpush1.bf16.msra.mxu1 %v8334_v19  ;;  %3028 = vmatprep.subr.bf16.mxu0 %v8339_v20  ;;  %v8424_v19 = vld [vmem:[#allocation4 + $0x9f0] ss:$60 sps:$4 sm:$0xff]  }
  0xc5   :  { %3071 = vmatprep.subr.bf16.mxu1 %v8342_v21  ;;  %v8429_v20 = vld [vmem:[#allocation4 + $0x94] ss:$60 sps:$4 sm:$0xff]   ;;  %v8432_v21 = vld [vmem:[#allocation4 + $0x97c] ss:$60 sps:$4 sm:$0xff]  }
  0xc7   :  { %3029 = vmatpush1.bf16.msra.mxu0 %v8337_v22  ;;  %v8427_v22 = vld [vmem:[#allocation4 + $0x90] ss:$60 sps:$4 sm:$0xff]  }
  0xc8   :  { %3072 = vmatpush1.bf16.msra.mxu1 %v8340_v23  ;;  %3030 = vmatprep.subr.bf16.mxu0 %v8345_v24  ;;  %v8430_v23 = vld [vmem:[#allocation4 + $0x978] ss:$60 sps:$4 sm:$0xff]  }
  0xc9   :  { %3073 = vmatprep.subr.bf16.mxu1 %v8348_v25  ;;  %v8435_v24 = vld [vmem:[#allocation4 + $0x1c] ss:$60 sps:$4 sm:$0xff]   ;;  %v8438_v25 = vld [vmem:[#allocation4 + $0x904] ss:$60 sps:$4 sm:$0xff]  }
  0xcb   :  { %3031 = vmatpush1.bf16.msra.mxu0 %v8343_v26  ;;  %v8433_v26 = vld [vmem:[#allocation4 + $0x18] ss:$60 sps:$4 sm:$0xff]  }
  0xcc   :  { %3074 = vmatpush1.bf16.msra.mxu1 %v8346_v27  ;;  %3032 = vmatprep.subr.bf16.mxu0 %v8351_v28  ;;  %v8436_v27 = vld [vmem:[#allocation4 + $0x900] ss:$60 sps:$4 sm:$0xff]  }
  0xcd   :  { %3075 = vmatprep.subr.bf16.mxu1 %v8354_v29  ;;  %v8441_v28 = vld [vmem:[#allocation4 + $0x724] ss:$60 sps:$4 sm:$0xff]   ;;  %v8444_v29 = vld [vmem:[#allocation4 + $0x88c] ss:$60 sps:$4 sm:$0xff]  }
  0xcf   :  { %3033 = vmatpush1.bf16.msra.mxu0 %v8349_v30  ;;  %v8439_v30 = vld [vmem:[#allocation4 + $0x720] ss:$60 sps:$4 sm:$0xff]  }
  0xd0   :  { %3076 = vmatpush1.bf16.msra.mxu1 %v8352_v31  ;;  %3034 = vmatprep.subr.bf16.mxu0 %v8357_v32  ;;  %v8442_v31 = vld [vmem:[#allocation4 + $0x888] ss:$60 sps:$4 sm:$0xff]  }
  0xd1   :  { %3077 = vmatprep.subr.bf16.mxu1 %v8360_v33  ;;  %v8447_v32 = vld [vmem:[#allocation4 + $0x6ac] ss:$60 sps:$4 sm:$0xff]   ;;  %v8450_v33 = vld [vmem:[#allocation4 + $0x814] ss:$60 sps:$4 sm:$0xff]  }
  0xd3   :  { %3035 = vmatpush1.bf16.msra.mxu0 %v8355_v34  ;;  %v8445_v34 = vld [vmem:[#allocation4 + $0x6a8] ss:$60 sps:$4 sm:$0xff]  }
  0xd4   :  { %3078 = vmatpush1.bf16.msra.mxu1 %v8358_v35  ;;  %3036 = vmatprep.subr.bf16.mxu0 %v8363_v36  ;;  %v8448_v35 = vld [vmem:[#allocation4 + $0x810] ss:$60 sps:$4 sm:$0xff]  }
  0xd5   :  { %3085 = vmatprep.subr.bf16.mxu1 %v8366_v37  ;;  %v8453_v36 = vld [vmem:[#allocation4 + $0x634] ss:$60 sps:$4 sm:$0xff]   ;;  %v8456_v37 = vld [vmem:[#allocation4 + $0x79c] ss:$60 sps:$4 sm:$0xff]  }
  0xd7   :  { %3037 = vmatpush2.bf16.msra.mxu0 %v8361_v38  ;;  %v8451_v38 = vld [vmem:[#allocation4 + $0x630] ss:$60 sps:$4 sm:$0xff]  }
  0xd8   :  { %3086 = vmatpush2.bf16.msra.mxu1 %v8364_v39  ;;  %3038 = vmatprep.subr.bf16.mxu0 %v8369_v40  ;;  %v8454_v39 = vld [vmem:[#allocation4 + $0x798] ss:$60 sps:$4 sm:$0xff]  }
  0xd9   :  { %3087 = vmatprep.subr.bf16.mxu1 %v8372_v41  ;;  %v8459_v40 = vld [vmem:[#allocation4 + $0x5bc] ss:$60 sps:$4 sm:$0xff]  }
  0xda   :  { %v8462_v41 = vld [vmem:[#allocation4 + $0xd3c] ss:$60 sps:$4 sm:$0xff]  }
  0xdb   :  { %3039 = vmatpush2.bf16.msra.mxu0 %v8367_v42  ;;  %v8457_v42 = vld [vmem:[#allocation4 + $0x5b8] ss:$60 sps:$4 sm:$0xff]  }
  0xdc   :  { %3088 = vmatpush2.bf16.msra.mxu1 %v8370_v43  ;;  %3040 = vmatprep.subr.bf16.mxu0 %v8375_v45  ;;  %v8460_v43 = vld [vmem:[#allocation4 + $0xd38] ss:$60 sps:$4 sm:$0xff]   ;;  %v8465_v45 = vld [vmem:[#allocation4 + $0x544] ss:$60 sps:$4 sm:$0xff]  }
  0xdd   :  { %3089 = vmatprep.subr.bf16.mxu1 %v8378_v46  ;;  %v8468_v46 = vld [vmem:[#allocation4 + $0xcc4] ss:$60 sps:$4 sm:$0xff]  }
  0xdf   :  { %3041 = vmatpush2.bf16.msra.mxu0 %v8373_v47  ;;  %v8463_v47 = vld [vmem:[#allocation4 + $0x540] ss:$60 sps:$4 sm:$0xff]  }
  0xe0   :  { %3090 = vmatpush2.bf16.msra.mxu1 %v8376_v48  ;;  %3042 = vmatprep.subr.bf16.mxu0 %v8381_v49  ;;  %v8466_v48 = vld [vmem:[#allocation4 + $0xcc0] ss:$60 sps:$4 sm:$0xff]   ;;  %v8471_v49 = vld [vmem:[#allocation4 + $0x4cc] ss:$60 sps:$4 sm:$0xff]  }
  0xe1   :  { %3091 = vmatprep.subr.bf16.mxu1 %v8384_v50  ;;  %v8474_v50 = vld [vmem:[#allocation4 + $0xc4c] ss:$60 sps:$4 sm:$0xff]  }
  0xe3   :  { %3043 = vmatpush2.bf16.msra.mxu0 %v8379_v51  ;;  %v8469_v51 = vld [vmem:[#allocation4 + $0x4c8] ss:$60 sps:$4 sm:$0xff]  }
  0xe4   :  { %3092 = vmatpush2.bf16.msra.mxu1 %v8382_v52  ;;  %3044 = vmatprep.subr.bf16.mxu0 %v8387_v53  ;;  %v8472_v52 = vld [vmem:[#allocation4 + $0xc48] ss:$60 sps:$4 sm:$0xff]   ;;  %v8477_v53 = vld [vmem:[#allocation4 + $0x454] ss:$60 sps:$4 sm:$0xff]  }
  0xe5   :  { %3093 = vmatprep.subr.bf16.mxu1 %v8390_v54  ;;  %v8480_v54 = vld [vmem:[#allocation4 + $0xbd4] ss:$60 sps:$4 sm:$0xff]  }
  0xe7   :  { %3045 = vmatpush2.bf16.msra.mxu0 %v8385_v56  ;;  %v8475_v56 = vld [vmem:[#allocation4 + $0x450] ss:$60 sps:$4 sm:$0xff]  }
  0xe8   :  { %3094 = vmatpush2.bf16.msra.mxu1 %v8388_v57  ;;  %3046 = vmatprep.subr.bf16.mxu0 %v8393_v58  ;;  %v8478_v57 = vld [vmem:[#allocation4 + $0xbd0] ss:$60 sps:$4 sm:$0xff]   ;;  %v8483_v58 = vld [vmem:[#allocation4 + $0x3dc] ss:$60 sps:$4 sm:$0xff]  }
  0xe9   :  { %3106 = vmatprep.subr.bf16.mxu1 %v8396_v59  ;;  %v8486_v59 = vld [vmem:[#allocation4 + $0xb5c] ss:$60 sps:$4 sm:$0xff]  }
  0xeb   :  { %3096 = vmatmul.mubr.bf16.vlgmr.msra.gmra.mxu1 %v9670_v0  ;;  %3047 = vmatpush2.bf16.msra.mxu0 %v8391_v60  ;;  %v8481_v60 = vld [vmem:[#allocation4 + $0x3d8] ss:$60 sps:$4 sm:$0xff]  }
  0xec   :  { %3107 = vmatpush1.bf16.msra.mxu1 %v8394_v61  ;;  %3048 = vmatprep.subr.bf16.mxu0 %v8399_v62  ;;  %v8484_v61 = vld [vmem:[#allocation4 + $0xb58] ss:$60 sps:$4 sm:$0xff]   ;;  %v8489_v62 = vld [vmem:[#allocation4 + $0x36c] ss:$60 sps:$4 sm:$0xff]  }
  0xed   :  { %3108 = vmatprep.subr.bf16.mxu1 %v8402_v63  ;;  %3138 = vmatprep.mubr.bf16.mxu1 %v9667_v55  ;;  %v8492_v63 = vld [vmem:[#allocation4 + $0xaec] ss:$60 sps:$4 sm:$0xff]  }
  0xef   :  { %3049 = vmatpush2.bf16.msra.mxu0 %v8397_v1  ;;  %v8487_v1 = vld [vmem:[#allocation4 + $0x368] ss:$60 sps:$4 sm:$0xff]  }
  0xf0   :  { %3109 = vmatpush1.bf16.msra.mxu1 %v8400_v2  ;;  %3050 = vmatprep.subr.bf16.mxu0 %v8405_v3  ;;  %v8490_v2 = vld [vmem:[#allocation4 + $0xae8] ss:$60 sps:$4 sm:$0xff]   ;;  %v8495_v3 = vld [vmem:[#allocation4 + $0x2f4] ss:$60 sps:$4 sm:$0xff]  }
  0xf1   :  { %3110 = vmatprep.subr.bf16.mxu1 %v8408_v4  ;;  %v8498_v4 = vld [vmem:[#allocation4 + $0xa74] ss:$60 sps:$4 sm:$0xff]  }
  0xf3   :  { %3051 = vmatpush2.bf16.msra.mxu0 %v8403_v5  ;;  %v8493_v5 = vld [vmem:[#allocation4 + $0x2f0] ss:$60 sps:$4 sm:$0xff]  }
  0xf4   :  { %3111 = vmatpush1.bf16.msra.mxu1 %v8406_v6  ;;  %3149 = vmatprep.subr.bf16.mxu0 %v8414_v8  ;;  %v8496_v6 = vld [vmem:[#allocation4 + $0xa70] ss:$60 sps:$4 sm:$0xff]   ;;  %v8504_v8 = vld [vmem:[#allocation4 + $0x9fc] ss:$60 sps:$4 sm:$0xff]  }
  0xf5   :  { %3112 = vmatprep.subr.bf16.mxu1 %v8411_v7  ;;  %v8501_v7 = vld [vmem:[#allocation4 + $0x27c] ss:$60 sps:$4 sm:$0xff]  }
  0xf6   :  { %3053 = vmatmul.mubr.bf16.vlgmr.msra.gmra.mxu0 %v9674_v13 }
  0xf7   :  { %3150 = vmatpush1.bf16.msra.mxu0 %v8412_v10  ;;  %7620 = vmatprep.mubr.msk.bf16.mxu0 %vm2844_vm0, %v9663_v44  ;;  %v8502_v10 = vld [vmem:[#allocation4 + $0x9f8] ss:$60 sps:$4 sm:$0xff]  }
  0xf8   :  { %3113 = vmatpush1.bf16.msra.mxu1 %v8409_v9  ;;  %3151 = vmatprep.subr.bf16.mxu0 %v8420_v12  ;;  %v8499_v9 = vld [vmem:[#allocation4 + $0x278] ss:$60 sps:$4 sm:$0xff]   ;;  %v8510_v12 = vld [vmem:[#allocation4 + $0x984] ss:$60 sps:$4 sm:$0xff]  }
  0xf9   :  { %3114 = vmatprep.subr.bf16.mxu1 %v8417_v11  ;;  %v8507_v11 = vld [vmem:[#allocation4 + $0x204] ss:$60 sps:$4 sm:$0xff]  }
  0xfb   :  { %3152 = vmatpush1.bf16.msra.mxu0 %v8418_v15  ;;  %v8508_v15 = vld [vmem:[#allocation4 + $0x980] ss:$60 sps:$4 sm:$0xff]  }
  0xfc   :  { %3115 = vmatpush1.bf16.msra.mxu1 %v8415_v14  ;;  %3153 = vmatprep.subr.bf16.mxu0 %v8426_v17  ;;  %v8505_v14 = vld [vmem:[#allocation4 + $0x200] ss:$60 sps:$4 sm:$0xff]   ;;  %v8513_v17 = vld [vmem:[#allocation4 + $0x18c] ss:$60 sps:$4 sm:$0xff]  }
  0xfd   :  { %3116 = vmatprep.subr.bf16.mxu1 %v8423_v16  ;;  %v565_v16 = vlaneseq }
  0xff   :  { %3154 = vmatpush1.bf16.msra.mxu0 %v8424_v19  ;;  %v8511_v19 = vld [vmem:[#allocation4 + $0x188] ss:$60 sps:$4 sm:$0xff]  }
 0x100   :  { %3117 = vmatpush1.bf16.msra.mxu1 %v8421_v18  ;;  %3155 = vmatprep.subr.bf16.mxu0 %v8432_v21  ;;  %v8516_v18 = vld [vmem:[#allocation4 + $0x90c] ss:$60 sps:$4 sm:$0xff]   ;;  %v9694_v21 = vshrl.u32 %v565_v16, 7  ;;  %v8571_v16 = vld [vmem:[#allocation4 + $0x458] ss:$60 sps:$4 sm:$0xff]  }
 0x101   :  { %3118 = vmatprep.subr.bf16.mxu1 %v8429_v20  ;;  %v8514_v20 = vld [vmem:[#allocation4 + $0x908] ss:$60 sps:$4 sm:$0xff]  }
 0x103   :  { %3156 = vmatpush1.bf16.msra.mxu0 %v8430_v23  ;;  %v8522_v23 = vld [vmem:[#allocation4 + $0x894] ss:$60 sps:$4 sm:$0xff]  }
 0x104   :  { %3119 = vmatpush1.bf16.msra.mxu1 %v8427_v22  ;;  %3157 = vmatprep.subr.bf16.mxu0 %v8438_v25  ;;  %v8519_v22 = vld [vmem:[#allocation4 + $0x114] ss:$60 sps:$4 sm:$0xff]  }
 0x105   :  { %3120 = vmatprep.subr.bf16.mxu1 %v8435_v24  ;;  %v8517_v24 = vld [vmem:[#allocation4 + $0x110] ss:$60 sps:$4 sm:$0xff]  }
 0x106   :  { %v8520_v25 = vld [vmem:[#allocation4 + $0x890] ss:$60 sps:$4 sm:$0xff]  }
 0x107   :  { %3158 = vmatpush1.bf16.msra.mxu0 %v8436_v27  ;;  %v9699_v27 = vsub.s32 0, %v9694_v21 }
 0x108   :  { %3121 = vmatpush1.bf16.msra.mxu1 %v8433_v26  ;;  %3159 = vmatprep.subr.bf16.mxu0 %v8444_v29  ;;  %v9696_v26 = vld [vmem:[#allocation6] sm:$0xff] }
 0x109   :  { %3122 = vmatprep.subr.bf16.mxu1 %v8441_v28  ;;  %v8525_v28 = vld [vmem:[#allocation4 + $0x9c] ss:$60 sps:$4 sm:$0xff]  }
 0x10a   :  { %v8528_v29 = vld [vmem:[#allocation4 + $0x81c] ss:$60 sps:$4 sm:$0xff]  }
 0x10b   :  { %3160 = vmatpush1.bf16.msra.mxu0 %v8442_v31 }
 0x10c   :  { %3123 = vmatpush2.bf16.msra.mxu1 %v8439_v30  ;;  %3161 = vmatprep.subr.bf16.mxu0 %v8450_v33  ;;  %v8523_v30 = vld [vmem:[#allocation4 + $0x98] ss:$60 sps:$4 sm:$0xff]  }
 0x10d   :  { %3124 = vmatprep.subr.bf16.mxu1 %v8447_v32  ;;  %v568_v32 = vrot.slane %v9696_v26, %v9699_v27  ;;  %v8526_v33 = vld [vmem:[#allocation4 + $0x818] ss:$60 sps:$4 sm:$0xff]  }
 0x10f   :  { %3162 = vmatpush1.bf16.msra.mxu0 %v8448_v35  ;;  %v8534_v35 = vld [vmem:[#allocation4 + $0x7a4] ss:$60 sps:$4 sm:$0xff]  }
 0x110   :  { %3125 = vmatpush2.bf16.msra.mxu1 %v8445_v34  ;;  %3163 = vmatprep.subr.bf16.mxu0 %v8456_v37  ;;  %v8531_v34 = vld [vmem:[#allocation4 + $0x24] ss:$60 sps:$4 sm:$0xff]  }
 0x111   :  { %3126 = vmatprep.subr.bf16.mxu1 %v8453_v36 }
 0x113   :  { %3164 = vmatpush1.bf16.msra.mxu0 %v8454_v39 }
 0x114   :  { %3127 = vmatpush2.bf16.msra.mxu1 %v8451_v38  ;;  %3171 = vmatprep.subr.bf16.mxu0 %v8462_v41  ;;  %v8529_v38 = vld [vmem:[#allocation4 + $0x20] ss:$60 sps:$4 sm:$0xff]  }
 0x115   :  { %3128 = vmatprep.subr.bf16.mxu1 %v8459_v40  ;;  %v8532_v40 = vld [vmem:[#allocation4 + $0x7a0] ss:$60 sps:$4 sm:$0xff]  }
 0x117   :  { %3172 = vmatpush2.bf16.msra.mxu0 %v8460_v43  ;;  %v8540_v43 = vld [vmem:[#allocation4 + $0xd44] ss:$60 sps:$4 sm:$0xff]  }
 0x118   :  { %3129 = vmatpush2.bf16.msra.mxu1 %v8457_v42  ;;  %3173 = vmatprep.subr.bf16.mxu0 %v8468_v46  ;;  %v8537_v42 = vld [vmem:[#allocation4 + $0x72c] ss:$60 sps:$4 sm:$0xff]  }
 0x119   :  { %3130 = vmatprep.subr.bf16.mxu1 %v8465_v45 }
 0x11b   :  { %3174 = vmatpush2.bf16.msra.mxu0 %v8466_v48  ;;  %v8535_v48 = vld [vmem:[#allocation4 + $0x728] ss:$60 sps:$4 sm:$0xff]  }
 0x11c   :  { %3131 = vmatpush2.bf16.msra.mxu1 %v8463_v47  ;;  %3175 = vmatprep.subr.bf16.mxu0 %v8474_v50  ;;  %v8538_v50 = vld [vmem:[#allocation4 + $0xd40] ss:$60 sps:$4 sm:$0xff]  }
 0x11d   :  { %3132 = vmatprep.subr.bf16.mxu1 %v8471_v49 }
 0x11f   :  { %3176 = vmatpush2.bf16.msra.mxu0 %v8472_v52  ;;  %v8546_v52 = vld [vmem:[#allocation4 + $0xccc] ss:$60 sps:$4 sm:$0xff]  }
 0x120   :  { %3133 = vmatpush2.bf16.msra.mxu1 %v8469_v51  ;;  %3177 = vmatprep.subr.bf16.mxu0 %v8480_v54  ;;  %v8543_v51 = vld [vmem:[#allocation4 + $0x6b4] ss:$60 sps:$4 sm:$0xff]  }
 0x121   :  { %3134 = vmatprep.subr.bf16.mxu1 %v8477_v53  ;;  %v8541_v54 = vld [vmem:[#allocation4 + $0x6b0] ss:$60 sps:$4 sm:$0xff]  }
 0x123   :  { %3178 = vmatpush2.bf16.msra.mxu0 %v8478_v57 }
 0x124   :  { %3135 = vmatpush2.bf16.msra.mxu1 %v8475_v56  ;;  %3179 = vmatprep.subr.bf16.mxu0 %v8486_v59  ;;  %v8549_v59 = vld [vmem:[#allocation4 + $0x63c] ss:$60 sps:$4 sm:$0xff]  }
 0x125   :  { %3136 = vmatprep.subr.bf16.mxu1 %v8483_v58  ;;  %v8544_v58 = vld [vmem:[#allocation4 + $0xcc8] ss:$60 sps:$4 sm:$0xff]  }
 0x127   :  { %3180 = vmatpush2.bf16.msra.mxu0 %v8484_v61 }
 0x128   :  { %3137 = vmatpush2.bf16.msra.mxu1 %v8481_v60  ;;  %3192 = vmatprep.subr.bf16.mxu0 %v8489_v62  ;;  %v8552_v60 = vld [vmem:[#allocation4 + $0xc54] ss:$60 sps:$4 sm:$0xff]  }
 0x129   :  { %3235 = vmatprep.subr.bf16.mxu1 %v8492_v63  ;;  %v8547_v62 = vld [vmem:[#allocation4 + $0x638] ss:$60 sps:$4 sm:$0xff]   ;;  %v8550_v63 = vld [vmem:[#allocation4 + $0xc50] ss:$60 sps:$4 sm:$0xff]  }
 0x12a   :  { %3182 = vmatmul.mubr.bf16.vlgmr.msra.gmra.mxu0 %v9670_v0 }
 0x12b   :  { %3139 = vmatmul.mubr.bf16.vlgmr.msra.gmra.mxu1 %v9674_v13  ;;  %3193 = vmatpush1.bf16.msra.mxu0 %v8487_v1  ;;  %v8555_v1 = vld [vmem:[#allocation4 + $0x5c4] ss:$60 sps:$4 sm:$0xff]  }
 0x12c   :  { %3236 = vmatpush1.bf16.msra.mxu1 %v8490_v2  ;;  %3194 = vmatprep.subr.bf16.mxu0 %v8495_v3  ;;  %v8558_v2 = vld [vmem:[#allocation4 + $0xbdc] ss:$60 sps:$4 sm:$0xff]  }
 0x12d   :  { %3237 = vmatprep.subr.bf16.mxu1 %v8498_v4  ;;  %7621 = vmatprep.mubr.msk.bf16.mxu1 %vm2844_vm0, %v9663_v44  ;;  %v8553_v3 = vld [vmem:[#allocation4 + $0x5c0] ss:$60 sps:$4 sm:$0xff]   ;;  %v8556_v4 = vld [vmem:[#allocation4 + $0xbd8] ss:$60 sps:$4 sm:$0xff]  }
 0x12e   :  { %3224 = vmatprep.mubr.bf16.mxu0 %v9667_v55 }
 0x12f   :  { %3195 = vmatpush1.bf16.msra.mxu0 %v8493_v5  ;;  %v8561_v5 = vld [vmem:[#allocation4 + $0x54c] ss:$60 sps:$4 sm:$0xff]  }
 0x130   :  { %3238 = vmatpush1.bf16.msra.mxu1 %v8496_v6  ;;  %3196 = vmatprep.subr.bf16.mxu0 %v8501_v7  ;;  %v8564_v6 = vld [vmem:[#allocation4 + $0xb64] ss:$60 sps:$4 sm:$0xff]  }
 0x131   :  { %3239 = vmatprep.subr.bf16.mxu1 %v8504_v8  ;;  %v8559_v7 = vld [vmem:[#allocation4 + $0x548] ss:$60 sps:$4 sm:$0xff]   ;;  %v8562_v8 = vld [vmem:[#allocation4 + $0xb60] ss:$60 sps:$4 sm:$0xff]  }
 0x133   :  { %3197 = vmatpush1.bf16.msra.mxu0 %v8499_v9  ;;  %v8567_v9 = vld [vmem:[#allocation4 + $0x4d4] ss:$60 sps:$4 sm:$0xff]  }
 0x134   :  { %3240 = vmatpush1.bf16.msra.mxu1 %v8502_v10  ;;  %3198 = vmatprep.subr.bf16.mxu0 %v8507_v11  ;;  %v8570_v10 = vld [vmem:[#allocation4 + $0x374] ss:$60 sps:$4 sm:$0xff]  }
 0x135   :  { %3241 = vmatprep.subr.bf16.mxu1 %v8510_v12  ;;  %v8565_v11 = vld [vmem:[#allocation4 + $0x4d0] ss:$60 sps:$4 sm:$0xff]  }
 0x136   :  { %v8568_v12 = vld [vmem:[#allocation4 + $0x370] ss:$60 sps:$4 sm:$0xff]  }
 0x137   :  { %3199 = vmatpush1.bf16.msra.mxu0 %v8505_v14  ;;  %v2925_v31 = vpop.f32.mrf.mxu1  ;;  %v8573_v14 = vld [vmem:[#allocation4 + $0x45c] ss:$60 sps:$4 sm:$0xff]  }
 0x138   :  { %3242 = vmatpush1.bf16.msra.mxu1 %v8508_v15  ;;  %3200 = vmatprep.subr.bf16.mxu0 %v8513_v17  ;;  %v8576_v15 = vld [vmem:[#allocation4 + $0x2fc] ss:$60 sps:$4 sm:$0xff]  }
 0x139   :  { %3243 = vmatprep.subr.bf16.mxu1 %v8516_v18  ;;  %v9703_v37 = vpop.f32.mrf.mxu1  ;;  %v8574_v17 = vld [vmem:[#allocation4 + $0x2f8] ss:$60 sps:$4 sm:$0xff]   ;;  %v8579_v18 = vld [vmem:[#allocation4 + $0x3e4] ss:$60 sps:$4 sm:$0xff]  }
 0x13b   :  { %3201 = vmatpush1.bf16.msra.mxu0 %v8511_v19  ;;  %v2929_v47 = vpop.f32.mrf.mxu1  ;;  %v8582_v19 = vld [vmem:[#allocation4 + $0x284] ss:$60 sps:$4 sm:$0xff]  }
 0x13c   :  { %3244 = vmatpush1.bf16.msra.mxu1 %v8514_v20  ;;  %3202 = vmatprep.subr.bf16.mxu0 %v8519_v22  ;;  %v8577_v20 = vld [vmem:[#allocation4 + $0x3e0] ss:$60 sps:$4 sm:$0xff]  }
 0x13d   :  { %3245 = vmatprep.subr.bf16.mxu1 %v8522_v23  ;;  %v8580_v22 = vld [vmem:[#allocation4 + $0x280] ss:$60 sps:$4 sm:$0xff]   ;;  %v8585_v23 = vld [vmem:[#allocation4 + $0x20c] ss:$60 sps:$4 sm:$0xff]  }
 0x13f   :  { %3203 = vmatpush1.bf16.msra.mxu0 %v8517_v24  ;;  %v8588_v24 = vld [vmem:[#allocation4 + $0xaf4] ss:$60 sps:$4 sm:$0xff]  }
 0x140   :  { %3246 = vmatpush1.bf16.msra.mxu1 %v8520_v25  ;;  %3204 = vmatprep.subr.bf16.mxu0 %v8525_v28  ;;  %v8583_v25 = vld [vmem:[#allocation4 + $0x208] ss:$60 sps:$4 sm:$0xff]   ;;  %v8586_v28 = vld [vmem:[#allocation4 + $0xaf0] ss:$60 sps:$4 sm:$0xff]  }
 0x141   :  { %3247 = vmatprep.subr.bf16.mxu1 %v8528_v29  ;;  %v8591_v29 = vld [vmem:[#allocation4 + $0x194] ss:$60 sps:$4 sm:$0xff]  }
 0x142   :  { %v2882_v36 = vpop.f32.mrf.mxu0 }
 0x143   :  { %v2883_v39 = vadd.f32 %v2882_v36, %v568_v32  ;;  %3205 = vmatpush1.bf16.msra.mxu0 %v8523_v30  ;;  %v8594_v30 = vld [vmem:[#allocation4 + $0xa7c] ss:$60 sps:$4 sm:$0xff]  }
 0x144   :  { %3248 = vmatpush1.bf16.msra.mxu1 %v8526_v33  ;;  %v9705_v41 = vpop.f32.mrf.mxu0  ;;  %3206 = vmatprep.subr.bf16.mxu0 %v8531_v34  ;;  %v8597_v33 = vld [vmem:[#allocation4 + $0x11c] ss:$60 sps:$4 sm:$0xff]   ;;  %v8600_v34 = vld [vmem:[#allocation4 + $0xa04] ss:$60 sps:$4 sm:$0xff]  }
 0x145   :  { %3249 = vmatprep.subr.bf16.mxu1 %v8534_v35  ;;  %v2926_v45 = vadd.f32 %v2925_v31, %v2883_v39  ;;  %v8589_v31 = vld [vmem:[#allocation4 + $0x190] ss:$60 sps:$4 sm:$0xff]   ;;  %v8595_v35 = vld [vmem:[#allocation4 + $0x118] ss:$60 sps:$4 sm:$0xff]   ;;  %v8598_v36 = vld [vmem:[#allocation4 + $0xa00] ss:$60 sps:$4 sm:$0xff]  }
 0x146   :  { %v2886_v46 = vpop.f32.mrf.mxu0  ;;  %v9715_v39 = vsub.s32 2, %v9694_v21 }
 0x147   :  { %v2887_v49 = vadd.f32 %v2886_v46, %v568_v32  ;;  %3207 = vmatpush1.bf16.msra.mxu0 %v8529_v38  ;;  %v3532_v56 = vmax.f32 %v2926_v45, 0.0  ;;  %v8592_v32 = vld [vmem:[#allocation4 + $0xa78] ss:$60 sps:$4 sm:$0xff]   ;;  %v8603_v38 = vld [vmem:[#allocation4 + $0xa4] ss:$60 sps:$4 sm:$0xff]  }
 0x148   :  { %3250 = vmatpush1.bf16.msra.mxu1 %v8532_v40  ;;  %3208 = vmatprep.subr.bf16.mxu0 %v8537_v42  ;;  %v8606_v40 = vld [vmem:[#allocation4 + $0x98c] ss:$60 sps:$4 sm:$0xff]   ;;  %v8601_v42 = vld [vmem:[#allocation4 + $0xa0] ss:$60 sps:$4 sm:$0xff]   ;;  %v8612_v46 = vld [vmem:[#allocation4 + $0x914] ss:$60 sps:$4 sm:$0xff]  }
 0x149   :  { %3257 = vmatprep.subr.bf16.mxu1 %v8540_v43  ;;  %v2930_v53 = vadd.f32 %v2929_v47, %v2887_v49  ;;  %v8604_v43 = vld [vmem:[#allocation4 + $0x988] ss:$60 sps:$4 sm:$0xff]   ;;  %v576_v47 = vrot.slane %v9696_v26, %v9715_v39  ;;  %v9721_v49 = vpop.f32.mrf.mxu1  ;;  %v8615_v26 = vld [vmem:[#allocation4 + $0x734] ss:$60 sps:$4 sm:$0xff]  }
 0x14a   :  { %v8609_v45 = vld [vmem:[#allocation4 + $0x2c] ss:$60 sps:$4 sm:$0xff]  }
 0x14b   :  { %v3547_v57 = vmax.f32 %v2930_v53, 0.0  ;;  %3209 = vmatpush2.bf16.msra.mxu0 %v8535_v48  ;;  %v9719_v48 = vpop.f32.mrf.mxu0  ;;  %v8610_v53 = vld [vmem:[#allocation4 + $0x910] ss:$60 sps:$4 sm:$0xff]  }
 0x14c   :  { %3258 = vmatpush2.bf16.msra.mxu1 %v8538_v50  ;;  %3210 = vmatprep.subr.bf16.mxu0 %v8543_v51 }
 0x14d   :  { %3259 = vmatprep.subr.bf16.mxu1 %v8546_v52  ;;  %v9707_v61 = vpack.c.bf16 %v3547_v57, %v3532_v56  ;;  %v8607_v52 = vld [vmem:[#allocation4 + $0x28] ss:$60 sps:$4 sm:$0xff]  }
 0x14f   :  { %3211 = vmatpush2.bf16.msra.mxu0 %v8541_v54 }
 0x150   :  { %3260 = vmatpush2.bf16.msra.mxu1 %v8544_v58  ;;  %3212 = vmatprep.subr.bf16.mxu0 %v8549_v59  ;;  %v8618_v58 = vld [vmem:[#allocation4 + $0x89c] ss:$60 sps:$4 sm:$0xff]  }
 0x151   :  { %3261 = vmatprep.subr.bf16.mxu1 %v8552_v60  ;;  %v8613_v60 = vld [vmem:[#allocation4 + $0x730] ss:$60 sps:$4 sm:$0xff]  }
 0x153   :  { %3213 = vmatpush2.bf16.msra.mxu0 %v8547_v62  ;;  %v8616_v62 = vld [vmem:[#allocation4 + $0x898] ss:$60 sps:$4 sm:$0xff]  }
 0x154   :  { %3262 = vmatpush2.bf16.msra.mxu1 %v8550_v63  ;;  %3214 = vmatprep.subr.bf16.mxu0 %v8555_v1 }
 0x155   :  { %3263 = vmatprep.subr.bf16.mxu1 %v8558_v2 }
 0x157   :  { %3215 = vmatpush2.bf16.msra.mxu0 %v8553_v3  ;;  %v8621_v3 = vld [vmem:[#allocation4 + $0x6bc] ss:$60 sps:$4 sm:$0xff]  }
 0x158   :  { %3264 = vmatpush2.bf16.msra.mxu1 %v8556_v4  ;;  %3216 = vmatprep.subr.bf16.mxu0 %v8561_v5  ;;  %v8624_v4 = vld [vmem:[#allocation4 + $0x824] ss:$60 sps:$4 sm:$0xff]  }
 0x159   :  { %3265 = vmatprep.subr.bf16.mxu1 %v8564_v6  ;;  %v8619_v6 = vld [vmem:[#allocation4 + $0x6b8] ss:$60 sps:$4 sm:$0xff]  }
 0x15b   :  { %3217 = vmatpush2.bf16.msra.mxu0 %v8559_v7  ;;  %v8622_v7 = vld [vmem:[#allocation4 + $0x820] ss:$60 sps:$4 sm:$0xff]  }
 0x15c   :  { %3266 = vmatpush2.bf16.msra.mxu1 %v8562_v8  ;;  %3218 = vmatprep.subr.bf16.mxu0 %v8567_v9 }
 0x15d   :  { %3278 = vmatprep.subr.bf16.mxu1 %v8570_v10  ;;  %v8627_v10 = vld [vmem:[#allocation4 + $0x644] ss:$60 sps:$4 sm:$0xff]  }
 0x15f   :  { %3268 = vmatmul.mubr.bf16.vlgmr.msra.gmra.mxu1 %v9670_v0  ;;  %3219 = vmatpush2.bf16.msra.mxu0 %v8565_v11  ;;  %v8630_v11 = vld [vmem:[#allocation4 + $0x7ac] ss:$60 sps:$4 sm:$0xff]  }
 0x160   :  { %3279 = vmatpush1.bf16.msra.mxu1 %v8568_v12  ;;  %3220 = vmatprep.subr.bf16.mxu0 %v8573_v14  ;;  %v8625_v14 = vld [vmem:[#allocation4 + $0x640] ss:$60 sps:$4 sm:$0xff]  }
 0x161   :  { %3280 = vmatprep.subr.bf16.mxu1 %v8576_v15  ;;  %3310 = vmatprep.mubr.bf16.mxu1 %v9667_v55  ;;  %v8628_v15 = vld [vmem:[#allocation4 + $0x7a8] ss:$60 sps:$4 sm:$0xff]  }
 0x163   :  { %3221 = vmatpush2.bf16.msra.mxu0 %v8571_v16  ;;  %v8633_v16 = vld [vmem:[#allocation4 + $0x5cc] ss:$60 sps:$4 sm:$0xff]  }
 0x164   :  { %3281 = vmatpush1.bf16.msra.mxu1 %v8574_v17  ;;  %3222 = vmatprep.subr.bf16.mxu0 %v8579_v18  ;;  %v8636_v17 = vld [vmem:[#allocation4 + $0xd4c] ss:$60 sps:$4 sm:$0xff]  }
 0x165   :  { %3282 = vmatprep.subr.bf16.mxu1 %v8582_v19  ;;  %v8631_v18 = vld [vmem:[#allocation4 + $0x5c8] ss:$60 sps:$4 sm:$0xff]  }
 0x166   :  { %v8634_v19 = vld [vmem:[#allocation4 + $0xd48] ss:$60 sps:$4 sm:$0xff]  }
 0x167   :  { %3223 = vmatpush2.bf16.msra.mxu0 %v8577_v20  ;;  %v8639_v20 = vld [vmem:[#allocation4 + $0x554] ss:$60 sps:$4 sm:$0xff]  }
 0x168   :  { %3283 = vmatpush1.bf16.msra.mxu1 %v8580_v22  ;;  %3321 = vmatprep.subr.bf16.mxu0 %v8588_v24  ;;  %v8642_v22 = vld [vmem:[#allocation4 + $0xcd4] ss:$60 sps:$4 sm:$0xff]  }
 0x169   :  { %3284 = vmatprep.subr.bf16.mxu1 %v8585_v23  ;;  %v8637_v23 = vld [vmem:[#allocation4 + $0x550] ss:$60 sps:$4 sm:$0xff]  }
 0x16a   :  { %3225 = vmatmul.mubr.bf16.vlgmr.msra.gmra.mxu0 %v9674_v13  ;;  %v8640_v24 = vld [vmem:[#allocation4 + $0xcd0] ss:$60 sps:$4 sm:$0xff]  }
 0x16b   :  { %3322 = vmatpush1.bf16.msra.mxu0 %v8586_v28  ;;  %7622 = vmatprep.mubr.msk.bf16.mxu0 %vm2844_vm0, %v9663_v44  ;;  %v8648_v28 = vld [vmem:[#allocation4 + $0xc5c] ss:$60 sps:$4 sm:$0xff]  }
 0x16c   :  { %3285 = vmatpush1.bf16.msra.mxu1 %v8583_v25  ;;  %3323 = vmatprep.subr.bf16.mxu0 %v8594_v30  ;;  %v8645_v25 = vld [vmem:[#allocation4 + $0x4dc] ss:$60 sps:$4 sm:$0xff]  }
 0x16d   :  { %3286 = vmatprep.subr.bf16.mxu1 %v8591_v29  ;;  %v8643_v29 = vld [vmem:[#allocation4 + $0x4d8] ss:$60 sps:$4 sm:$0xff]  }
 0x16e   :  { %v8646_v30 = vld [vmem:[#allocation4 + $0xc58] ss:$60 sps:$4 sm:$0xff]  }
 0x16f   :  { %3324 = vmatpush1.bf16.msra.mxu0 %v8592_v32  ;;  %v8654_v32 = vld [vmem:[#allocation4 + $0xbe4] ss:$60 sps:$4 sm:$0xff]  }
 0x170   :  { %3287 = vmatpush1.bf16.msra.mxu1 %v8589_v31  ;;  %3325 = vmatprep.subr.bf16.mxu0 %v8600_v34  ;;  %v8651_v31 = vld [vmem:[#allocation4 + $0x464] ss:$60 sps:$4 sm:$0xff]  }
 0x171   :  { %3288 = vmatprep.subr.bf16.mxu1 %v8597_v33  ;;  %v8649_v33 = vld [vmem:[#allocation4 + $0x460] ss:$60 sps:$4 sm:$0xff]  }
 0x172   :  { %v8652_v34 = vld [vmem:[#allocation4 + $0xbe0] ss:$60 sps:$4 sm:$0xff]  }
 0x173   :  { %3326 = vmatpush1.bf16.msra.mxu0 %v8598_v36  ;;  %v8660_v36 = vld [vmem:[#allocation4 + $0xb6c] ss:$60 sps:$4 sm:$0xff]  }
 0x174   :  { %3289 = vmatpush1.bf16.msra.mxu1 %v8595_v35  ;;  %3327 = vmatprep.subr.bf16.mxu0 %v8606_v40  ;;  %v8657_v35 = vld [vmem:[#allocation4 + $0x3ec] ss:$60 sps:$4 sm:$0xff]  }
 0x175   :  { %3290 = vmatprep.subr.bf16.mxu1 %v8603_v38  ;;  %v8655_v38 = vld [vmem:[#allocation4 + $0x3e8] ss:$60 sps:$4 sm:$0xff]  }
 0x176   :  { %v3011_v51 = vpop.f32.mrf.mxu0  ;;  %v8658_v40 = vld [vmem:[#allocation4 + $0xb68] ss:$60 sps:$4 sm:$0xff]  }
 0x177   :  { %v2968_v50 = vpop.f32.mrf.mxu1  ;;  %3328 = vmatpush1.bf16.msra.mxu0 %v8604_v43  ;;  %v8666_v43 = vld [vmem:[#allocation4 + $0xafc] ss:$60 sps:$4 sm:$0xff]  }
 0x178   :  { %v2969_v54 = vadd.f32 %v2968_v50, %v576_v47  ;;  %3291 = vmatpush1.bf16.msra.mxu1 %v8601_v42  ;;  %v9725_v57 = vpop.f32.mrf.mxu0  ;;  %3329 = vmatprep.subr.bf16.mxu0 %v8612_v46  ;;  %v8663_v42 = vld [vmem:[#allocation4 + $0x37c] ss:$60 sps:$4 sm:$0xff]   ;;  %v8672_v50 = vld [vmem:[#allocation4 + $0xa84] ss:$60 sps:$4 sm:$0xff]  }
 0x179   :  { %v9723_v56 = vpop.f32.mrf.mxu1  ;;  %3292 = vmatprep.subr.bf16.mxu1 %v8609_v45  ;;  %v8661_v45 = vld [vmem:[#allocation4 + $0x378] ss:$60 sps:$4 sm:$0xff]  }
 0x17a   :  { %v3012_v59 = vadd.f32 %v3011_v51, %v2969_v54  ;;  %v3015_v2 = vpop.f32.mrf.mxu0  ;;  %v8664_v46 = vld [vmem:[#allocation4 + $0xaf8] ss:$60 sps:$4 sm:$0xff]   ;;  %v8667_v51 = vld [vmem:[#allocation4 + $0x300] ss:$60 sps:$4 sm:$0xff]   ;;  %v8678_v54 = vld [vmem:[#allocation4 + $0xa0c] ss:$60 sps:$4 sm:$0xff]  }
 0x17b   :  { %v2972_v63 = vpop.f32.mrf.mxu1  ;;  %3330 = vmatpush1.bf16.msra.mxu0 %v8610_v53  ;;  %v8675_v53 = vld [vmem:[#allocation4 + $0x28c] ss:$60 sps:$4 sm:$0xff]  }
 0x17c   :  { %v2973_v1 = vadd.f32 %v2972_v63, %v576_v47  ;;  %3293 = vmatpush1.bf16.msra.mxu1 %v8607_v52  ;;  %3331 = vmatprep.subr.bf16.mxu0 %v8618_v58  ;;  %v3534_v8 = vmax.f32 %v3012_v59, 0.0  ;;  %v8669_v47 = vld [vmem:[#allocation4 + $0x304] ss:$60 sps:$4 sm:$0xff]   ;;  %v8681_v59 = vld [vmem:[#allocation4 + $0x214] ss:$60 sps:$4 sm:$0xff]  }
 0x17d   :  { %3294 = vmatprep.subr.bf16.mxu1 %v8615_v26  ;;  %v8670_v52 = vld [vmem:[#allocation4 + $0xa80] ss:$60 sps:$4 sm:$0xff]   ;;  %v8673_v26 = vld [vmem:[#allocation4 + $0x288] ss:$60 sps:$4 sm:$0xff]   ;;  %v8682_v63 = vld [vmem:[#allocation4 + $0x990] ss:$60 sps:$4 sm:$0xff]  }
 0x17e   :  { %v3016_v5 = vadd.f32 %v3015_v2, %v2973_v1  ;;  %v8676_v58 = vld [vmem:[#allocation4 + $0xa08] ss:$60 sps:$4 sm:$0xff]   ;;  %v8687_v1 = vld [vmem:[#allocation4 + $0x19c] ss:$60 sps:$4 sm:$0xff]  }
 0x17f   :  { %3332 = vmatpush1.bf16.msra.mxu0 %v8616_v62  ;;  %v8679_v62 = vld [vmem:[#allocation4 + $0x210] ss:$60 sps:$4 sm:$0xff]   ;;  %v8690_v2 = vld [vmem:[#allocation4 + $0x91c] ss:$60 sps:$4 sm:$0xff]  }
 0x180   :  { %v3549_v9 = vmax.f32 %v3016_v5, 0.0  ;;  %3295 = vmatpush2.bf16.msra.mxu1 %v8613_v60  ;;  %3333 = vmatprep.subr.bf16.mxu0 %v8624_v4  ;;  %v8684_v60 = vld [vmem:[#allocation4 + $0x994] ss:$60 sps:$4 sm:$0xff]   ;;  %v8693_v5 = vld [vmem:[#allocation4 + $0x124] ss:$60 sps:$4 sm:$0xff]  }
 0x181   :  { %3296 = vmatprep.subr.bf16.mxu1 %v8621_v3  ;;  %v8685_v3 = vld [vmem:[#allocation4 + $0x198] ss:$60 sps:$4 sm:$0xff]  }
 0x182   :  { %v9727_v12 = vpack.c.bf16 %v3549_v9, %v3534_v8  ;;  %v8688_v4 = vld [vmem:[#allocation4 + $0x918] ss:$60 sps:$4 sm:$0xff]   ;;  %v8694_v8 = vld [vmem:[#allocation4 + $0x8a0] ss:$60 sps:$4 sm:$0xff]   ;;  %v8699_v9 = vld [vmem:[#allocation4 + $0xac] ss:$60 sps:$4 sm:$0xff]  }
 0x183   :  { %3334 = vmatpush1.bf16.msra.mxu0 %v8622_v7  ;;  %v8691_v7 = vld [vmem:[#allocation4 + $0x120] ss:$60 sps:$4 sm:$0xff]  }
 0x184   :  { %3297 = vmatpush2.bf16.msra.mxu1 %v8619_v6  ;;  %3335 = vmatprep.subr.bf16.mxu0 %v8630_v11  ;;  %v8696_v6 = vld [vmem:[#allocation4 + $0x8a4] ss:$60 sps:$4 sm:$0xff]   ;;  %v583_v11 = vsub.s32 4, %v9694_v21 }
 0x185   :  { %3298 = vmatprep.subr.bf16.mxu1 %v8627_v10  ;;  %v8702_v10 = vld [vmem:[#allocation4 + $0x82c] ss:$60 sps:$4 sm:$0xff]  }
 0x187   :  { %3336 = vmatpush1.bf16.msra.mxu0 %v8628_v15  ;;  %v8697_v15 = vld [vmem:[#allocation4 + $0xa8] ss:$60 sps:$4 sm:$0xff]  }
 0x188   :  { %3299 = vmatpush2.bf16.msra.mxu1 %v8625_v14  ;;  %3343 = vmatprep.subr.bf16.mxu0 %v8636_v17  ;;  %v9735_v14 = vpop.f32.mrf.mxu1 }
 0x189   :  { %3300 = vmatprep.subr.bf16.mxu1 %v8633_v16  ;;  %v8700_v16 = vld [vmem:[#allocation4 + $0x828] ss:$60 sps:$4 sm:$0xff]  }
 0x18b   :  { %3344 = vmatpush2.bf16.msra.mxu0 %v8634_v19  ;;  %v8708_v19 = vld [vmem:[#allocation4 + $0x7b4] ss:$60 sps:$4 sm:$0xff]  }
 0x18c   :  { %3301 = vmatpush2.bf16.msra.mxu1 %v8631_v18  ;;  %3345 = vmatprep.subr.bf16.mxu0 %v8642_v22  ;;  %v8705_v18 = vld [vmem:[#allocation4 + $0x34] ss:$60 sps:$4 sm:$0xff]  }
 0x18d   :  { %3302 = vmatprep.subr.bf16.mxu1 %v8639_v20  ;;  %v9737_v20 = vld [vmem:[#allocation6] sm:$0xff] }
 0x18e   :  { %v584_v22 = vrot.slane %v9737_v20, %v583_v11 }
 0x18f   :  { %3346 = vmatpush2.bf16.msra.mxu0 %v8640_v24 }
 0x190   :  { %3303 = vmatpush2.bf16.msra.mxu1 %v8637_v23  ;;  %3347 = vmatprep.subr.bf16.mxu0 %v8648_v28  ;;  %v9742_v23 = vpop.f32.mrf.mxu0 }
 0x191   :  { %3304 = vmatprep.subr.bf16.mxu1 %v8645_v25 }
 0x193   :  { %3348 = vmatpush2.bf16.msra.mxu0 %v8646_v30  ;;  %v8706_v30 = vld [vmem:[#allocation4 + $0x7b0] ss:$60 sps:$4 sm:$0xff]  }
 0x194   :  { %3305 = vmatpush2.bf16.msra.mxu1 %v8643_v29  ;;  %3349 = vmatprep.subr.bf16.mxu0 %v8654_v32  ;;  %v8703_v29 = vld [vmem:[#allocation4 + $0x30] ss:$60 sps:$4 sm:$0xff]   ;;  %v8711_v32 = vld [vmem:[#allocation4 + $0x73c] ss:$60 sps:$4 sm:$0xff]  }
 0x195   :  { %3306 = vmatprep.subr.bf16.mxu1 %v8651_v31 }
 0x197   :  { %3350 = vmatpush2.bf16.msra.mxu0 %v8652_v34 }
 0x198   :  { %3307 = vmatpush2.bf16.msra.mxu1 %v8649_v33  ;;  %3351 = vmatprep.subr.bf16.mxu0 %v8660_v36  ;;  %v8714_v33 = vld [vmem:[#allocation4 + $0xd54] ss:$60 sps:$4 sm:$0xff]  }
 0x199   :  { %3308 = vmatprep.subr.bf16.mxu1 %v8657_v35 }
 0x19b   :  { %3352 = vmatpush2.bf16.msra.mxu0 %v8658_v40  ;;  %v8709_v40 = vld [vmem:[#allocation4 + $0x738] ss:$60 sps:$4 sm:$0xff]  }
 0x19c   :  { %3309 = vmatpush2.bf16.msra.mxu1 %v8655_v38  ;;  %3364 = vmatprep.subr.bf16.mxu0 %v8663_v42  ;;  %v8712_v42 = vld [vmem:[#allocation4 + $0xd50] ss:$60 sps:$4 sm:$0xff]  }
 0x19d   :  { %3407 = vmatprep.subr.bf16.mxu1 %v8666_v43  ;;  %v8717_v43 = vld [vmem:[#allocation4 + $0x6c4] ss:$60 sps:$4 sm:$0xff]  }
 0x19e   :  { %3354 = vmatmul.mubr.bf16.vlgmr.msra.gmra.mxu0 %v9670_v0 }
 0x19f   :  { %3311 = vmatmul.mubr.bf16.vlgmr.msra.gmra.mxu1 %v9674_v13  ;;  %3365 = vmatpush1.bf16.msra.mxu0 %v8661_v45  ;;  %v8720_v45 = vld [vmem:[#allocation4 + $0xcdc] ss:$60 sps:$4 sm:$0xff]  }
 0x1a0   :  { %3408 = vmatpush1.bf16.msra.mxu1 %v8664_v46  ;;  %3366 = vmatprep.subr.bf16.mxu0 %v8669_v47  ;;  %v8715_v47 = vld [vmem:[#allocation4 + $0x6c0] ss:$60 sps:$4 sm:$0xff]  }
 0x1a1   :  { %3409 = vmatprep.subr.bf16.mxu1 %v8672_v50  ;;  %7623 = vmatprep.mubr.msk.bf16.mxu1 %vm2844_vm0, %v9663_v44 }
 0x1a2   :  { %3396 = vmatprep.mubr.bf16.mxu0 %v9667_v55 }
 0x1a3   :  { %3367 = vmatpush1.bf16.msra.mxu0 %v8667_v51 }
 0x1a4   :  { %3410 = vmatpush1.bf16.msra.mxu1 %v8670_v52  ;;  %3368 = vmatprep.subr.bf16.mxu0 %v8675_v53  ;;  %v8718_v52 = vld [vmem:[#allocation4 + $0xcd8] ss:$60 sps:$4 sm:$0xff]   ;;  %v8723_v53 = vld [vmem:[#allocation4 + $0x64c] ss:$60 sps:$4 sm:$0xff]  }
 0x1a5   :  { %3411 = vmatprep.subr.bf16.mxu1 %v8678_v54  ;;  %v8726_v54 = vld [vmem:[#allocation4 + $0xc64] ss:$60 sps:$4 sm:$0xff]  }
 0x1a7   :  { %3369 = vmatpush1.bf16.msra.mxu0 %v8673_v26 }
 0x1a8   :  { %3412 = vmatpush1.bf16.msra.mxu1 %v8676_v58  ;;  %3370 = vmatprep.subr.bf16.mxu0 %v8681_v59  ;;  %v8721_v58 = vld [vmem:[#allocation4 + $0x648] ss:$60 sps:$4 sm:$0xff]   ;;  %v8724_v59 = vld [vmem:[#allocation4 + $0xc60] ss:$60 sps:$4 sm:$0xff]  }
 0x1a9   :  { %3413 = vmatprep.subr.bf16.mxu1 %v8684_v60  ;;  %v8729_v60 = vld [vmem:[#allocation4 + $0x5d4] ss:$60 sps:$4 sm:$0xff]  }
 0x1ab   :  { %3371 = vmatpush1.bf16.msra.mxu0 %v8679_v62  ;;  %v3097_v17 = vpop.f32.mrf.mxu1  ;;  %v8732_v62 = vld [vmem:[#allocation4 + $0xbec] ss:$60 sps:$4 sm:$0xff]  }
 0x1ac   :  { %3414 = vmatpush1.bf16.msra.mxu1 %v8682_v63  ;;  %3372 = vmatprep.subr.bf16.mxu0 %v8687_v1  ;;  %v8727_v63 = vld [vmem:[#allocation4 + $0x5d0] ss:$60 sps:$4 sm:$0xff]   ;;  %v8730_v1 = vld [vmem:[#allocation4 + $0xbe8] ss:$60 sps:$4 sm:$0xff]  }
 0x1ad   :  { %3415 = vmatprep.subr.bf16.mxu1 %v8690_v2  ;;  %v9744_v25 = vpop.f32.mrf.mxu1  ;;  %v8735_v2 = vld [vmem:[#allocation4 + $0x55c] ss:$60 sps:$4 sm:$0xff]  }
 0x1af   :  { %3373 = vmatpush1.bf16.msra.mxu0 %v8685_v3  ;;  %v3101_v36 = vpop.f32.mrf.mxu1  ;;  %v8738_v3 = vld [vmem:[#allocation4 + $0xb74] ss:$60 sps:$4 sm:$0xff]  }
 0x1b0   :  { %3416 = vmatpush1.bf16.msra.mxu1 %v8688_v4  ;;  %3374 = vmatprep.subr.bf16.mxu0 %v8693_v5  ;;  %v8733_v4 = vld [vmem:[#allocation4 + $0x558] ss:$60 sps:$4 sm:$0xff]   ;;  %v8736_v5 = vld [vmem:[#allocation4 + $0xb70] ss:$60 sps:$4 sm:$0xff]  }
 0x1b1   :  { %3417 = vmatprep.subr.bf16.mxu1 %v8696_v6  ;;  %v8741_v6 = vld [vmem:[#allocation4 + $0x4e4] ss:$60 sps:$4 sm:$0xff]  }
 0x1b3   :  { %3375 = vmatpush1.bf16.msra.mxu0 %v8691_v7  ;;  %v8742_v7 = vld [vmem:[#allocation4 + $0x740] ss:$60 sps:$4 sm:$0xff]  }
 0x1b4   :  { %3418 = vmatpush1.bf16.msra.mxu1 %v8694_v8  ;;  %3376 = vmatprep.subr.bf16.mxu0 %v8699_v9  ;;  %v8739_v8 = vld [vmem:[#allocation4 + $0x4e0] ss:$60 sps:$4 sm:$0xff]  }
 0x1b5   :  { %3419 = vmatprep.subr.bf16.mxu1 %v8702_v10  ;;  %v8743_v9 = vld [vmem:[#allocation4 + $0x380] ss:$60 sps:$4 sm:$0xff]   ;;  %v8746_v10 = vld [vmem:[#allocation4 + $0x46c] ss:$60 sps:$4 sm:$0xff]  }
 0x1b6   :  { %v3054_v24 = vpop.f32.mrf.mxu0 }
 0x1b7   :  { %v3055_v28 = vadd.f32 %v3054_v24, %v584_v22  ;;  %3377 = vmatpush1.bf16.msra.mxu0 %v8697_v15  ;;  %v8747_v15 = vld [vmem:[#allocation4 + $0x6c8] ss:$60 sps:$4 sm:$0xff]   ;;  %v8753_v24 = vld [vmem:[#allocation4 + $0x290] ss:$60 sps:$4 sm:$0xff]  }
 0x1b8   :  { %3420 = vmatpush1.bf16.msra.mxu1 %v8700_v16  ;;  %v9746_v31 = vpop.f32.mrf.mxu0  ;;  %3378 = vmatprep.subr.bf16.mxu0 %v8705_v18  ;;  %v8744_v16 = vld [vmem:[#allocation4 + $0x468] ss:$60 sps:$4 sm:$0xff]   ;;  %v8751_v18 = vld [vmem:[#allocation4 + $0x3f4] ss:$60 sps:$4 sm:$0xff]  }
 0x1b9   :  { %3421 = vmatprep.subr.bf16.mxu1 %v8708_v19  ;;  %v3098_v34 = vadd.f32 %v3097_v17, %v3055_v28  ;;  %v8748_v17 = vld [vmem:[#allocation4 + $0x308] ss:$60 sps:$4 sm:$0xff]   ;;  %v8752_v19 = vld [vmem:[#allocation4 + $0x650] ss:$60 sps:$4 sm:$0xff]   ;;  %v8754_v28 = vld [vmem:[#allocation4 + $0x5d8] ss:$60 sps:$4 sm:$0xff]  }
 0x1ba   :  { %v3058_v35 = vpop.f32.mrf.mxu0 }
 0x1bb   :  { %v3059_v38 = vadd.f32 %v3058_v35, %v584_v22  ;;  %3379 = vmatpush1.bf16.msra.mxu0 %v8703_v29  ;;  %v3536_v50 = vmax.f32 %v3098_v34, 0.0  ;;  %v8749_v22 = vld [vmem:[#allocation4 + $0x3f0] ss:$60 sps:$4 sm:$0xff]   ;;  %v8755_v29 = vld [vmem:[#allocation4 + $0x218] ss:$60 sps:$4 sm:$0xff]  }
 0x1bc   :  { %3422 = vmatpush1.bf16.msra.mxu1 %v8706_v30  ;;  %3380 = vmatprep.subr.bf16.mxu0 %v8711_v32  ;;  %v8756_v30 = vld [vmem:[#allocation4 + $0xb00] ss:$60 sps:$4 sm:$0xff]   ;;  %v8760_v35 = vld [vmem:[#allocation4 + $0x4e8] ss:$60 sps:$4 sm:$0xff]  }
 0x1bd   :  { %3429 = vmatprep.subr.bf16.mxu1 %v8714_v33  ;;  %v3102_v46 = vadd.f32 %v3101_v36, %v3059_v38  ;;  %v8757_v32 = vld [vmem:[#allocation4 + $0x560] ss:$60 sps:$4 sm:$0xff]   ;;  %v9617_v33 = vmov 0   ;;  %v9755_v36 = vsub.s32 1, %v9694_v21  ;;  %v8761_v38 = vld [vmem:[#allocation4 + $0x128] ss:$60 sps:$4 sm:$0xff]  }
 0x1be   :  { %v8758_v34 = vld [vmem:[#allocation4 + $0x1a0] ss:$60 sps:$4 sm:$0xff]  }
 0x1bf   :  { %v3551_v51 = vmax.f32 %v3102_v46, 0.0  ;;  %3381 = vmatpush2.bf16.msra.mxu0 %v8709_v40  ;;  %v8762_v40 = vld [vmem:[#allocation4 + $0xa10] ss:$60 sps:$4 sm:$0xff]  }
 0x1c0   :  { %3430 = vmatpush2.bf16.msra.mxu1 %v8712_v42  ;;  %3382 = vmatprep.subr.bf16.mxu0 %v8717_v43  ;;  %v8763_v42 = vld [vmem:[#allocation4 + $0x470] ss:$60 sps:$4 sm:$0xff]   ;;  %v591_v43 = vsub.s32 6, %v9694_v21 }
 0x1c1   :  { %3431 = vmatprep.subr.bf16.mxu1 %v8720_v45  ;;  %v9748_v26 = vpack.c.bf16 %v3551_v51, %v3536_v50  ;;  %v572_v45 = vrot.slane %v9737_v20, %v9755_v36  ;;  %v8764_v46 = vld [vmem:[#allocation4 + $0xb0] ss:$60 sps:$4 sm:$0xff]   ;;  %v8765_v50 = vld [vmem:[#allocation4 + $0x998] ss:$60 sps:$4 sm:$0xff]  }
 0x1c2   :  { %v8766_v51 = vld [vmem:[#allocation4 + $0x3f8] ss:$60 sps:$4 sm:$0xff]  }
 0x1c3   :  { %3383 = vmatpush2.bf16.msra.mxu0 %v8715_v47  ;;  %v2889_v47 = vadd.f32 %v9719_v48, %v572_v45 }
 0x1c4   :  { %3432 = vmatpush2.bf16.msra.mxu1 %v8718_v52  ;;  %3384 = vmatprep.subr.bf16.mxu0 %v8723_v53  ;;  %v2885_v52 = vadd.f32 %v9705_v41, %v572_v45  ;;  %v9769_v53 = vpop.f32.mrf.mxu0  ;;  %v8789_v45 = vld [vmem:[#allocation7 + $0x40] ss:$16 sps:$4 sm:$0xff]  }
 0x1c5   :  { %3433 = vmatprep.subr.bf16.mxu1 %v8726_v54  ;;  %v9771_v54 = vpop.f32.mrf.mxu1 }
 0x1c7   :  { %3385 = vmatpush2.bf16.msra.mxu0 %v8721_v58  ;;  %v2932_v58 = vadd.f32 %v9721_v49, %v2889_v47  ;;  %v8772_v49 = vld [vmem:[#allocation4 + $0x8a8] ss:$60 sps:$4 sm:$0xff]  }
 0x1c8   :  { %3434 = vmatpush2.bf16.msra.mxu1 %v8724_v59  ;;  %3386 = vmatprep.subr.bf16.mxu0 %v8729_v60 }
 0x1c9   :  { %3435 = vmatprep.subr.bf16.mxu1 %v8732_v62  ;;  %v8767_v62 = vld [vmem:[#allocation4 + $0x38] ss:$60 sps:$4 sm:$0xff]  }
 0x1cb   :  { %3387 = vmatpush2.bf16.msra.mxu0 %v8727_v63  ;;  %v8768_v63 = vld [vmem:[#allocation4 + $0x920] ss:$60 sps:$4 sm:$0xff]  }
 0x1cc   :  { %3436 = vmatpush2.bf16.msra.mxu1 %v8730_v1  ;;  %3388 = vmatprep.subr.bf16.mxu0 %v8735_v2  ;;  %v2928_v1 = vadd.f32 %v9703_v37, %v2885_v52  ;;  %v8796_v52 = vld [vmem:[#allocation4 + $0xbf0] ss:$60 sps:$4 sm:$0xff]  }
 0x1cd   :  { %3437 = vmatprep.subr.bf16.mxu1 %v8738_v3  ;;  %v8771_v3 = vld [vmem:[#allocation7 + $0xe4] ss:$16 sps:$4 sm:$0xff]  }
 0x1cf   :  { %3389 = vmatpush2.bf16.msra.mxu0 %v8733_v4 }
 0x1d0   :  { %3438 = vmatpush2.bf16.msra.mxu1 %v8736_v5  ;;  %3390 = vmatprep.subr.bf16.mxu0 %v8741_v6  ;;  %v8769_v5 = vld [vmem:[#allocation7 + $0xe0] ss:$16 sps:$4 sm:$0xff]   ;;  %v3548_v6 = vmax.f32 %v2932_v58, 0.0 }
 0x1d1   :  { %8105 = vmatprep.subr.bf16.mxu1 %v8742_v7 }
 0x1d3   :  { %3440 = vmatmul.mubr.bf16.vlgmr.msra.gmra.mxu1 %v9670_v0  ;;  %3391 = vmatpush2.bf16.msra.mxu0 %v8739_v8 }
 0x1d4   :  { %8106 = vmatpush3.bf16.msra.mxu1 %v8743_v9  ;;  %3392 = vmatprep.subr.bf16.mxu0 %v8746_v10  ;;  %v3533_v9 = vmax.f32 %v2928_v1, 0.0  ;;  %v8806_v1 = vld [vmem:[#allocation7 + $0x2e4] ss:$16 sps:$4 sm:$0xff]  }
 0x1d5   :  { %8107 = vmatprep.subr.bf16.mxu1 %v8747_v15  ;;  %3482 = vmatprep.mubr.bf16.mxu1 %v9667_v55  ;;  %v8759_v55 = vld [vmem:[#allocation4 + $0xa88] ss:$60 sps:$4 sm:$0xff]   ;;  %v8775_v15 = vld [vmem:[#allocation7 + $0xc4] ss:$16 sps:$4 sm:$0xff]  }
 0x1d7   :  { %3393 = vmatpush2.bf16.msra.mxu0 %v8744_v16  ;;  %v9782_v16 = vpack.c.bf16 %v3548_v6, %v3533_v9  ;;  %v8818_v9 = vld [vmem:[#allocation7 + $0x2a4] ss:$16 sps:$4 sm:$0xff]  }
 0x1d8   :  { %8108 = vmatpush3.bf16.msra.mxu1 %v8748_v17  ;;  %3394 = vmatprep.subr.bf16.mxu0 %v8751_v18  ;;  %v8773_v17 = vld [vmem:[#allocation7 + $0xc0] ss:$16 sps:$4 sm:$0xff]   ;;  %v8776_v18 = vld [vmem:[#allocation4 + $0x830] ss:$60 sps:$4 sm:$0xff]  }
 0x1d9   :  { %8109 = vmatprep.subr.bf16.mxu1 %v8752_v19 }
 0x1db   :  { %3395 = vmatpush2.bf16.msra.mxu0 %v8749_v22 }
 0x1dc   :  { %8110 = vmatpush3.bf16.msra.mxu1 %v8753_v24  ;;  %3491 = vmatprep.subr.bf16.mxu0 %v9617_v33  ;;  %v8779_v24 = vld [vmem:[#allocation7 + $0xa4] ss:$16 sps:$4 sm:$0xff]  }
 0x1dd   :  { %8111 = vmatprep.subr.bf16.mxu1 %v8754_v28 }
 0x1de   :  { %3397 = vmatmul.mubr.bf16.vlgmr.msra.gmra.mxu0 %v9674_v13 }
 0x1df   :  { %3492 = vmatpush1.bf16.msra.mxu0 %v8756_v30  ;;  %7624 = vmatprep.mubr.msk.bf16.mxu0 %vm2844_vm0, %v9663_v44  ;;  %v592_v44 = vrot.slane %v9737_v20, %v591_v43  ;;  %v8780_v30 = vld [vmem:[#allocation4 + $0x7b8] ss:$60 sps:$4 sm:$0xff]  }
 0x1e0   :  { %8112 = vmatpush3.bf16.msra.mxu1 %v8755_v29  ;;  %3493 = vmatprep.subr.bf16.mxu0 %v9617_v33  ;;  %v8777_v29 = vld [vmem:[#allocation7 + $0xa0] ss:$16 sps:$4 sm:$0xff]  }
 0x1e1   :  { %8113 = vmatprep.subr.bf16.mxu1 %v8757_v32  ;;  %v8781_v32 = vld [vmem:[#allocation7 + $0x80] ss:$16 sps:$4 sm:$0xff]  }
 0x1e3   :  { %3494 = vmatpush1.bf16.msra.mxu0 %v8759_v55  ;;  %v8787_v55 = vld [vmem:[#allocation7 + $0x64] ss:$16 sps:$4 sm:$0xff]  }
 0x1e4   :  { %8114 = vmatpush3.bf16.msra.mxu1 %v8758_v34  ;;  %3495 = vmatprep.subr.bf16.mxu0 %v9617_v33  ;;  %v8784_v34 = vld [vmem:[#allocation4 + $0xd58] ss:$60 sps:$4 sm:$0xff]  }
 0x1e5   :  { %8115 = vmatprep.subr.bf16.mxu1 %v8760_v35  ;;  %v8785_v35 = vld [vmem:[#allocation7 + $0x60] ss:$16 sps:$4 sm:$0xff]  }
 0x1e7   :  { %3496 = vmatpush1.bf16.msra.mxu0 %v8762_v40  ;;  %v9792_v40 = vsub.s32 3, %v9694_v21 }
 0x1e8   :  { %8116 = vmatpush3.bf16.msra.mxu1 %v8761_v38  ;;  %3497 = vmatprep.subr.bf16.mxu0 %v9617_v33  ;;  %v8788_v38 = vld [vmem:[#allocation4 + $0xce0] ss:$60 sps:$4 sm:$0xff]  }
 0x1e9   :  { %8117 = vmatprep.subr.bf16.mxu1 %v8763_v42  ;;  %v8791_v42 = vld [vmem:[#allocation7 + $0x44] ss:$16 sps:$4 sm:$0xff]   ;;  %v580_v47 = vrot.slane %v9737_v20, %v9792_v40 }
 0x1ea   :  { %v3183_v59 = vpop.f32.mrf.mxu0 }
 0x1eb   :  { %v3140_v48 = vpop.f32.mrf.mxu1  ;;  %3498 = vmatpush1.bf16.msra.mxu0 %v8765_v50  ;;  %v8795_v50 = vld [vmem:[#allocation7 + $0x24] ss:$16 sps:$4 sm:$0xff]   ;;  %v2971_v58 = vadd.f32 %v9723_v56, %v580_v47 }
 0x1ec   :  { %v3141_v60 = vadd.f32 %v3140_v48, %v592_v44  ;;  %8118 = vmatpush3.bf16.msra.mxu1 %v8764_v46  ;;  %v9778_v41 = vpop.f32.mrf.mxu0  ;;  %3499 = vmatprep.subr.bf16.mxu0 %v9617_v33  ;;  %v8792_v46 = vld [vmem:[#allocation4 + $0xc68] ss:$60 sps:$4 sm:$0xff]   ;;  %v8799_v48 = vld [vmem:[#allocation7 + $0x4] ss:$16 sps:$4 sm:$0xff]  }
 0x1ed   :  { %v9776_v2 = vpop.f32.mrf.mxu1  ;;  %8119 = vmatprep.subr.bf16.mxu1 %v8766_v51  ;;  %v2975_v51 = vadd.f32 %v9735_v14, %v580_v47  ;;  %v8803_v14 = vld [vmem:[#allocation7 + $0x1e4] ss:$16 sps:$4 sm:$0xff]   ;;  %v8837_v47 = vld [vmem:[#allocation7 + $0x120] ss:$16 sps:$4 sm:$0xff]  }
 0x1ee   :  { %v3184_v4 = vadd.f32 %v3183_v59, %v3141_v60  ;;  %v3187_v10 = vpop.f32.mrf.mxu0  ;;  %v8797_v60 = vld [vmem:[#allocation7] ss:$16 sps:$4 sm:$0xff]  }
 0x1ef   :  { %v3144_v7 = vpop.f32.mrf.mxu1  ;;  %3500 = vmatpush1.bf16.msra.mxu0 %v8768_v63  ;;  %v3018_v59 = vadd.f32 %v9742_v23, %v2975_v51  ;;  %v3014_v63 = vadd.f32 %v9725_v57, %v2971_v58  ;;  %v8812_v23 = vld [vmem:[#allocation7 + $0x2c4] ss:$16 sps:$4 sm:$0xff]   ;;  %v8807_v57 = vld [vmem:[#allocation7 + $0x1c0] ss:$16 sps:$4 sm:$0xff]  }
 0x1f0   :  { %v3145_v8 = vadd.f32 %v3144_v7, %v592_v44  ;;  %8120 = vmatpush3.bf16.msra.mxu1 %v8767_v62  ;;  %3501 = vmatprep.subr.bf16.mxu0 %v9617_v33  ;;  %v3538_v19 = vmax.f32 %v3184_v4, 0.0  ;;  %v8793_v44 = vld [vmem:[#allocation7 + $0x20] ss:$16 sps:$4 sm:$0xff]   ;;  %v8848_v58 = vld [vmem:[#allocation7 + $0x204] ss:$16 sps:$4 sm:$0xff]  }
 0x1f1   :  { %6479 = vmatprep.subr.bf16.mxu1 %v8771_v3  ;;  %v8800_v62 = vld [vmem:[#allocation4 + $0xb78] ss:$60 sps:$4 sm:$0xff]   ;;  %v3550_v56 = vmax.f32 %v3018_v59, 0.0 }
 0x1f2   :  { %v3188_v37 = vadd.f32 %v3187_v10, %v3145_v8  ;;  %v8801_v3 = vld [vmem:[#allocation7 + $0x1e0] ss:$16 sps:$4 sm:$0xff]   ;;  %v8815_v8 = vld [vmem:[#allocation7 + $0x1a4] ss:$16 sps:$4 sm:$0xff]  }
 0x1f3   :  { %3483 = vmatmul.mubr.bf16.vlgmr.msra.gmra.mxu1 %v9674_v13  ;;  %3502 = vmatpush1.bf16.msra.mxu0 %v8772_v49  ;;  %v8783_v13 = vld [vmem:[#allocation7 + $0x84] ss:$16 sps:$4 sm:$0xff]   ;;  %v8804_v4 = vld [vmem:[#allocation7 + $0x2e0] ss:$16 sps:$4 sm:$0xff]   ;;  %v3535_v49 = vmax.f32 %v3014_v63, 0.0 }
 0x1f4   :  { %v3553_v22 = vmax.f32 %v3188_v37, 0.0  ;;  %6480 = vmatpush1.bf16.msra.mxu1 %v8769_v5  ;;  %6511 = vmatprep.mubr.bf16.mxu1 %v9782_v16  ;;  %v8809_v5 = vld [vmem:[#allocation7 + $0x1c4] ss:$16 sps:$4 sm:$0xff]   ;;  %v8810_v7 = vld [vmem:[#allocation7 + $0x2c0] ss:$16 sps:$4 sm:$0xff]  }
 0x1f5   :  { %3503 = vmatprep.subr.bf16.mxu0 %v9617_v33  ;;  %6481 = vmatprep.subr.bf16.mxu1 %v8775_v15  ;;  %v9804_v6 = vpack.c.bf16 %v3550_v56, %v3535_v49  ;;  %v8813_v10 = vld [vmem:[#allocation7 + $0x1a0] ss:$16 sps:$4 sm:$0xff]   ;;  %v8821_v15 = vld [vmem:[#allocation7 + $0x184] ss:$16 sps:$4 sm:$0xff]  }
 0x1f6   :  { %v9787_v28 = vpack.c.bf16 %v3553_v22, %v3538_v19  ;;  %v8816_v37 = vld [vmem:[#allocation7 + $0x2a0] ss:$16 sps:$4 sm:$0xff]   ;;  %v8827_v19 = vld [vmem:[#allocation7 + $0x164] ss:$16 sps:$4 sm:$0xff]  }
 0x1f7   :  { %3504 = vmatpush1.bf16.msra.mxu0 %v8776_v18  ;;  %v8819_v18 = vld [vmem:[#allocation7 + $0x180] ss:$16 sps:$4 sm:$0xff]   ;;  %v8830_v22 = vld [vmem:[#allocation7 + $0x264] ss:$16 sps:$4 sm:$0xff]  }
 0x1f8   :  { %6482 = vmatpush1.bf16.msra.mxu1 %v8773_v17  ;;  %3505 = vmatprep.subr.bf16.mxu0 %v9617_v33  ;;  %v8824_v17 = vld [vmem:[#allocation7 + $0x284] ss:$16 sps:$4 sm:$0xff]   ;;  %v8849_v49 = vld [vmem:[#allocation7 + $0x3e0] ss:$16 sps:$4 sm:$0xff]  }
 0x1f9   :  { %6483 = vmatprep.subr.bf16.mxu1 %v8779_v24  ;;  %v8825_v24 = vld [vmem:[#allocation7 + $0x160] ss:$16 sps:$4 sm:$0xff]   ;;  %v8854_v56 = vld [vmem:[#allocation7 + $0x4e4] ss:$16 sps:$4 sm:$0xff]  }
 0x1fb   :  { %3506 = vmatpush1.bf16.msra.mxu0 %v8780_v30  ;;  %v8833_v30 = vld [vmem:[#allocation7 + $0x144] ss:$16 sps:$4 sm:$0xff]  }
 0x1fc   :  { %6484 = vmatpush1.bf16.msra.mxu1 %v8777_v29  ;;  %3513 = vmatprep.subr.bf16.mxu0 %v9617_v33  ;;  %v8828_v29 = vld [vmem:[#allocation7 + $0x260] ss:$16 sps:$4 sm:$0xff]  }
 0x1fd   :  { %6485 = vmatprep.subr.bf16.mxu1 %v8783_v13  ;;  %v8836_v13 = vld [vmem:[#allocation7 + $0x244] ss:$16 sps:$4 sm:$0xff]  }
 0x1ff   :  { %3514 = vmatpush2.bf16.msra.mxu0 %v8784_v34  ;;  %v8831_v34 = vld [vmem:[#allocation7 + $0x140] ss:$16 sps:$4 sm:$0xff]  }
 0x200   :  { %6486 = vmatpush1.bf16.msra.mxu1 %v8781_v32  ;;  %3515 = vmatprep.subr.bf16.mxu0 %v9617_v33  ;;  %v587_v32 = vsub.s32 5, %v9694_v21 }
 0x201   :  { %6487 = vmatprep.subr.bf16.mxu1 %v8787_v55  ;;  %v8834_v55 = vld [vmem:[#allocation7 + $0x240] ss:$16 sps:$4 sm:$0xff]  }
 0x203   :  { %3516 = vmatpush2.bf16.msra.mxu0 %v8788_v38  ;;  %v8839_v38 = vld [vmem:[#allocation7 + $0x124] ss:$16 sps:$4 sm:$0xff]  }
 0x204   :  { %6488 = vmatpush1.bf16.msra.mxu1 %v8785_v35  ;;  %3517 = vmatprep.subr.bf16.mxu0 %v9617_v33  ;;  %v9809_v35 = vld [vmem:[#allocation6 + $0x8] sm:$0xff] }
 0x205   :  { %6489 = vmatprep.subr.bf16.mxu1 %v8791_v42  ;;  %v8842_v42 = vld [vmem:[#allocation7 + $0x224] ss:$16 sps:$4 sm:$0xff]  }
 0x207   :  { %3518 = vmatpush2.bf16.msra.mxu0 %v8792_v46  ;;  %v9814_v46 = vpop.f32.mrf.mxu1 }
 0x208   :  { %6490 = vmatpush1.bf16.msra.mxu1 %v8789_v45  ;;  %3519 = vmatprep.subr.bf16.mxu0 %v9617_v33  ;;  %v588_v45 = vrot.slane %v9737_v20, %v587_v32 }
 0x209   :  { %6491 = vmatprep.subr.bf16.mxu1 %v8795_v50  ;;  %v8840_v50 = vld [vmem:[#allocation7 + $0x220] ss:$16 sps:$4 sm:$0xff]  }
 0x20a   :  { %v3061_v51 = vadd.f32 %v9769_v53, %v588_v45  ;;  %v3057_v59 = vadd.f32 %v9746_v31, %v588_v45  ;;  %v8851_v31 = vld [vmem:[#allocation7 + $0x3e4] ss:$16 sps:$4 sm:$0xff]  }
 0x20b   :  { %3520 = vmatpush2.bf16.msra.mxu0 %v8796_v52  ;;  %v8845_v52 = vld [vmem:[#allocation7 + $0x104] ss:$16 sps:$4 sm:$0xff]  }
 0x20c   :  { %6492 = vmatpush1.bf16.msra.mxu1 %v8793_v44  ;;  %3521 = vmatprep.subr.bf16.mxu0 %v9617_v33  ;;  %v3104_v20 = vadd.f32 %v9771_v54, %v3061_v51  ;;  %v8875_v45 = vld [vmem:[#allocation7 + $0x364] ss:$16 sps:$4 sm:$0xff]   ;;  %v8876_v51 = vld [vmem:[#allocation7 + $0x460] ss:$16 sps:$4 sm:$0xff]  }
 0x20d   :  { %6493 = vmatprep.subr.bf16.mxu1 %v8799_v48  ;;  %v600_v48 = vrot.slane %v9809_v35, %v9699_v27 }
 0x20e   :  { %v3552_v54 = vmax.f32 %v3104_v20, 0.0  ;;  %v9498_v20 = vld [vmem:[#allocation6] sm:$0xff] }
 0x20f   :  { %3522 = vmatpush2.bf16.msra.mxu0 %v8800_v62 }
 0x210   :  { %6494 = vmatpush1.bf16.msra.mxu1 %v8797_v60  ;;  %6522 = vmatprep.subr.bf16.mxu0 %v8806_v1  ;;  %v9820_v60 = vpop.f32.mrf.mxu0  ;;  %v8846_v1 = vld [vmem:[#allocation7 + $0x200] ss:$16 sps:$4 sm:$0xff]  }
 0x211   :  { %6495 = vmatprep.subr.bf16.mxu1 %v8803_v14  ;;  %v8843_v14 = vld [vmem:[#allocation7 + $0x100] ss:$16 sps:$4 sm:$0xff]  }
 0x212   :  { %3524 = vmatmul.mubr.bf16.vlgmr.msra.gmra.mxu0 %v9670_v0  ;;  %v8822_v0 = vld [vmem:[#allocation7 + $0x280] ss:$16 sps:$4 sm:$0xff]  }
 0x213   :  { %6523 = vmatpush1.bf16.msra.mxu0 %v8804_v4  ;;  %6554 = vmatprep.mubr.bf16.mxu0 %v9804_v6 }
 0x214   :  { %6496 = vmatpush2.bf16.msra.mxu1 %v8801_v3  ;;  %6524 = vmatprep.subr.bf16.mxu0 %v8812_v23  ;;  %v3100_v3 = vadd.f32 %v9744_v25, %v3057_v59  ;;  %v8852_v23 = vld [vmem:[#allocation7 + $0x4e0] ss:$16 sps:$4 sm:$0xff]  }
 0x215   :  { %6497 = vmatprep.subr.bf16.mxu1 %v8809_v5  ;;  %v8882_v59 = vld [vmem:[#allocation7 + $0x440] ss:$16 sps:$4 sm:$0xff]  }
 0x217   :  { %6525 = vmatpush1.bf16.msra.mxu0 %v8810_v7 }
 0x218   :  { %6498 = vmatpush2.bf16.msra.mxu1 %v8807_v57  ;;  %6526 = vmatprep.subr.bf16.mxu0 %v8818_v9 }
 0x219   :  { %6499 = vmatprep.subr.bf16.mxu1 %v8815_v8  ;;  %v8857_v8 = vld [vmem:[#allocation7 + $0x3c4] ss:$16 sps:$4 sm:$0xff]  }
 0x21b   :  { %6527 = vmatpush1.bf16.msra.mxu0 %v8816_v37  ;;  %v8860_v37 = vld [vmem:[#allocation7 + $0x4c4] ss:$16 sps:$4 sm:$0xff]  }
 0x21c   :  { %6500 = vmatpush2.bf16.msra.mxu1 %v8813_v10  ;;  %6528 = vmatprep.subr.bf16.mxu0 %v8824_v17  ;;  %v3537_v10 = vmax.f32 %v3100_v3, 0.0  ;;  %v8855_v17 = vld [vmem:[#allocation7 + $0x3c0] ss:$16 sps:$4 sm:$0xff]  }
 0x21d   :  { %6501 = vmatprep.subr.bf16.mxu1 %v8821_v15  ;;  %v8885_v3 = vld [vmem:[#allocation7 + $0x320] ss:$16 sps:$4 sm:$0xff]  }
 0x21e   :  { %v9828_v15 = vpack.c.bf16 %v3552_v54, %v3537_v10  ;;  %v8891_v54 = vld [vmem:[#allocation7 + $0x300] ss:$16 sps:$4 sm:$0xff]  }
 0x21f   :  { %6529 = vmatpush1.bf16.msra.mxu0 %v8822_v0  ;;  %v3269_v44 = vpop.f32.mrf.mxu1  ;;  %v8900_v10 = vld [vmem:[#allocation7 + $0x6e0] ss:$16 sps:$4 sm:$0xff]  }
 0x220   :  { %6502 = vmatpush2.bf16.msra.mxu1 %v8819_v18  ;;  %6530 = vmatprep.subr.bf16.mxu0 %v8830_v22  ;;  %v8858_v18 = vld [vmem:[#allocation7 + $0x4c0] ss:$16 sps:$4 sm:$0xff]   ;;  %v8863_v22 = vld [vmem:[#allocation7 + $0x3a4] ss:$16 sps:$4 sm:$0xff]  }
 0x221   :  { %6503 = vmatprep.subr.bf16.mxu1 %v8827_v19  ;;  %v9823_v63 = vpop.f32.mrf.mxu1 }
 0x223   :  { %6531 = vmatpush1.bf16.msra.mxu0 %v8828_v29  ;;  %v3273_v7 = vpop.f32.mrf.mxu1 }
 0x224   :  { %6504 = vmatpush2.bf16.msra.mxu1 %v8825_v24  ;;  %6532 = vmatprep.subr.bf16.mxu0 %v8836_v13  ;;  %v8866_v24 = vld [vmem:[#allocation7 + $0x4a4] ss:$16 sps:$4 sm:$0xff]   ;;  %v8864_v13 = vld [vmem:[#allocation7 + $0x4a0] ss:$16 sps:$4 sm:$0xff]  }
 0x225   :  { %6505 = vmatprep.subr.bf16.mxu1 %v8833_v30  ;;  %v8861_v30 = vld [vmem:[#allocation7 + $0x3a0] ss:$16 sps:$4 sm:$0xff]  }
 0x227   :  { %6533 = vmatpush1.bf16.msra.mxu0 %v8834_v55  ;;  %v8872_v55 = vld [vmem:[#allocation7 + $0x484] ss:$16 sps:$4 sm:$0xff]  }
 0x228   :  { %6506 = vmatpush2.bf16.msra.mxu1 %v8831_v34  ;;  %6534 = vmatprep.subr.bf16.mxu0 %v8842_v42  ;;  %v8869_v34 = vld [vmem:[#allocation7 + $0x384] ss:$16 sps:$4 sm:$0xff]   ;;  %v8870_v42 = vld [vmem:[#allocation7 + $0x480] ss:$16 sps:$4 sm:$0xff]  }
 0x229   :  { %6507 = vmatprep.subr.bf16.mxu1 %v8839_v38  ;;  %v8867_v38 = vld [vmem:[#allocation7 + $0x380] ss:$16 sps:$4 sm:$0xff]  }
 0x22a   :  { %v3226_v62 = vpop.f32.mrf.mxu0 }
 0x22b   :  { %v3227_v53 = vadd.f32 %v3226_v62, %v600_v48  ;;  %6535 = vmatpush1.bf16.msra.mxu0 %v8840_v50  ;;  %v8873_v50 = vld [vmem:[#allocation7 + $0x360] ss:$16 sps:$4 sm:$0xff]  }
 0x22c   :  { %6508 = vmatpush2.bf16.msra.mxu1 %v8837_v47  ;;  %v9826_v4 = vpop.f32.mrf.mxu0  ;;  %6536 = vmatprep.subr.bf16.mxu0 %v8848_v58  ;;  %v8878_v47 = vld [vmem:[#allocation7 + $0x464] ss:$16 sps:$4 sm:$0xff]  }
 0x22d   :  { %6509 = vmatprep.subr.bf16.mxu1 %v8845_v52  ;;  %v3270_v5 = vadd.f32 %v3269_v44, %v3227_v53  ;;  %v595_v44 = vsub.s32 7, %v9694_v21  ;;  %v8881_v52 = vld [vmem:[#allocation7 + $0x344] ss:$16 sps:$4 sm:$0xff]  }
 0x22e   :  { %v3230_v57 = vpop.f32.mrf.mxu0  ;;  %v8884_v58 = vld [vmem:[#allocation7 + $0x444] ss:$16 sps:$4 sm:$0xff]  }
 0x22f   :  { %v3231_v9 = vadd.f32 %v3230_v57, %v600_v48  ;;  %6537 = vmatpush1.bf16.msra.mxu0 %v8846_v1  ;;  %v3540_v0 = vmax.f32 %v3270_v5, 0.0  ;;  %v8879_v48 = vld [vmem:[#allocation7 + $0x340] ss:$16 sps:$4 sm:$0xff]   ;;  %v596_v62 = vrot.slane %v9498_v20, %v595_v44  ;;  %v8887_v53 = vld [vmem:[#allocation7 + $0x324] ss:$16 sps:$4 sm:$0xff]  }
 0x230   :  { %6510 = vmatpush2.bf16.msra.mxu1 %v8843_v14  ;;  %6538 = vmatprep.subr.bf16.mxu0 %v8851_v31  ;;  %v8890_v14 = vld [vmem:[#allocation7 + $0x424] ss:$16 sps:$4 sm:$0xff]   ;;  %v8888_v31 = vld [vmem:[#allocation7 + $0x420] ss:$16 sps:$4 sm:$0xff]  }
 0x231   :  { %6565 = vmatprep.subr.bf16.mxu1 %v8854_v56  ;;  %v3274_v25 = vadd.f32 %v3273_v7, %v3231_v9  ;;  %v3147_v1 = vadd.f32 %v9814_v46, %v596_v62  ;;  %v3143_v56 = vadd.f32 %v9776_v2, %v596_v62  ;;  %v8893_v5 = vld [vmem:[#allocation7 + $0x304] ss:$16 sps:$4 sm:$0xff]   ;;  %v8894_v57 = vld [vmem:[#allocation7 + $0x400] ss:$16 sps:$4 sm:$0xff]  }
 0x232   :  { %v8899_v46 = vld [vmem:[#allocation7 + $0x5e4] ss:$16 sps:$4 sm:$0xff]   ;;  %v8897_v9 = vld [vmem:[#allocation7 + $0x5e0] ss:$16 sps:$4 sm:$0xff]  }
 0x233   :  { %6512 = vmatmul.mubr.bf16.vlgmr.msra.gmra.mxu1 %v9707_v61  ;;  %v3555_v19 = vmax.f32 %v3274_v25, 0.0  ;;  %6539 = vmatpush2.bf16.msra.mxu0 %v8849_v49  ;;  %v8896_v49 = vld [vmem:[#allocation7 + $0x404] ss:$16 sps:$4 sm:$0xff]   ;;  %v3186_v7 = vadd.f32 %v9778_v41, %v3143_v56  ;;  %v8906_v41 = vld [vmem:[#allocation7 + $0x6c0] ss:$16 sps:$4 sm:$0xff]  }
 0x234   :  { %6566 = vmatpush1.bf16.msra.mxu1 %v8852_v23  ;;  %6597 = vmatprep.mubr.bf16.mxu1 %v9828_v15  ;;  %v3190_v23 = vadd.f32 %v9820_v60, %v3147_v1  ;;  %v8905_v2 = vld [vmem:[#allocation7 + $0x5c4] ss:$16 sps:$4 sm:$0xff]   ;;  %v8903_v60 = vld [vmem:[#allocation7 + $0x5c0] ss:$16 sps:$4 sm:$0xff]  }
 0x235   :  { %6540 = vmatprep.subr.bf16.mxu0 %v8857_v8  ;;  %v9832_v29 = vpack.c.bf16 %v3555_v19, %v3540_v0  ;;  %6567 = vmatprep.subr.bf16.mxu1 %v8860_v37  ;;  %v8902_v8 = vld [vmem:[#allocation7 + $0x6e4] ss:$16 sps:$4 sm:$0xff]   ;;  %v3539_v37 = vmax.f32 %v3186_v7, 0.0  ;;  %v8930_v56 = vld [vmem:[#allocation7 + $0x640] ss:$16 sps:$4 sm:$0xff]  }
 0x236   :  { %v3554_v25 = vmax.f32 %v3190_v23, 0.0  ;;  %v8911_v0 = vld [vmem:[#allocation7 + $0x5a4] ss:$16 sps:$4 sm:$0xff]  }
 0x237   :  { %6541 = vmatpush2.bf16.msra.mxu0 %v8855_v17  ;;  %v8908_v17 = vld [vmem:[#allocation7 + $0x6c4] ss:$16 sps:$4 sm:$0xff]  }
 0x238   :  { %6568 = vmatpush1.bf16.msra.mxu1 %v8858_v18  ;;  %6542 = vmatprep.subr.bf16.mxu0 %v8863_v22  ;;  %v9839_v18 = vpack.c.bf16 %v3554_v25, %v3539_v37  ;;  %v8914_v19 = vld [vmem:[#allocation7 + $0x6a4] ss:$16 sps:$4 sm:$0xff]   ;;  %v8909_v22 = vld [vmem:[#allocation7 + $0x5a0] ss:$16 sps:$4 sm:$0xff]  }
 0x239   :  { %6569 = vmatprep.subr.bf16.mxu1 %v8866_v24  ;;  %v8912_v24 = vld [vmem:[#allocation7 + $0x6a0] ss:$16 sps:$4 sm:$0xff]   ;;  %v8929_v62 = vld [vmem:[#allocation7 + $0x544] ss:$16 sps:$4 sm:$0xff]  }
 0x23a   :  { %v8935_v23 = vld [vmem:[#allocation7 + $0x524] ss:$16 sps:$4 sm:$0xff]  }
 0x23b   :  { %6543 = vmatpush2.bf16.msra.mxu0 %v8861_v30  ;;  %v8917_v30 = vld [vmem:[#allocation7 + $0x584] ss:$16 sps:$4 sm:$0xff]  }
 0x23c   :  { %6570 = vmatpush1.bf16.msra.mxu1 %v8864_v13  ;;  %6544 = vmatprep.subr.bf16.mxu0 %v8869_v34  ;;  %v8920_v13 = vld [vmem:[#allocation7 + $0x684] ss:$16 sps:$4 sm:$0xff]   ;;  %v608_v34 = vrot.slane %v9809_v35, %v9715_v39 }
 0x23d   :  { %6571 = vmatprep.subr.bf16.mxu1 %v8872_v55  ;;  %v8915_v55 = vld [vmem:[#allocation7 + $0x580] ss:$16 sps:$4 sm:$0xff]   ;;  %v8944_v37 = vld [vmem:[#allocation7 + $0x604] ss:$16 sps:$4 sm:$0xff]  }
 0x23e   :  { %v9136_v21 = vld [vmem:[#allocation7 + $0xe04] ss:$16 sps:$4 sm:$0xff]  }
 0x23f   :  { %6545 = vmatpush2.bf16.msra.mxu0 %v8867_v38  ;;  %v8918_v38 = vld [vmem:[#allocation7 + $0x680] ss:$16 sps:$4 sm:$0xff]  }
 0x240   :  { %6572 = vmatpush1.bf16.msra.mxu1 %v8870_v42  ;;  %6546 = vmatprep.subr.bf16.mxu0 %v8875_v45  ;;  %v3232_v42 = vpop.f32.mrf.mxu0  ;;  %v3275_v45 = vpop.f32.mrf.mxu1 }
 0x241   :  { %6573 = vmatprep.subr.bf16.mxu1 %v8878_v47  ;;  %v8923_v47 = vld [vmem:[#allocation7 + $0x564] ss:$16 sps:$4 sm:$0xff]  }
 0x243   :  { %6547 = vmatpush2.bf16.msra.mxu0 %v8873_v50  ;;  %v8926_v50 = vld [vmem:[#allocation7 + $0x664] ss:$16 sps:$4 sm:$0xff]  }
 0x244   :  { %6574 = vmatpush1.bf16.msra.mxu1 %v8876_v51  ;;  %6548 = vmatprep.subr.bf16.mxu0 %v8881_v52 }
 0x245   :  { %6575 = vmatprep.subr.bf16.mxu1 %v8884_v58  ;;  %v8921_v58 = vld [vmem:[#allocation7 + $0x560] ss:$16 sps:$4 sm:$0xff]  }
 0x247   :  { %6549 = vmatpush2.bf16.msra.mxu0 %v8879_v48  ;;  %v8924_v48 = vld [vmem:[#allocation7 + $0x660] ss:$16 sps:$4 sm:$0xff]  }
 0x248   :  { %6576 = vmatpush1.bf16.msra.mxu1 %v8882_v59  ;;  %6550 = vmatprep.subr.bf16.mxu0 %v8887_v53  ;;  %v8932_v53 = vld [vmem:[#allocation7 + $0x644] ss:$16 sps:$4 sm:$0xff]  }
 0x249   :  { %6577 = vmatprep.subr.bf16.mxu1 %v8890_v14 }
 0x24b   :  { %6551 = vmatpush2.bf16.msra.mxu0 %v8885_v3 }
 0x24c   :  { %6578 = vmatpush1.bf16.msra.mxu1 %v8888_v31  ;;  %6552 = vmatprep.subr.bf16.mxu0 %v8893_v5  ;;  %v8927_v31 = vld [vmem:[#allocation7 + $0x540] ss:$16 sps:$4 sm:$0xff]   ;;  %v604_v5 = vrot.slane %v9809_v35, %v9755_v36 }
 0x24d   :  { %6579 = vmatprep.subr.bf16.mxu1 %v8896_v49 }
 0x24e   :  { %v3233_v7 = vadd.f32 %v3232_v42, %v604_v5  ;;  %v3229_v25 = vadd.f32 %v9826_v4, %v604_v5  ;;  %v8945_v4 = vld [vmem:[#allocation7 + $0x7e0] ss:$16 sps:$4 sm:$0xff]  }
 0x24f   :  { %6553 = vmatpush2.bf16.msra.mxu0 %v8891_v54  ;;  %v8938_v54 = vld [vmem:[#allocation7 + $0x624] ss:$16 sps:$4 sm:$0xff]  }
 0x250   :  { %6580 = vmatpush1.bf16.msra.mxu1 %v8894_v57  ;;  %6608 = vmatprep.subr.bf16.mxu0 %v8902_v8 }
 0x251   :  { %6581 = vmatprep.subr.bf16.mxu1 %v8899_v46 }
 0x252   :  { %6555 = vmatmul.mubr.bf16.vlgmr.msra.gmra.mxu0 %v9727_v12 }
 0x253   :  { %6609 = vmatpush1.bf16.msra.mxu0 %v8900_v10  ;;  %6640 = vmatprep.mubr.bf16.mxu0 %v9839_v18  ;;  %v8936_v10 = vld [vmem:[#allocation7 + $0x620] ss:$16 sps:$4 sm:$0xff]  }
 0x254   :  { %6582 = vmatpush2.bf16.msra.mxu1 %v8897_v9  ;;  %6610 = vmatprep.subr.bf16.mxu0 %v8908_v17  ;;  %v8933_v9 = vld [vmem:[#allocation7 + $0x520] ss:$16 sps:$4 sm:$0xff]   ;;  %v3276_v17 = vadd.f32 %v3275_v45, %v3233_v7  ;;  %v8986_v7 = vld [vmem:[#allocation7 + $0x824] ss:$16 sps:$4 sm:$0xff]  }
 0x255   :  { %6583 = vmatprep.subr.bf16.mxu1 %v8905_v2  ;;  %v8941_v2 = vld [vmem:[#allocation7 + $0x504] ss:$16 sps:$4 sm:$0xff]   ;;  %v8954_v45 = vld [vmem:[#allocation7 + $0x8c0] ss:$16 sps:$4 sm:$0xff]  }
 0x257   :  { %6611 = vmatpush1.bf16.msra.mxu0 %v8906_v41  ;;  %v8939_v41 = vld [vmem:[#allocation7 + $0x500] ss:$16 sps:$4 sm:$0xff]  }
 0x258   :  { %6584 = vmatpush2.bf16.msra.mxu1 %v8903_v60  ;;  %6612 = vmatprep.subr.bf16.mxu0 %v8914_v19  ;;  %v3272_v19 = vadd.f32 %v9823_v63, %v3229_v25  ;;  %v8951_v63 = vld [vmem:[#allocation7 + $0x7c0] ss:$16 sps:$4 sm:$0xff]   ;;  %v8989_v25 = vld [vmem:[#allocation7 + $0x704] ss:$16 sps:$4 sm:$0xff]  }
 0x259   :  { %6585 = vmatprep.subr.bf16.mxu1 %v8911_v0  ;;  %v8942_v0 = vld [vmem:[#allocation7 + $0x600] ss:$16 sps:$4 sm:$0xff]  }
 0x25b   :  { %6613 = vmatpush1.bf16.msra.mxu0 %v8912_v24  ;;  %v8950_v24 = vld [vmem:[#allocation7 + $0x8e4] ss:$16 sps:$4 sm:$0xff]  }
 0x25c   :  { %6586 = vmatpush2.bf16.msra.mxu1 %v8909_v22  ;;  %6614 = vmatprep.subr.bf16.mxu0 %v8920_v13  ;;  %v8947_v22 = vld [vmem:[#allocation7 + $0x7e4] ss:$16 sps:$4 sm:$0xff]   ;;  %v8948_v13 = vld [vmem:[#allocation7 + $0x8e0] ss:$16 sps:$4 sm:$0xff]  }
 0x25d   :  { %6587 = vmatprep.subr.bf16.mxu1 %v8917_v30  ;;  %v3556_v30 = vmax.f32 %v3276_v17, 0.0 }
 0x25e   :  { %v3355_v44 = vpop.f32.mrf.mxu0 }
 0x25f   :  { %v3312_v51 = vpop.f32.mrf.mxu1  ;;  %6615 = vmatpush1.bf16.msra.mxu0 %v8918_v38  ;;  %v8956_v38 = vld [vmem:[#allocation7 + $0x8c4] ss:$16 sps:$4 sm:$0xff]  }
 0x260   :  { %v3313_v52 = vadd.f32 %v3312_v51, %v608_v34  ;;  %6588 = vmatpush2.bf16.msra.mxu1 %v8915_v55  ;;  %v9847_v20 = vpop.f32.mrf.mxu0  ;;  %6616 = vmatprep.subr.bf16.mxu0 %v8926_v50  ;;  %v8953_v55 = vld [vmem:[#allocation7 + $0x7c4] ss:$16 sps:$4 sm:$0xff]   ;;  %v8957_v51 = vld [vmem:[#allocation7 + $0x7a0] ss:$16 sps:$4 sm:$0xff]  }
 0x261   :  { %v9845_v59 = vpop.f32.mrf.mxu1  ;;  %6589 = vmatprep.subr.bf16.mxu1 %v8923_v47  ;;  %v8959_v47 = vld [vmem:[#allocation7 + $0x7a4] ss:$16 sps:$4 sm:$0xff]  }
 0x262   :  { %v3356_v14 = vadd.f32 %v3355_v44, %v3313_v52  ;;  %v3359_v49 = vpop.f32.mrf.mxu0  ;;  %v8962_v50 = vld [vmem:[#allocation7 + $0x8a4] ss:$16 sps:$4 sm:$0xff]   ;;  %v8960_v44 = vld [vmem:[#allocation7 + $0x8a0] ss:$16 sps:$4 sm:$0xff]  }
 0x263   :  { %v3316_v1 = vpop.f32.mrf.mxu1  ;;  %6617 = vmatpush1.bf16.msra.mxu0 %v8924_v48  ;;  %v8965_v52 = vld [vmem:[#allocation7 + $0x784] ss:$16 sps:$4 sm:$0xff]   ;;  %v8963_v48 = vld [vmem:[#allocation7 + $0x780] ss:$16 sps:$4 sm:$0xff]  }
 0x264   :  { %v3317_v3 = vadd.f32 %v3316_v1, %v608_v34  ;;  %6590 = vmatpush2.bf16.msra.mxu1 %v8921_v58  ;;  %6618 = vmatprep.subr.bf16.mxu0 %v8932_v53  ;;  %v3542_v46 = vmax.f32 %v3356_v14, 0.0  ;;  %v3541_v34 = vmax.f32 %v3272_v19, 0.0  ;;  %v8968_v58 = vld [vmem:[#allocation7 + $0x884] ss:$16 sps:$4 sm:$0xff]   ;;  %v8969_v1 = vld [vmem:[#allocation7 + $0x760] ss:$16 sps:$4 sm:$0xff]  }
 0x265   :  { %6591 = vmatprep.subr.bf16.mxu1 %v8929_v62  ;;  %v8966_v62 = vld [vmem:[#allocation7 + $0x880] ss:$16 sps:$4 sm:$0xff]   ;;  %v8971_v53 = vld [vmem:[#allocation7 + $0x764] ss:$16 sps:$4 sm:$0xff]   ;;  %v3318_v5 = vpop.f32.mrf.mxu1 }
 0x266   :  { %v3360_v57 = vadd.f32 %v3359_v49, %v3317_v3  ;;  %v9855_v42 = vpack.c.bf16 %v3556_v30, %v3541_v34  ;;  %v8974_v14 = vld [vmem:[#allocation7 + $0x864] ss:$16 sps:$4 sm:$0xff]   ;;  %v8972_v3 = vld [vmem:[#allocation7 + $0x860] ss:$16 sps:$4 sm:$0xff]  }
 0x267   :  { %6619 = vmatpush1.bf16.msra.mxu0 %v8930_v56  ;;  %v8980_v56 = vld [vmem:[#allocation7 + $0x844] ss:$16 sps:$4 sm:$0xff]   ;;  %v8975_v49 = vld [vmem:[#allocation7 + $0x740] ss:$16 sps:$4 sm:$0xff]  }
 0x268   :  { %v3557_v8 = vmax.f32 %v3360_v57, 0.0  ;;  %6592 = vmatpush2.bf16.msra.mxu1 %v8927_v31  ;;  %6620 = vmatprep.subr.bf16.mxu0 %v8938_v54  ;;  %v8977_v31 = vld [vmem:[#allocation7 + $0x744] ss:$16 sps:$4 sm:$0xff]   ;;  %v612_v54 = vrot.slane %v9809_v35, %v9792_v40 }
 0x269   :  { %6593 = vmatprep.subr.bf16.mxu1 %v8935_v23  ;;  %v8978_v23 = vld [vmem:[#allocation7 + $0x840] ss:$16 sps:$4 sm:$0xff]   ;;  %v8983_v57 = vld [vmem:[#allocation7 + $0x724] ss:$16 sps:$4 sm:$0xff]  }
 0x26a   :  { %v9852_v60 = vpack.c.bf16 %v3557_v8, %v3542_v46  ;;  %v3319_v46 = vadd.f32 %v3318_v5, %v612_v54  ;;  %v8981_v8 = vld [vmem:[#allocation7 + $0x720] ss:$16 sps:$4 sm:$0xff]   ;;  %v9001_v34 = vld [vmem:[#allocation7 + $0x9c4] ss:$16 sps:$4 sm:$0xff]  }
 0x26b   :  { %6621 = vmatpush1.bf16.msra.mxu0 %v8936_v10  ;;  %v3315_v10 = vadd.f32 %v9845_v59, %v612_v54  ;;  %v8993_v59 = vld [vmem:[#allocation7 + $0x9e0] ss:$16 sps:$4 sm:$0xff]   ;;  %v9025_v54 = vld [vmem:[#allocation7 + $0x944] ss:$16 sps:$4 sm:$0xff]  }
 0x26c   :  { %6594 = vmatpush2.bf16.msra.mxu1 %v8933_v9  ;;  %6622 = vmatprep.subr.bf16.mxu0 %v8944_v37  ;;  %v8984_v9 = vld [vmem:[#allocation7 + $0x820] ss:$16 sps:$4 sm:$0xff]   ;;  %v3361_v37 = vpop.f32.mrf.mxu0 }
 0x26d   :  { %6595 = vmatprep.subr.bf16.mxu1 %v8941_v2  ;;  %v8992_v2 = vld [vmem:[#allocation7 + $0x804] ss:$16 sps:$4 sm:$0xff]   ;;  %v3362_v17 = vadd.f32 %v3361_v37, %v3319_v46  ;;  %v3358_v19 = vadd.f32 %v9847_v20, %v3315_v10  ;;  %v8999_v20 = vld [vmem:[#allocation7 + $0x9c0] ss:$16 sps:$4 sm:$0xff]  }
 0x26e   :  { %v9017_v5 = vld [vmem:[#allocation7 + $0x960] ss:$16 sps:$4 sm:$0xff]   ;;  %v9031_v37 = vld [vmem:[#allocation7 + $0x924] ss:$16 sps:$4 sm:$0xff]  }
 0x26f   :  { %6623 = vmatpush1.bf16.msra.mxu0 %v8942_v0  ;;  %v8990_v0 = vld [vmem:[#allocation7 + $0x800] ss:$16 sps:$4 sm:$0xff]   ;;  %v3558_v30 = vmax.f32 %v3362_v17, 0.0  ;;  %v9034_v17 = vld [vmem:[#allocation7 + $0xa24] ss:$16 sps:$4 sm:$0xff]  }
 0x270   :  { %6596 = vmatpush2.bf16.msra.mxu1 %v8939_v41  ;;  %6624 = vmatprep.subr.bf16.mxu0 %v8947_v22  ;;  %v8987_v41 = vld [vmem:[#allocation7 + $0x700] ss:$16 sps:$4 sm:$0xff]   ;;  %v8995_v22 = vld [vmem:[#allocation7 + $0x9e4] ss:$16 sps:$4 sm:$0xff]  }
 0x271   :  { %6651 = vmatprep.subr.bf16.mxu1 %v8950_v24  ;;  %v8998_v24 = vld [vmem:[#allocation7 + $0xae4] ss:$16 sps:$4 sm:$0xff]   ;;  %v9026_v10 = vld [vmem:[#allocation7 + $0xa40] ss:$16 sps:$4 sm:$0xff]  }
 0x273   :  { %6598 = vmatmul.mubr.bf16.vlgmr.msra.gmra.mxu1 %v9748_v26  ;;  %6625 = vmatpush2.bf16.msra.mxu0 %v8945_v4  ;;  %v8996_v4 = vld [vmem:[#allocation7 + $0xae0] ss:$16 sps:$4 sm:$0xff]  }
 0x274   :  { %6652 = vmatpush1.bf16.msra.mxu1 %v8948_v13  ;;  %6683 = vmatprep.mubr.bf16.mxu1 %v9855_v42  ;;  %v3543_v13 = vmax.f32 %v3358_v19, 0.0 }
 0x275   :  { %6626 = vmatprep.subr.bf16.mxu0 %v8953_v55  ;;  %6653 = vmatprep.subr.bf16.mxu1 %v8956_v38  ;;  %v9004_v55 = vld [vmem:[#allocation7 + $0xac4] ss:$16 sps:$4 sm:$0xff]  }
 0x276   :  { %v9863_v38 = vpack.c.bf16 %v3558_v30, %v3543_v13  ;;  %v9029_v30 = vld [vmem:[#allocation7 + $0x920] ss:$16 sps:$4 sm:$0xff]   ;;  %v9037_v13 = vld [vmem:[#allocation7 + $0x904] ss:$16 sps:$4 sm:$0xff]  }
 0x277   :  { %6627 = vmatpush2.bf16.msra.mxu0 %v8951_v63  ;;  %v9002_v63 = vld [vmem:[#allocation7 + $0xac0] ss:$16 sps:$4 sm:$0xff]  }
 0x278   :  { %6654 = vmatpush1.bf16.msra.mxu1 %v8954_v45  ;;  %6628 = vmatprep.subr.bf16.mxu0 %v8959_v47  ;;  %v9007_v45 = vld [vmem:[#allocation7 + $0x9a4] ss:$16 sps:$4 sm:$0xff]  }
 0x279   :  { %6655 = vmatprep.subr.bf16.mxu1 %v8962_v50  ;;  %v9010_v47 = vld [vmem:[#allocation7 + $0xaa4] ss:$16 sps:$4 sm:$0xff]   ;;  %v9005_v50 = vld [vmem:[#allocation7 + $0x9a0] ss:$16 sps:$4 sm:$0xff]  }
 0x27b   :  { %6629 = vmatpush2.bf16.msra.mxu0 %v8957_v51  ;;  %v9008_v51 = vld [vmem:[#allocation7 + $0xaa0] ss:$16 sps:$4 sm:$0xff]  }
 0x27c   :  { %6656 = vmatpush1.bf16.msra.mxu1 %v8960_v44  ;;  %6630 = vmatprep.subr.bf16.mxu0 %v8965_v52  ;;  %v9013_v44 = vld [vmem:[#allocation7 + $0x984] ss:$16 sps:$4 sm:$0xff]  }
 0x27d   :  { %6657 = vmatprep.subr.bf16.mxu1 %v8968_v58  ;;  %v9016_v52 = vld [vmem:[#allocation7 + $0xa84] ss:$16 sps:$4 sm:$0xff]  }
 0x27f   :  { %6631 = vmatpush2.bf16.msra.mxu0 %v8963_v48  ;;  %v616_v48 = vrot.slane %v9809_v35, %v583_v11 }
 0x280   :  { %6658 = vmatpush1.bf16.msra.mxu1 %v8966_v62  ;;  %6632 = vmatprep.subr.bf16.mxu0 %v8971_v53  ;;  %v9011_v62 = vld [vmem:[#allocation7 + $0x980] ss:$16 sps:$4 sm:$0xff]  }
 0x281   :  { %6659 = vmatprep.subr.bf16.mxu1 %v8974_v14  ;;  %v9014_v53 = vld [vmem:[#allocation7 + $0xa80] ss:$16 sps:$4 sm:$0xff]   ;;  %v9019_v14 = vld [vmem:[#allocation7 + $0x964] ss:$16 sps:$4 sm:$0xff]  }
 0x283   :  { %6633 = vmatpush2.bf16.msra.mxu0 %v8969_v1  ;;  %v9022_v1 = vld [vmem:[#allocation7 + $0xa64] ss:$16 sps:$4 sm:$0xff]  }
 0x284   :  { %6660 = vmatpush1.bf16.msra.mxu1 %v8972_v3  ;;  %6634 = vmatprep.subr.bf16.mxu0 %v8977_v31 }
 0x285   :  { %6661 = vmatprep.subr.bf16.mxu1 %v8980_v56 }
 0x287   :  { %6635 = vmatpush2.bf16.msra.mxu0 %v8975_v49  ;;  %v9020_v49 = vld [vmem:[#allocation7 + $0xa60] ss:$16 sps:$4 sm:$0xff]  }
 0x288   :  { %6662 = vmatpush1.bf16.msra.mxu1 %v8978_v23  ;;  %6636 = vmatprep.subr.bf16.mxu0 %v8983_v57  ;;  %v9028_v57 = vld [vmem:[#allocation7 + $0xa44] ss:$16 sps:$4 sm:$0xff]  }
 0x289   :  { %6663 = vmatprep.subr.bf16.mxu1 %v8986_v7 }
 0x28b   :  { %6637 = vmatpush2.bf16.msra.mxu0 %v8981_v8 }
 0x28c   :  { %6664 = vmatpush1.bf16.msra.mxu1 %v8984_v9  ;;  %6638 = vmatprep.subr.bf16.mxu0 %v8989_v25  ;;  %v9023_v9 = vld [vmem:[#allocation7 + $0x940] ss:$16 sps:$4 sm:$0xff]   ;;  %v620_v25 = vrot.slane %v9809_v35, %v587_v32 }
 0x28d   :  { %6665 = vmatprep.subr.bf16.mxu1 %v8992_v2 }
 0x28f   :  { %6639 = vmatpush2.bf16.msra.mxu0 %v8987_v41 }
 0x290   :  { %6666 = vmatpush1.bf16.msra.mxu1 %v8990_v0  ;;  %6694 = vmatprep.subr.bf16.mxu0 %v8998_v24 }
 0x291   :  { %6667 = vmatprep.subr.bf16.mxu1 %v8995_v22 }
 0x292   :  { %6641 = vmatmul.mubr.bf16.vlgmr.msra.gmra.mxu0 %v9787_v28 }
 0x293   :  { %6695 = vmatpush1.bf16.msra.mxu0 %v8996_v4  ;;  %6726 = vmatprep.mubr.bf16.mxu0 %v9863_v38  ;;  %v3441_v58 = vpop.f32.mrf.mxu1 }
 0x294   :  { %6668 = vmatpush2.bf16.msra.mxu1 %v8993_v59  ;;  %6696 = vmatprep.subr.bf16.mxu0 %v9004_v55  ;;  %v9032_v59 = vld [vmem:[#allocation7 + $0xa20] ss:$16 sps:$4 sm:$0xff]  }
 0x295   :  { %6669 = vmatprep.subr.bf16.mxu1 %v9001_v34  ;;  %v3443_v31 = vpop.f32.mrf.mxu1  ;;  %v9040_v34 = vld [vmem:[#allocation7 + $0xa04] ss:$16 sps:$4 sm:$0xff]   ;;  %v9035_v55 = vld [vmem:[#allocation7 + $0x900] ss:$16 sps:$4 sm:$0xff]  }
 0x297   :  { %6697 = vmatpush1.bf16.msra.mxu0 %v9002_v63  ;;  %v3445_v46 = vpop.f32.mrf.mxu1 }
 0x298   :  { %6670 = vmatpush2.bf16.msra.mxu1 %v8999_v20  ;;  %6698 = vmatprep.subr.bf16.mxu0 %v9010_v47  ;;  %v9038_v20 = vld [vmem:[#allocation7 + $0xa00] ss:$16 sps:$4 sm:$0xff]   ;;  %v9046_v47 = vld [vmem:[#allocation7 + $0xce4] ss:$16 sps:$4 sm:$0xff]  }
 0x299   :  { %6671 = vmatprep.subr.bf16.mxu1 %v9007_v45  ;;  %v3447_v24 = vpop.f32.mrf.mxu1  ;;  %v9043_v45 = vld [vmem:[#allocation7 + $0xbe4] ss:$16 sps:$4 sm:$0xff]  }
 0x29b   :  { %6699 = vmatpush1.bf16.msra.mxu0 %v9008_v51  ;;  %v9041_v51 = vld [vmem:[#allocation7 + $0xbe0] ss:$16 sps:$4 sm:$0xff]  }
 0x29c   :  { %6672 = vmatpush2.bf16.msra.mxu1 %v9005_v50  ;;  %6700 = vmatprep.subr.bf16.mxu0 %v9016_v52 }
 0x29d   :  { %6673 = vmatprep.subr.bf16.mxu1 %v9013_v44  ;;  %v9044_v44 = vld [vmem:[#allocation7 + $0xce0] ss:$16 sps:$4 sm:$0xff]  }
 0x29e   :  { %v3398_v3 = vpop.f32.mrf.mxu0 }
 0x29f   :  { %v3399_v56 = vadd.f32 %v3398_v3, %v616_v48  ;;  %6701 = vmatpush1.bf16.msra.mxu0 %v9014_v53  ;;  %v9047_v53 = vld [vmem:[#allocation7 + $0xbc0] ss:$16 sps:$4 sm:$0xff]   ;;  %v9058_v3 = vld [vmem:[#allocation7 + $0xca4] ss:$16 sps:$4 sm:$0xff]  }
 0x2a0   :  { %6674 = vmatpush2.bf16.msra.mxu1 %v9011_v62  ;;  %v3400_v23 = vpop.f32.mrf.mxu0  ;;  %6702 = vmatprep.subr.bf16.mxu0 %v9022_v1  ;;  %v9055_v1 = vld [vmem:[#allocation7 + $0xba4] ss:$16 sps:$4 sm:$0xff]  }
 0x2a1   :  { %6675 = vmatprep.subr.bf16.mxu1 %v9019_v14  ;;  %v3442_v7 = vadd.f32 %v3441_v58, %v3399_v56  ;;  %v3401_v4 = vadd.f32 %v3400_v23, %v620_v25  ;;  %v9049_v58 = vld [vmem:[#allocation7 + $0xbc4] ss:$16 sps:$4 sm:$0xff]   ;;  %v9050_v14 = vld [vmem:[#allocation7 + $0xcc0] ss:$16 sps:$4 sm:$0xff]  }
 0x2a2   :  { %v3402_v11 = vpop.f32.mrf.mxu0  ;;  %v9056_v56 = vld [vmem:[#allocation7 + $0xca0] ss:$16 sps:$4 sm:$0xff]  }
 0x2a3   :  { %v3403_v8 = vadd.f32 %v3402_v11, %v616_v48  ;;  %6703 = vmatpush1.bf16.msra.mxu0 %v9020_v49  ;;  %v3544_v19 = vmax.f32 %v3442_v7, 0.0  ;;  %v3444_v63 = vadd.f32 %v3443_v31, %v3401_v4  ;;  %v9052_v48 = vld [vmem:[#allocation7 + $0xcc4] ss:$16 sps:$4 sm:$0xff]   ;;  %v9053_v31 = vld [vmem:[#allocation7 + $0xba0] ss:$16 sps:$4 sm:$0xff]  }
 0x2a4   :  { %6676 = vmatpush2.bf16.msra.mxu1 %v9017_v5  ;;  %v3404_v2 = vpop.f32.mrf.mxu0  ;;  %6704 = vmatprep.subr.bf16.mxu0 %v9028_v57  ;;  %v9061_v5 = vld [vmem:[#allocation7 + $0xb84] ss:$16 sps:$4 sm:$0xff]   ;;  %v9059_v23 = vld [vmem:[#allocation7 + $0xb80] ss:$16 sps:$4 sm:$0xff]  }
 0x2a5   :  { %6677 = vmatprep.subr.bf16.mxu1 %v9025_v54  ;;  %v3446_v41 = vadd.f32 %v3445_v46, %v3403_v8  ;;  %v3405_v0 = vadd.f32 %v3404_v2, %v620_v25  ;;  %v3545_v52 = vmax.f32 %v3444_v63, 0.0  ;;  %v9064_v49 = vld [vmem:[#allocation7 + $0xc84] ss:$16 sps:$4 sm:$0xff]   ;;  %v9062_v54 = vld [vmem:[#allocation7 + $0xc80] ss:$16 sps:$4 sm:$0xff]  }
 0x2a6   :  { %v9067_v57 = vld [vmem:[#allocation7 + $0xb64] ss:$16 sps:$4 sm:$0xff]   ;;  %v9065_v11 = vld [vmem:[#allocation7 + $0xb60] ss:$16 sps:$4 sm:$0xff]  }
 0x2a7   :  { %v3559_v22 = vmax.f32 %v3446_v41, 0.0  ;;  %6705 = vmatpush1.bf16.msra.mxu0 %v9026_v10  ;;  %v3448_v35 = vadd.f32 %v3447_v24, %v3405_v0  ;;  %v9070_v7 = vld [vmem:[#allocation7 + $0xc64] ss:$16 sps:$4 sm:$0xff]   ;;  %v9068_v46 = vld [vmem:[#allocation7 + $0xc60] ss:$16 sps:$4 sm:$0xff]  }
 0x2a8   :  { %6678 = vmatpush2.bf16.msra.mxu1 %v9023_v9  ;;  %6706 = vmatprep.subr.bf16.mxu0 %v9034_v17  ;;  %v9073_v8 = vld [vmem:[#allocation7 + $0xb44] ss:$16 sps:$4 sm:$0xff]   ;;  %v9071_v10 = vld [vmem:[#allocation7 + $0xb40] ss:$16 sps:$4 sm:$0xff]  }
 0x2a9   :  { %6679 = vmatprep.subr.bf16.mxu1 %v9031_v37  ;;  %v9873_v32 = vpack.c.bf16 %v3559_v22, %v3544_v19  ;;  %v3560_v50 = vmax.f32 %v3448_v35, 0.0  ;;  %v9076_v9 = vld [vmem:[#allocation7 + $0xc44] ss:$16 sps:$4 sm:$0xff]   ;;  %v9074_v25 = vld [vmem:[#allocation7 + $0xc40] ss:$16 sps:$4 sm:$0xff]  }
 0x2aa   :  { %v9079_v2 = vld [vmem:[#allocation7 + $0xb24] ss:$16 sps:$4 sm:$0xff]   ;;  %v9077_v17 = vld [vmem:[#allocation7 + $0xb20] ss:$16 sps:$4 sm:$0xff]  }
 0x2ab   :  { %6707 = vmatpush1.bf16.msra.mxu0 %v9032_v59  ;;  %v9875_v62 = vpack.c.bf16 %v3560_v50, %v3545_v52  ;;  %v9082_v37 = vld [vmem:[#allocation7 + $0xc24] ss:$16 sps:$4 sm:$0xff]   ;;  %v9080_v41 = vld [vmem:[#allocation7 + $0xc20] ss:$16 sps:$4 sm:$0xff]  }
 0x2ac   :  { %6680 = vmatpush2.bf16.msra.mxu1 %v9029_v30  ;;  %6708 = vmatprep.subr.bf16.mxu0 %v9040_v34  ;;  %v9085_v0 = vld [vmem:[#allocation7 + $0xb04] ss:$16 sps:$4 sm:$0xff]   ;;  %v9083_v22 = vld [vmem:[#allocation7 + $0xb00] ss:$16 sps:$4 sm:$0xff]  }
 0x2ad   :  { %6681 = vmatprep.subr.bf16.mxu1 %v9037_v13  ;;  %v9088_v19 = vld [vmem:[#allocation7 + $0xc04] ss:$16 sps:$4 sm:$0xff]   ;;  %v9086_v24 = vld [vmem:[#allocation7 + $0xc00] ss:$16 sps:$4 sm:$0xff]  }
 0x2ae   :  { %v9091_v30 = vld [vmem:[#allocation7 + $0xde4] ss:$16 sps:$4 sm:$0xff]   ;;  %v9089_v4 = vld [vmem:[#allocation7 + $0xde0] ss:$16 sps:$4 sm:$0xff]  }
 0x2af   :  { %6709 = vmatpush1.bf16.msra.mxu0 %v9038_v20  ;;  %v9094_v59 = vld [vmem:[#allocation7 + $0xee4] ss:$16 sps:$4 sm:$0xff]   ;;  %v9092_v13 = vld [vmem:[#allocation7 + $0xee0] ss:$16 sps:$4 sm:$0xff]  }
 0x2b0   :  { %6682 = vmatpush2.bf16.msra.mxu1 %v9035_v55  ;;  %6710 = vmatprep.subr.bf16.mxu0 %v9043_v45  ;;  %v9097_v34 = vld [vmem:[#allocation7 + $0xdc4] ss:$16 sps:$4 sm:$0xff]   ;;  %v9095_v63 = vld [vmem:[#allocation7 + $0xdc0] ss:$16 sps:$4 sm:$0xff]  }
 0x2b1   :  { %6737 = vmatprep.subr.bf16.mxu1 %v9046_v47  ;;  %v9100_v35 = vld [vmem:[#allocation7 + $0xec4] ss:$16 sps:$4 sm:$0xff]   ;;  %v9098_v45 = vld [vmem:[#allocation7 + $0xec0] ss:$16 sps:$4 sm:$0xff]  }
 0x2b2   :  { %v9103_v50 = vld [vmem:[#allocation7 + $0xda4] ss:$16 sps:$4 sm:$0xff]  }
 0x2b3   :  { %6684 = vmatmul.mubr.bf16.vlgmr.msra.gmra.mxu1 %v9832_v29  ;;  %6711 = vmatpush2.bf16.msra.mxu0 %v9041_v51  ;;  %v8121_v55 = vpop.f32.mrf.mxu1  ;;  %v9106_v51 = vld [vmem:[#allocation7 + $0xea4] ss:$16 sps:$4 sm:$0xff]  }
 0x2b4   :  { %6738 = vmatpush1.bf16.msra.mxu1 %v9044_v44  ;;  %6769 = vmatprep.mubr.bf16.mxu1 %v9875_v62 }
 0x2b5   :  { %6712 = vmatprep.subr.bf16.mxu0 %v9049_v58  ;;  %6739 = vmatprep.subr.bf16.mxu1 %v9052_v48  ;;  %v8122_v44 = vpop.f32.mrf.mxu1  ;;  %v9101_v58 = vld [vmem:[#allocation7 + $0xda0] ss:$16 sps:$4 sm:$0xff]  }
 0x2b6   :  { %v9104_v48 = vld [vmem:[#allocation7 + $0xea0] ss:$16 sps:$4 sm:$0xff]  }
 0x2b7   :  { %6713 = vmatpush2.bf16.msra.mxu0 %v9047_v53 }
 0x2b8   :  { %6740 = vmatpush1.bf16.msra.mxu1 %v9050_v14  ;;  %6714 = vmatprep.subr.bf16.mxu0 %v9055_v1  ;;  %v9109_v14 = vld [vmem:[#allocation7 + $0xd84] ss:$16 sps:$4 sm:$0xff]  }
 0x2b9   :  { %6741 = vmatprep.subr.bf16.mxu1 %v9058_v3  ;;  %v9112_v1 = vld [vmem:[#allocation7 + $0xe84] ss:$16 sps:$4 sm:$0xff]   ;;  %v8124_v3 = vpop.f32.mrf.mxu1 }
 0x2bb   :  { %6715 = vmatpush2.bf16.msra.mxu0 %v9053_v31  ;;  %v9107_v31 = vld [vmem:[#allocation7 + $0xd80] ss:$16 sps:$4 sm:$0xff]  }
 0x2bc   :  { %6742 = vmatpush1.bf16.msra.mxu1 %v9056_v56  ;;  %6716 = vmatprep.subr.bf16.mxu0 %v9061_v5  ;;  %v9110_v56 = vld [vmem:[#allocation7 + $0xe80] ss:$16 sps:$4 sm:$0xff]   ;;  %v9115_v5 = vld [vmem:[#allocation7 + $0xd64] ss:$16 sps:$4 sm:$0xff]  }
 0x2bd   :  { %6743 = vmatprep.subr.bf16.mxu1 %v9064_v49  ;;  %v9118_v49 = vld [vmem:[#allocation7 + $0xe64] ss:$16 sps:$4 sm:$0xff]  }
 0x2bf   :  { %6717 = vmatpush2.bf16.msra.mxu0 %v9059_v23  ;;  %v8125_v23 = vpop.f32.mrf.mxu1 }
 0x2c0   :  { %6744 = vmatpush1.bf16.msra.mxu1 %v9062_v54  ;;  %6718 = vmatprep.subr.bf16.mxu0 %v9067_v57  ;;  %v9113_v54 = vld [vmem:[#allocation7 + $0xd60] ss:$16 sps:$4 sm:$0xff]  }
 0x2c1   :  { %6745 = vmatprep.subr.bf16.mxu1 %v9070_v7  ;;  %v9116_v57 = vld [vmem:[#allocation7 + $0xe60] ss:$16 sps:$4 sm:$0xff]   ;;  %v8126_v7 = vadd.f32 %v8125_v23, %v8124_v3  ;;  %v9155_v3 = vld [vmem:[#allocation7 + $0x88] ss:$16 sps:$4 sm:$0xff]   ;;  %v9172_v23 = vld [vmem:[#allocation7 + $0x24c] ss:$16 sps:$4 sm:$0xff]  }
 0x2c3   :  { %6719 = vmatpush2.bf16.msra.mxu0 %v9065_v11  ;;  %v9121_v11 = vld [vmem:[#allocation7 + $0xd44] ss:$16 sps:$4 sm:$0xff]  }
 0x2c4   :  { %6746 = vmatpush1.bf16.msra.mxu1 %v9068_v46  ;;  %6720 = vmatprep.subr.bf16.mxu0 %v9073_v8  ;;  %v9124_v46 = vld [vmem:[#allocation7 + $0xe44] ss:$16 sps:$4 sm:$0xff]   ;;  %v8123_v8 = vadd.f32 %v8122_v44, %v8121_v55  ;;  %v9146_v44 = vld [vmem:[#allocation7 + $0x2c8] ss:$16 sps:$4 sm:$0xff]  }
 0x2c5   :  { %6747 = vmatprep.subr.bf16.mxu1 %v9076_v9  ;;  %v9499_v9 = vld [vmem:[#allocation6 + $0x8] sm:$0xff] }
 0x2c7   :  { %6721 = vmatpush2.bf16.msra.mxu0 %v9071_v10  ;;  %v624_v10 = vrot.slane %v9499_v9, %v591_v43  ;;  %v9181_v9 = vld [vmem:[#allocation7 + $0xc] ss:$16 sps:$4 sm:$0xff]  }
 0x2c8   :  { %6748 = vmatpush1.bf16.msra.mxu1 %v9074_v25  ;;  %6722 = vmatprep.subr.bf16.mxu0 %v9079_v2  ;;  %v9119_v25 = vld [vmem:[#allocation7 + $0xd40] ss:$16 sps:$4 sm:$0xff]  }
 0x2c9   :  { %6749 = vmatprep.subr.bf16.mxu1 %v9082_v37  ;;  %v9122_v2 = vld [vmem:[#allocation7 + $0xe40] ss:$16 sps:$4 sm:$0xff]   ;;  %v3488_v37 = vadd.f32 %v8126_v7, %v624_v10  ;;  %v9175_v7 = vld [vmem:[#allocation7 + $0x2c] ss:$16 sps:$4 sm:$0xff]  }
 0x2cb   :  { %6723 = vmatpush2.bf16.msra.mxu0 %v9077_v17  ;;  %v9127_v17 = vld [vmem:[#allocation7 + $0xd24] ss:$16 sps:$4 sm:$0xff]  }
 0x2cc   :  { %6750 = vmatpush1.bf16.msra.mxu1 %v9080_v41  ;;  %6724 = vmatprep.subr.bf16.mxu0 %v9085_v0  ;;  %v9130_v41 = vld [vmem:[#allocation7 + $0xe24] ss:$16 sps:$4 sm:$0xff]   ;;  %v3485_v0 = vadd.f32 %v8123_v8, %v624_v10  ;;  %v9176_v8 = vld [vmem:[#allocation7 + $0x228] ss:$16 sps:$4 sm:$0xff]   ;;  %v9184_v10 = vld [vmem:[#allocation7 + $0x20c] ss:$16 sps:$4 sm:$0xff]  }
 0x2cd   :  { %6751 = vmatprep.subr.bf16.mxu1 %v9088_v19  ;;  %v9125_v19 = vld [vmem:[#allocation7 + $0xd20] ss:$16 sps:$4 sm:$0xff]  }
 0x2cf   :  { %6725 = vmatpush2.bf16.msra.mxu0 %v9083_v22  ;;  %v9128_v22 = vld [vmem:[#allocation7 + $0xe20] ss:$16 sps:$4 sm:$0xff]  }
 0x2d0   :  { %6752 = vmatpush1.bf16.msra.mxu1 %v9086_v24  ;;  %6780 = vmatprep.subr.bf16.mxu0 %v9094_v59  ;;  %v9131_v59 = vld [vmem:[#allocation7 + $0xd00] ss:$16 sps:$4 sm:$0xff]  }
 0x2d1   :  { %6753 = vmatprep.subr.bf16.mxu1 %v9091_v30  ;;  %v9133_v30 = vld [vmem:[#allocation7 + $0xd04] ss:$16 sps:$4 sm:$0xff]  }
 0x2d2   :  { %v9879_v20 = vpop.f32.mrf.mxu0  ;;  %6727 = vmatmul.mubr.bf16.vlgmr.msra.gmra.mxu0 %v9852_v60 }
 0x2d3   :  { %6781 = vmatpush1.bf16.msra.mxu0 %v9092_v13  ;;  %6812 = vmatprep.mubr.bf16.mxu0 %v9617_v33  ;;  %v3526_v43 = vadd.f32 %v9879_v20, %v3485_v0  ;;  %v9148_v20 = vld [vmem:[#allocation7 + $0x2cc] ss:$16 sps:$4 sm:$0xff]   ;;  %v9188_v0 = vld [vmem:[#allocation7 + $0x3e8] ss:$16 sps:$4 sm:$0xff]  }
 0x2d4   :  { %6754 = vmatpush2.bf16.msra.mxu1 %v9089_v4  ;;  %v3527_v47 = vpop.f32.mrf.mxu0  ;;  %6782 = vmatprep.subr.bf16.mxu0 %v9100_v35  ;;  %v9134_v4 = vld [vmem:[#allocation7 + $0xe00] ss:$16 sps:$4 sm:$0xff]   ;;  %v9142_v35 = vld [vmem:[#allocation7 + $0x2ec] ss:$16 sps:$4 sm:$0xff]  }
 0x2d5   :  { %6755 = vmatprep.subr.bf16.mxu1 %v9097_v34  ;;  %v9139_v34 = vld [vmem:[#allocation7 + $0xec] ss:$16 sps:$4 sm:$0xff]   ;;  %v3546_v55 = vmax.f32 %v3526_v43, 0.0  ;;  %v9140_v47 = vld [vmem:[#allocation7 + $0x2e8] ss:$16 sps:$4 sm:$0xff]  }
 0x2d6   :  { %v3528_v52 = vpop.f32.mrf.mxu0  ;;  %v9202_v43 = vld [vmem:[#allocation7 + $0x3ac] ss:$16 sps:$4 sm:$0xff]  }
 0x2d7   :  { %6783 = vmatpush1.bf16.msra.mxu0 %v9098_v45  ;;  %v3529_v24 = vadd.f32 %v3528_v52, %v3488_v37  ;;  %v9151_v52 = vld [vmem:[#allocation7 + $0xac] ss:$16 sps:$4 sm:$0xff]  }
 0x2d8   :  { %6756 = vmatpush2.bf16.msra.mxu1 %v9095_v63  ;;  %v3530_v53 = vpop.f32.mrf.mxu0  ;;  %6784 = vmatprep.subr.bf16.mxu0 %v9106_v51  ;;  %v9137_v63 = vld [vmem:[#allocation7 + $0xe8] ss:$16 sps:$4 sm:$0xff]   ;;  %v9187_v37 = vld [vmem:[#allocation7 + $0x1ec] ss:$16 sps:$4 sm:$0xff]  }
 0x2d9   :  { %6757 = vmatprep.subr.bf16.mxu1 %v9103_v50  ;;  %v3561_v13 = vmax.f32 %v3529_v24, 0.0  ;;  %v9145_v50 = vld [vmem:[#allocation7 + $0xcc] ss:$16 sps:$4 sm:$0xff]   ;;  %v9143_v51 = vld [vmem:[#allocation7 + $0xc8] ss:$16 sps:$4 sm:$0xff]  }
 0x2da   :  { %v9152_v53 = vld [vmem:[#allocation7 + $0x2a8] ss:$16 sps:$4 sm:$0xff]  }
 0x2db   :  { %6785 = vmatpush1.bf16.msra.mxu0 %v9104_v48  ;;  %v9886_v45 = vpack.c.bf16 %v3561_v13, %v3546_v55  ;;  %v9149_v48 = vld [vmem:[#allocation7 + $0xa8] ss:$16 sps:$4 sm:$0xff]   ;;  %v9205_v13 = vld [vmem:[#allocation7 + $0x18c] ss:$16 sps:$4 sm:$0xff]  }
 0x2dc   :  { %6758 = vmatpush2.bf16.msra.mxu1 %v9101_v58  ;;  %6786 = vmatprep.subr.bf16.mxu0 %v9112_v1  ;;  %v9154_v58 = vld [vmem:[#allocation7 + $0x2ac] ss:$16 sps:$4 sm:$0xff]   ;;  %v9191_v24 = vld [vmem:[#allocation7 + $0x1c8] ss:$16 sps:$4 sm:$0xff]  }
 0x2dd   :  { %6759 = vmatprep.subr.bf16.mxu1 %v9109_v14  ;;  %v9157_v14 = vld [vmem:[#allocation7 + $0x8c] ss:$16 sps:$4 sm:$0xff]   ;;  %v9206_v55 = vld [vmem:[#allocation7 + $0x388] ss:$16 sps:$4 sm:$0xff]  }
 0x2de   :  { %v9160_v1 = vld [vmem:[#allocation7 + $0x28c] ss:$16 sps:$4 sm:$0xff]  }
 0x2df   :  { %6787 = vmatpush1.bf16.msra.mxu0 %v9110_v56  ;;  %v9161_v56 = vld [vmem:[#allocation7 + $0x68] ss:$16 sps:$4 sm:$0xff]  }
 0x2e0   :  { %6760 = vmatpush2.bf16.msra.mxu1 %v9107_v31  ;;  %6788 = vmatprep.subr.bf16.mxu0 %v9118_v49  ;;  %v9163_v31 = vld [vmem:[#allocation7 + $0x6c] ss:$16 sps:$4 sm:$0xff]  }
 0x2e1   :  { %6761 = vmatprep.subr.bf16.mxu1 %v9115_v5  ;;  %v9164_v5 = vld [vmem:[#allocation7 + $0x268] ss:$16 sps:$4 sm:$0xff]   ;;  %v9169_v49 = vld [vmem:[#allocation7 + $0x4c] ss:$16 sps:$4 sm:$0xff]  }
 0x2e3   :  { %6789 = vmatpush1.bf16.msra.mxu0 %v9116_v57  ;;  %v9170_v57 = vld [vmem:[#allocation7 + $0x248] ss:$16 sps:$4 sm:$0xff]  }
 0x2e4   :  { %6762 = vmatpush2.bf16.msra.mxu1 %v9113_v54  ;;  %6790 = vmatprep.subr.bf16.mxu0 %v9124_v46  ;;  %v9167_v54 = vld [vmem:[#allocation7 + $0x48] ss:$16 sps:$4 sm:$0xff]  }
 0x2e5   :  { %6763 = vmatprep.subr.bf16.mxu1 %v9121_v11  ;;  %v9178_v11 = vld [vmem:[#allocation7 + $0x22c] ss:$16 sps:$4 sm:$0xff]   ;;  %v9173_v46 = vld [vmem:[#allocation7 + $0x28] ss:$16 sps:$4 sm:$0xff]  }
 0x2e7   :  { %6791 = vmatpush1.bf16.msra.mxu0 %v9122_v2  ;;  %v9182_v2 = vld [vmem:[#allocation7 + $0x208] ss:$16 sps:$4 sm:$0xff]  }
 0x2e8   :  { %6764 = vmatpush2.bf16.msra.mxu1 %v9119_v25  ;;  %6792 = vmatprep.subr.bf16.mxu0 %v9130_v41  ;;  %v9179_v25 = vld [vmem:[#allocation7 + $0x8] ss:$16 sps:$4 sm:$0xff]  }
 0x2e9   :  { %6765 = vmatprep.subr.bf16.mxu1 %v9127_v17  ;;  %v9190_v17 = vld [vmem:[#allocation7 + $0x3ec] ss:$16 sps:$4 sm:$0xff]   ;;  %v9185_v41 = vld [vmem:[#allocation7 + $0x1e8] ss:$16 sps:$4 sm:$0xff]  }
 0x2eb   :  { %6793 = vmatpush1.bf16.msra.mxu0 %v9128_v22  ;;  %v9196_v22 = vld [vmem:[#allocation7 + $0x3cc] ss:$16 sps:$4 sm:$0xff]  }
 0x2ec   :  { %6766 = vmatpush2.bf16.msra.mxu1 %v9125_v19  ;;  %6794 = vmatprep.subr.bf16.mxu0 %v9136_v21  ;;  %v9193_v19 = vld [vmem:[#allocation7 + $0x1cc] ss:$16 sps:$4 sm:$0xff]  }
 0x2ed   :  { %6767 = vmatprep.subr.bf16.mxu1 %v9133_v30  ;;  %v9194_v30 = vld [vmem:[#allocation7 + $0x3c8] ss:$16 sps:$4 sm:$0xff]   ;;  %v9199_v21 = vld [vmem:[#allocation7 + $0x1ac] ss:$16 sps:$4 sm:$0xff]  }
 0x2ef   :  { %6795 = vmatpush1.bf16.msra.mxu0 %v9134_v4  ;;  %v9200_v4 = vld [vmem:[#allocation7 + $0x3a8] ss:$16 sps:$4 sm:$0xff]  }
 0x2f0   :  { %6768 = vmatpush2.bf16.msra.mxu1 %v9131_v59  ;;  %6823 = vmatprep.subr.bf16.mxu0 %v9139_v34  ;;  %v9197_v59 = vld [vmem:[#allocation7 + $0x1a8] ss:$16 sps:$4 sm:$0xff]   ;;  %v9208_v34 = vld [vmem:[#allocation7 + $0x38c] ss:$16 sps:$4 sm:$0xff]  }
 0x2f1   :  { %6866 = vmatprep.subr.bf16.mxu1 %v9142_v35  ;;  %v9203_v35 = vld [vmem:[#allocation7 + $0x188] ss:$16 sps:$4 sm:$0xff]  }
 0x2f2   :  { %6813 = vmatmul.mubr.bf16.vlgmr.msra.gmra.mxu0 %v9886_v45 }
 0x2f3   :  { %6770 = vmatmul.mubr.bf16.vlgmr.msra.gmra.mxu1 %v9873_v32  ;;  %6824 = vmatpush1.bf16.msra.mxu0 %v9137_v63  ;;  %v9211_v63 = vld [vmem:[#allocation7 + $0x16c] ss:$16 sps:$4 sm:$0xff]  }
 0x2f4   :  { %6855 = vmatprep.mubr.bf16.mxu0 %v9782_v16  ;;  %6867 = vmatpush1.bf16.msra.mxu1 %v9140_v47  ;;  %v9158_v16 = vld [vmem:[#allocation7 + $0x288] ss:$16 sps:$4 sm:$0xff]   ;;  %v9214_v47 = vld [vmem:[#allocation7 + $0x36c] ss:$16 sps:$4 sm:$0xff]  }
 0x2f5   :  { %6898 = vmatprep.mubr.bf16.mxu1 %v9804_v6  ;;  %6825 = vmatprep.subr.bf16.mxu0 %v9145_v50  ;;  %v9166_v6 = vld [vmem:[#allocation7 + $0x26c] ss:$16 sps:$4 sm:$0xff]   ;;  %v9209_v50 = vld [vmem:[#allocation7 + $0x168] ss:$16 sps:$4 sm:$0xff]  }
 0x2f6   :  { %6868 = vmatprep.subr.bf16.mxu1 %v9148_v20  ;;  %v9212_v20 = vld [vmem:[#allocation7 + $0x368] ss:$16 sps:$4 sm:$0xff]  }
 0x2f7   :  { %6826 = vmatpush1.bf16.msra.mxu0 %v9143_v51  ;;  %v9217_v51 = vld [vmem:[#allocation7 + $0x14c] ss:$16 sps:$4 sm:$0xff]  }
 0x2f8   :  { %6869 = vmatpush1.bf16.msra.mxu1 %v9146_v44  ;;  %6827 = vmatprep.subr.bf16.mxu0 %v9151_v52  ;;  %v9220_v44 = vld [vmem:[#allocation7 + $0x34c] ss:$16 sps:$4 sm:$0xff]   ;;  %v9215_v52 = vld [vmem:[#allocation7 + $0x148] ss:$16 sps:$4 sm:$0xff]  }
 0x2f9   :  { %6870 = vmatprep.subr.bf16.mxu1 %v9154_v58  ;;  %v9218_v58 = vld [vmem:[#allocation7 + $0x348] ss:$16 sps:$4 sm:$0xff]  }
 0x2fb   :  { %6828 = vmatpush1.bf16.msra.mxu0 %v9149_v48  ;;  %v9223_v48 = vld [vmem:[#allocation7 + $0x12c] ss:$16 sps:$4 sm:$0xff]  }
 0x2fc   :  { %6871 = vmatpush1.bf16.msra.mxu1 %v9152_v53  ;;  %6829 = vmatprep.subr.bf16.mxu0 %v9157_v14  ;;  %v9226_v53 = vld [vmem:[#allocation7 + $0x32c] ss:$16 sps:$4 sm:$0xff]   ;;  %v9221_v14 = vld [vmem:[#allocation7 + $0x128] ss:$16 sps:$4 sm:$0xff]  }
 0x2fd   :  { %6872 = vmatprep.subr.bf16.mxu1 %v9160_v1  ;;  %v9224_v1 = vld [vmem:[#allocation7 + $0x328] ss:$16 sps:$4 sm:$0xff]  }
 0x2ff   :  { %6830 = vmatpush1.bf16.msra.mxu0 %v9155_v3  ;;  %v9229_v3 = vld [vmem:[#allocation7 + $0x10c] ss:$16 sps:$4 sm:$0xff]  }
 0x300   :  { %6873 = vmatpush1.bf16.msra.mxu1 %v9158_v16  ;;  %6831 = vmatprep.subr.bf16.mxu0 %v9163_v31  ;;  %v9232_v16 = vld [vmem:[#allocation7 + $0x30c] ss:$16 sps:$4 sm:$0xff]   ;;  %v9227_v31 = vld [vmem:[#allocation7 + $0x108] ss:$16 sps:$4 sm:$0xff]  }
 0x301   :  { %6874 = vmatprep.subr.bf16.mxu1 %v9166_v6  ;;  %v9230_v6 = vld [vmem:[#allocation7 + $0x308] ss:$16 sps:$4 sm:$0xff]  }
 0x303   :  { %6832 = vmatpush1.bf16.msra.mxu0 %v9161_v56  ;;  %v9235_v56 = vld [vmem:[#allocation7 + $0x4ec] ss:$16 sps:$4 sm:$0xff]  }
 0x304   :  { %6875 = vmatpush1.bf16.msra.mxu1 %v9164_v5  ;;  %6833 = vmatprep.subr.bf16.mxu0 %v9169_v49  ;;  %v9238_v5 = vld [vmem:[#allocation7 + $0x6ec] ss:$16 sps:$4 sm:$0xff]   ;;  %v9233_v49 = vld [vmem:[#allocation7 + $0x4e8] ss:$16 sps:$4 sm:$0xff]  }
 0x305   :  { %6876 = vmatprep.subr.bf16.mxu1 %v9172_v23  ;;  %v9236_v23 = vld [vmem:[#allocation7 + $0x6e8] ss:$16 sps:$4 sm:$0xff]  }
 0x307   :  { %6834 = vmatpush1.bf16.msra.mxu0 %v9167_v54  ;;  %v9241_v54 = vld [vmem:[#allocation7 + $0x4cc] ss:$16 sps:$4 sm:$0xff]  }
 0x308   :  { %6877 = vmatpush1.bf16.msra.mxu1 %v9170_v57  ;;  %6835 = vmatprep.subr.bf16.mxu0 %v9175_v7  ;;  %v9244_v57 = vld [vmem:[#allocation7 + $0x6cc] ss:$16 sps:$4 sm:$0xff]   ;;  %v9239_v7 = vld [vmem:[#allocation7 + $0x4c8] ss:$16 sps:$4 sm:$0xff]  }
 0x309   :  { %6878 = vmatprep.subr.bf16.mxu1 %v9178_v11  ;;  %v9242_v11 = vld [vmem:[#allocation7 + $0x6c8] ss:$16 sps:$4 sm:$0xff]  }
 0x30b   :  { %6836 = vmatpush1.bf16.msra.mxu0 %v9173_v46  ;;  %v9247_v46 = vld [vmem:[#allocation7 + $0x4ac] ss:$16 sps:$4 sm:$0xff]  }
 0x30c   :  { %6879 = vmatpush1.bf16.msra.mxu1 %v9176_v8  ;;  %6837 = vmatprep.subr.bf16.mxu0 %v9181_v9  ;;  %v9250_v8 = vld [vmem:[#allocation7 + $0x6ac] ss:$16 sps:$4 sm:$0xff]   ;;  %v9245_v9 = vld [vmem:[#allocation7 + $0x4a8] ss:$16 sps:$4 sm:$0xff]  }
 0x30d   :  { %6880 = vmatprep.subr.bf16.mxu1 %v9184_v10  ;;  %v9253_v10 = vld [vmem:[#allocation7 + $0x48c] ss:$16 sps:$4 sm:$0xff]  }
 0x30f   :  { %6838 = vmatpush1.bf16.msra.mxu0 %v9179_v25  ;;  %v9251_v25 = vld [vmem:[#allocation7 + $0x488] ss:$16 sps:$4 sm:$0xff]  }
 0x310   :  { %6881 = vmatpush1.bf16.msra.mxu1 %v9182_v2  ;;  %6839 = vmatprep.subr.bf16.mxu0 %v9187_v37  ;;  %v9259_v2 = vld [vmem:[#allocation7 + $0x46c] ss:$16 sps:$4 sm:$0xff]  }
 0x311   :  { %6882 = vmatprep.subr.bf16.mxu1 %v9190_v17  ;;  %v9262_v37 = vld [vmem:[#allocation7 + $0x66c] ss:$16 sps:$4 sm:$0xff]   ;;  %v9260_v17 = vld [vmem:[#allocation7 + $0x668] ss:$16 sps:$4 sm:$0xff]  }
 0x313   :  { %6840 = vmatpush2.bf16.msra.mxu0 %v9185_v41  ;;  %v9265_v41 = vld [vmem:[#allocation7 + $0x44c] ss:$16 sps:$4 sm:$0xff]  }
 0x314   :  { %6883 = vmatpush2.bf16.msra.mxu1 %v9188_v0  ;;  %6841 = vmatprep.subr.bf16.mxu0 %v9193_v19  ;;  %v9268_v0 = vld [vmem:[#allocation7 + $0x64c] ss:$16 sps:$4 sm:$0xff]   ;;  %v9263_v19 = vld [vmem:[#allocation7 + $0x448] ss:$16 sps:$4 sm:$0xff]  }
 0x315   :  { %6884 = vmatprep.subr.bf16.mxu1 %v9196_v22  ;;  %v9266_v22 = vld [vmem:[#allocation7 + $0x648] ss:$16 sps:$4 sm:$0xff]  }
 0x317   :  { %6842 = vmatpush2.bf16.msra.mxu0 %v9191_v24  ;;  %v9271_v24 = vld [vmem:[#allocation7 + $0x42c] ss:$16 sps:$4 sm:$0xff]  }
 0x318   :  { %6885 = vmatpush2.bf16.msra.mxu1 %v9194_v30  ;;  %6843 = vmatprep.subr.bf16.mxu0 %v9199_v21  ;;  %v9274_v30 = vld [vmem:[#allocation7 + $0x62c] ss:$16 sps:$4 sm:$0xff]   ;;  %v9269_v21 = vld [vmem:[#allocation7 + $0x428] ss:$16 sps:$4 sm:$0xff]  }
 0x319   :  { %6886 = vmatprep.subr.bf16.mxu1 %v9202_v43  ;;  %v9272_v43 = vld [vmem:[#allocation7 + $0x628] ss:$16 sps:$4 sm:$0xff]  }
 0x31b   :  { %6844 = vmatpush2.bf16.msra.mxu0 %v9197_v59  ;;  %v9277_v59 = vld [vmem:[#allocation7 + $0x40c] ss:$16 sps:$4 sm:$0xff]  }
 0x31c   :  { %6887 = vmatpush2.bf16.msra.mxu1 %v9200_v4  ;;  %6845 = vmatprep.subr.bf16.mxu0 %v9205_v13  ;;  %v9280_v4 = vld [vmem:[#allocation7 + $0x60c] ss:$16 sps:$4 sm:$0xff]   ;;  %v9275_v13 = vld [vmem:[#allocation7 + $0x408] ss:$16 sps:$4 sm:$0xff]  }
 0x31d   :  { %6888 = vmatprep.subr.bf16.mxu1 %v9208_v34  ;;  %v9278_v34 = vld [vmem:[#allocation7 + $0x608] ss:$16 sps:$4 sm:$0xff]  }
 0x31f   :  { %6846 = vmatpush2.bf16.msra.mxu0 %v9203_v35  ;;  %v9283_v35 = vld [vmem:[#allocation7 + $0x5ec] ss:$16 sps:$4 sm:$0xff]  }
 0x320   :  { %6889 = vmatpush2.bf16.msra.mxu1 %v9206_v55  ;;  %6847 = vmatprep.subr.bf16.mxu0 %v9211_v63  ;;  %v9286_v55 = vld [vmem:[#allocation7 + $0x7ec] ss:$16 sps:$4 sm:$0xff]   ;;  %v9281_v63 = vld [vmem:[#allocation7 + $0x5e8] ss:$16 sps:$4 sm:$0xff]  }
 0x321   :  { %6890 = vmatprep.subr.bf16.mxu1 %v9214_v47  ;;  %v9284_v47 = vld [vmem:[#allocation7 + $0x7e8] ss:$16 sps:$4 sm:$0xff]  }
 0x323   :  { %6848 = vmatpush2.bf16.msra.mxu0 %v9209_v50  ;;  %v9289_v50 = vld [vmem:[#allocation7 + $0x5cc] ss:$16 sps:$4 sm:$0xff]  }
 0x324   :  { %6891 = vmatpush2.bf16.msra.mxu1 %v9212_v20  ;;  %6849 = vmatprep.subr.bf16.mxu0 %v9217_v51  ;;  %v9292_v20 = vld [vmem:[#allocation7 + $0x7cc] ss:$16 sps:$4 sm:$0xff]   ;;  %v9287_v51 = vld [vmem:[#allocation7 + $0x5c8] ss:$16 sps:$4 sm:$0xff]  }
 0x325   :  { %6892 = vmatprep.subr.bf16.mxu1 %v9220_v44  ;;  %v9290_v44 = vld [vmem:[#allocation7 + $0x7c8] ss:$16 sps:$4 sm:$0xff]  }
 0x327   :  { %6850 = vmatpush2.bf16.msra.mxu0 %v9215_v52  ;;  %v9295_v52 = vld [vmem:[#allocation7 + $0x5ac] ss:$16 sps:$4 sm:$0xff]  }
 0x328   :  { %6893 = vmatpush2.bf16.msra.mxu1 %v9218_v58  ;;  %6851 = vmatprep.subr.bf16.mxu0 %v9223_v48  ;;  %v9298_v58 = vld [vmem:[#allocation7 + $0x7ac] ss:$16 sps:$4 sm:$0xff]   ;;  %v9293_v48 = vld [vmem:[#allocation7 + $0x5a8] ss:$16 sps:$4 sm:$0xff]  }
 0x329   :  { %6894 = vmatprep.subr.bf16.mxu1 %v9226_v53  ;;  %v9296_v53 = vld [vmem:[#allocation7 + $0x7a8] ss:$16 sps:$4 sm:$0xff]  }
 0x32b   :  { %6852 = vmatpush2.bf16.msra.mxu0 %v9221_v14  ;;  %v9301_v14 = vld [vmem:[#allocation7 + $0x58c] ss:$16 sps:$4 sm:$0xff]  }
 0x32c   :  { %6895 = vmatpush2.bf16.msra.mxu1 %v9224_v1  ;;  %6853 = vmatprep.subr.bf16.mxu0 %v9229_v3  ;;  %v9304_v1 = vld [vmem:[#allocation7 + $0x78c] ss:$16 sps:$4 sm:$0xff]   ;;  %v9299_v3 = vld [vmem:[#allocation7 + $0x588] ss:$16 sps:$4 sm:$0xff]  }
 0x32d   :  { %6896 = vmatprep.subr.bf16.mxu1 %v9232_v16  ;;  %v9302_v16 = vld [vmem:[#allocation7 + $0x788] ss:$16 sps:$4 sm:$0xff]  }
 0x32f   :  { %6854 = vmatpush2.bf16.msra.mxu0 %v9227_v31  ;;  %v9307_v31 = vld [vmem:[#allocation7 + $0x56c] ss:$16 sps:$4 sm:$0xff]  }
 0x330   :  { %6897 = vmatpush2.bf16.msra.mxu1 %v9230_v6  ;;  %6909 = vmatprep.subr.bf16.mxu0 %v9235_v56  ;;  %v9310_v6 = vld [vmem:[#allocation7 + $0x76c] ss:$16 sps:$4 sm:$0xff]   ;;  %v9305_v56 = vld [vmem:[#allocation7 + $0x568] ss:$16 sps:$4 sm:$0xff]  }
 0x331   :  { %6952 = vmatprep.subr.bf16.mxu1 %v9238_v5  ;;  %v9308_v5 = vld [vmem:[#allocation7 + $0x768] ss:$16 sps:$4 sm:$0xff]  }
 0x332   :  { %6856 = vmatmul.mubr.bf16.vlgmr.msra.gmra.mxu0 %v9707_v61  ;;  %v9248_v61 = vld [vmem:[#allocation7 + $0x6a8] ss:$16 sps:$4 sm:$0xff]  }
 0x333   :  { %6899 = vmatmul.mubr.bf16.vlgmr.msra.gmra.mxu1 %v9727_v12  ;;  %6910 = vmatpush1.bf16.msra.mxu0 %v9233_v49  ;;  %v9256_v12 = vld [vmem:[#allocation7 + $0x68c] ss:$16 sps:$4 sm:$0xff]  }
 0x334   :  { %6941 = vmatprep.mubr.bf16.mxu0 %v9828_v15  ;;  %6953 = vmatpush1.bf16.msra.mxu1 %v9236_v23  ;;  %v9254_v15 = vld [vmem:[#allocation7 + $0x688] ss:$16 sps:$4 sm:$0xff]   ;;  %v9313_v49 = vld [vmem:[#allocation7 + $0x54c] ss:$16 sps:$4 sm:$0xff]  }
 0x335   :  { %6984 = vmatprep.mubr.bf16.mxu1 %v9839_v18  ;;  %6911 = vmatprep.subr.bf16.mxu0 %v9241_v54  ;;  %v9257_v18 = vld [vmem:[#allocation7 + $0x468] ss:$16 sps:$4 sm:$0xff]   ;;  %v9316_v23 = vld [vmem:[#allocation7 + $0x74c] ss:$16 sps:$4 sm:$0xff]  }
 0x336   :  { %6954 = vmatprep.subr.bf16.mxu1 %v9244_v57  ;;  %v9311_v54 = vld [vmem:[#allocation7 + $0x548] ss:$16 sps:$4 sm:$0xff]  }
 0x337   :  { %6912 = vmatpush1.bf16.msra.mxu0 %v9239_v7  ;;  %v9314_v57 = vld [vmem:[#allocation7 + $0x748] ss:$16 sps:$4 sm:$0xff]   ;;  %v9319_v7 = vld [vmem:[#allocation7 + $0x52c] ss:$16 sps:$4 sm:$0xff]  }
 0x338   :  { %6955 = vmatpush1.bf16.msra.mxu1 %v9242_v11  ;;  %6913 = vmatprep.subr.bf16.mxu0 %v9247_v46  ;;  %v9322_v11 = vld [vmem:[#allocation7 + $0x72c] ss:$16 sps:$4 sm:$0xff]   ;;  %v9317_v46 = vld [vmem:[#allocation7 + $0x528] ss:$16 sps:$4 sm:$0xff]  }
 0x339   :  { %6956 = vmatprep.subr.bf16.mxu1 %v9250_v8  ;;  %v9320_v8 = vld [vmem:[#allocation7 + $0x728] ss:$16 sps:$4 sm:$0xff]  }
 0x33b   :  { %6914 = vmatpush1.bf16.msra.mxu0 %v9245_v9  ;;  %v9325_v9 = vld [vmem:[#allocation7 + $0x50c] ss:$16 sps:$4 sm:$0xff]  }
 0x33c   :  { %6957 = vmatpush1.bf16.msra.mxu1 %v9248_v61  ;;  %6915 = vmatprep.subr.bf16.mxu0 %v9253_v10  ;;  %v9328_v61 = vld [vmem:[#allocation7 + $0x70c] ss:$16 sps:$4 sm:$0xff]   ;;  %v9323_v10 = vld [vmem:[#allocation7 + $0x508] ss:$16 sps:$4 sm:$0xff]  }
 0x33d   :  { %6958 = vmatprep.subr.bf16.mxu1 %v9256_v12  ;;  %v9326_v12 = vld [vmem:[#allocation7 + $0x708] ss:$16 sps:$4 sm:$0xff]  }
 0x33f   :  { %6916 = vmatpush1.bf16.msra.mxu0 %v9251_v25  ;;  %v9331_v25 = vld [vmem:[#allocation7 + $0x8ec] ss:$16 sps:$4 sm:$0xff]  }
 0x340   :  { %6959 = vmatpush1.bf16.msra.mxu1 %v9254_v15  ;;  %6917 = vmatprep.subr.bf16.mxu0 %v9259_v2  ;;  %v9334_v15 = vld [vmem:[#allocation7 + $0xaec] ss:$16 sps:$4 sm:$0xff]   ;;  %v9329_v2 = vld [vmem:[#allocation7 + $0x8e8] ss:$16 sps:$4 sm:$0xff]  }
 0x341   :  { %6960 = vmatprep.subr.bf16.mxu1 %v9262_v37  ;;  %v9332_v37 = vld [vmem:[#allocation7 + $0xae8] ss:$16 sps:$4 sm:$0xff]  }
 0x343   :  { %6918 = vmatpush1.bf16.msra.mxu0 %v9257_v18  ;;  %v9337_v18 = vld [vmem:[#allocation7 + $0x8cc] ss:$16 sps:$4 sm:$0xff]  }
 0x344   :  { %6961 = vmatpush1.bf16.msra.mxu1 %v9260_v17  ;;  %6919 = vmatprep.subr.bf16.mxu0 %v9265_v41  ;;  %v9340_v17 = vld [vmem:[#allocation7 + $0xacc] ss:$16 sps:$4 sm:$0xff]   ;;  %v9335_v41 = vld [vmem:[#allocation7 + $0x8c8] ss:$16 sps:$4 sm:$0xff]  }
 0x345   :  { %6962 = vmatprep.subr.bf16.mxu1 %v9268_v0  ;;  %v9338_v0 = vld [vmem:[#allocation7 + $0xac8] ss:$16 sps:$4 sm:$0xff]  }
 0x347   :  { %6920 = vmatpush1.bf16.msra.mxu0 %v9263_v19  ;;  %v9343_v19 = vld [vmem:[#allocation7 + $0x8ac] ss:$16 sps:$4 sm:$0xff]  }
 0x348   :  { %6963 = vmatpush1.bf16.msra.mxu1 %v9266_v22  ;;  %6921 = vmatprep.subr.bf16.mxu0 %v9271_v24  ;;  %v9346_v22 = vld [vmem:[#allocation7 + $0xaac] ss:$16 sps:$4 sm:$0xff]   ;;  %v9341_v24 = vld [vmem:[#allocation7 + $0x8a8] ss:$16 sps:$4 sm:$0xff]  }
 0x349   :  { %6964 = vmatprep.subr.bf16.mxu1 %v9274_v30  ;;  %v9349_v30 = vld [vmem:[#allocation7 + $0x88c] ss:$16 sps:$4 sm:$0xff]  }
 0x34b   :  { %6922 = vmatpush1.bf16.msra.mxu0 %v9269_v21  ;;  %v9347_v21 = vld [vmem:[#allocation7 + $0x888] ss:$16 sps:$4 sm:$0xff]  }
 0x34c   :  { %6965 = vmatpush1.bf16.msra.mxu1 %v9272_v43  ;;  %6923 = vmatprep.subr.bf16.mxu0 %v9277_v59  ;;  %v9355_v43 = vld [vmem:[#allocation7 + $0x86c] ss:$16 sps:$4 sm:$0xff]  }
 0x34d   :  { %6966 = vmatprep.subr.bf16.mxu1 %v9280_v4  ;;  %v9358_v59 = vld [vmem:[#allocation7 + $0xa6c] ss:$16 sps:$4 sm:$0xff]   ;;  %v9356_v4 = vld [vmem:[#allocation7 + $0xa68] ss:$16 sps:$4 sm:$0xff]  }
 0x34f   :  { %6924 = vmatpush1.bf16.msra.mxu0 %v9275_v13  ;;  %v9361_v13 = vld [vmem:[#allocation7 + $0x84c] ss:$16 sps:$4 sm:$0xff]  }
 0x350   :  { %6967 = vmatpush1.bf16.msra.mxu1 %v9278_v34  ;;  %6925 = vmatprep.subr.bf16.mxu0 %v9283_v35  ;;  %v9364_v34 = vld [vmem:[#allocation7 + $0xa4c] ss:$16 sps:$4 sm:$0xff]   ;;  %v9359_v35 = vld [vmem:[#allocation7 + $0x848] ss:$16 sps:$4 sm:$0xff]  }
 0x351   :  { %6968 = vmatprep.subr.bf16.mxu1 %v9286_v55  ;;  %v9362_v55 = vld [vmem:[#allocation7 + $0xa48] ss:$16 sps:$4 sm:$0xff]  }
 0x353   :  { %6926 = vmatpush2.bf16.msra.mxu0 %v9281_v63  ;;  %v9367_v63 = vld [vmem:[#allocation7 + $0x82c] ss:$16 sps:$4 sm:$0xff]  }
 0x354   :  { %6969 = vmatpush2.bf16.msra.mxu1 %v9284_v47  ;;  %6927 = vmatprep.subr.bf16.mxu0 %v9289_v50  ;;  %v9370_v47 = vld [vmem:[#allocation7 + $0xa2c] ss:$16 sps:$4 sm:$0xff]   ;;  %v9365_v50 = vld [vmem:[#allocation7 + $0x828] ss:$16 sps:$4 sm:$0xff]  }
 0x355   :  { %6970 = vmatprep.subr.bf16.mxu1 %v9292_v20  ;;  %v9900_v20 = vpop.f32.mrf.mxu1 }
 0x357   :  { %6928 = vmatpush2.bf16.msra.mxu0 %v9287_v51  ;;  %v9902_v51 = vpop.f32.mrf.mxu0 }
 0x358   :  { %6971 = vmatpush2.bf16.msra.mxu1 %v9290_v44  ;;  %6929 = vmatprep.subr.bf16.mxu0 %v9295_v52  ;;  %v9368_v44 = vld [vmem:[#allocation7 + $0xa28] ss:$16 sps:$4 sm:$0xff]   ;;  %v9373_v52 = vld [vmem:[#allocation7 + $0x80c] ss:$16 sps:$4 sm:$0xff]  }
 0x359   :  { %6972 = vmatprep.subr.bf16.mxu1 %v9298_v58  ;;  %v9376_v58 = vld [vmem:[#allocation7 + $0xa0c] ss:$16 sps:$4 sm:$0xff]  }
 0x35b   :  { %6930 = vmatpush2.bf16.msra.mxu0 %v9293_v48  ;;  %v9371_v48 = vld [vmem:[#allocation7 + $0x808] ss:$16 sps:$4 sm:$0xff]  }
 0x35c   :  { %6973 = vmatpush2.bf16.msra.mxu1 %v9296_v53  ;;  %6931 = vmatprep.subr.bf16.mxu0 %v9301_v14  ;;  %v9904_v53 = vpop.f32.mrf.mxu1  ;;  %v9906_v14 = vpop.f32.mrf.mxu0 }
 0x35d   :  { %6974 = vmatprep.subr.bf16.mxu1 %v9304_v1  ;;  %v9374_v1 = vld [vmem:[#allocation7 + $0xa08] ss:$16 sps:$4 sm:$0xff]  }
 0x35f   :  { %6932 = vmatpush2.bf16.msra.mxu0 %v9299_v3  ;;  %v9379_v3 = vld [vmem:[#allocation7 + $0x9ec] ss:$16 sps:$4 sm:$0xff]  }
 0x360   :  { %6975 = vmatpush2.bf16.msra.mxu1 %v9302_v16  ;;  %6933 = vmatprep.subr.bf16.mxu0 %v9307_v31  ;;  %v9382_v16 = vld [vmem:[#allocation7 + $0xbec] ss:$16 sps:$4 sm:$0xff]   ;;  %v9377_v31 = vld [vmem:[#allocation7 + $0x9e8] ss:$16 sps:$4 sm:$0xff]  }
 0x361   :  { %6976 = vmatprep.subr.bf16.mxu1 %v9310_v6  ;;  %v9908_v6 = vpop.f32.mrf.mxu1 }
 0x363   :  { %6934 = vmatpush2.bf16.msra.mxu0 %v9305_v56  ;;  %v9910_v56 = vpop.f32.mrf.mxu0 }
 0x364   :  { %6977 = vmatpush2.bf16.msra.mxu1 %v9308_v5  ;;  %6935 = vmatprep.subr.bf16.mxu0 %v9313_v49  ;;  %v9380_v5 = vld [vmem:[#allocation7 + $0xbe8] ss:$16 sps:$4 sm:$0xff]   ;;  %v9385_v49 = vld [vmem:[#allocation7 + $0x9cc] ss:$16 sps:$4 sm:$0xff]  }
 0x365   :  { %6978 = vmatprep.subr.bf16.mxu1 %v9316_v23  ;;  %v9388_v23 = vld [vmem:[#allocation7 + $0xbcc] ss:$16 sps:$4 sm:$0xff]  }
 0x367   :  { %6936 = vmatpush2.bf16.msra.mxu0 %v9311_v54  ;;  %v9383_v54 = vld [vmem:[#allocation7 + $0x9c8] ss:$16 sps:$4 sm:$0xff]  }
 0x368   :  { %6979 = vmatpush2.bf16.msra.mxu1 %v9314_v57  ;;  %6937 = vmatprep.subr.bf16.mxu0 %v9319_v7  ;;  %v9912_v57 = vpop.f32.mrf.mxu1  ;;  %v9914_v7 = vpop.f32.mrf.mxu0 }
 0x369   :  { %6980 = vmatprep.subr.bf16.mxu1 %v9322_v11  ;;  %v9386_v11 = vld [vmem:[#allocation7 + $0xbc8] ss:$16 sps:$4 sm:$0xff]  }
 0x36b   :  { %6938 = vmatpush2.bf16.msra.mxu0 %v9317_v46  ;;  %v9391_v46 = vld [vmem:[#allocation7 + $0x9ac] ss:$16 sps:$4 sm:$0xff]  }
 0x36c   :  { %6981 = vmatpush2.bf16.msra.mxu1 %v9320_v8  ;;  %6939 = vmatprep.subr.bf16.mxu0 %v9325_v9  ;;  %v9394_v8 = vld [vmem:[#allocation7 + $0xbac] ss:$16 sps:$4 sm:$0xff]   ;;  %v6599_v9 = vpop.f32.mrf.mxu1 }
 0x36d   :  { %6982 = vmatprep.subr.bf16.mxu1 %v9328_v61  ;;  %v9916_v61 = vpop.f32.mrf.mxu0 }
 0x36f   :  { %6940 = vmatpush2.bf16.msra.mxu0 %v9323_v10  ;;  %v9389_v10 = vld [vmem:[#allocation7 + $0x9a8] ss:$16 sps:$4 sm:$0xff]  }
 0x370   :  { %6983 = vmatpush2.bf16.msra.mxu1 %v9326_v12  ;;  %6995 = vmatprep.subr.bf16.mxu0 %v9331_v25  ;;  %v9392_v12 = vld [vmem:[#allocation7 + $0xba8] ss:$16 sps:$4 sm:$0xff]   ;;  %v9397_v25 = vld [vmem:[#allocation7 + $0x98c] ss:$16 sps:$4 sm:$0xff]  }
 0x371   :  { %7038 = vmatprep.subr.bf16.mxu1 %v9334_v15  ;;  %v9400_v15 = vld [vmem:[#allocation7 + $0xb8c] ss:$16 sps:$4 sm:$0xff]  }
 0x372   :  { %6942 = vmatmul.mubr.bf16.vlgmr.msra.gmra.mxu0 %v9748_v26  ;;  %v9344_v26 = vld [vmem:[#allocation7 + $0xaa8] ss:$16 sps:$4 sm:$0xff]  }
 0x373   :  { %6985 = vmatmul.mubr.bf16.vlgmr.msra.gmra.mxu1 %v9787_v28  ;;  %6996 = vmatpush1.bf16.msra.mxu0 %v9329_v2  ;;  %v9352_v28 = vld [vmem:[#allocation7 + $0xa8c] ss:$16 sps:$4 sm:$0xff]   ;;  %v6601_v2 = vpop.f32.mrf.mxu1 }
 0x374   :  { %7027 = vmatprep.mubr.bf16.mxu0 %v9855_v42  ;;  %7039 = vmatpush1.bf16.msra.mxu1 %v9332_v37  ;;  %v9350_v42 = vld [vmem:[#allocation7 + $0xa88] ss:$16 sps:$4 sm:$0xff]   ;;  %v9918_v37 = vpop.f32.mrf.mxu0 }
 0x375   :  { %7070 = vmatprep.mubr.bf16.mxu1 %v9863_v38  ;;  %6997 = vmatprep.subr.bf16.mxu0 %v9337_v18  ;;  %v9353_v38 = vld [vmem:[#allocation7 + $0x868] ss:$16 sps:$4 sm:$0xff]  }
 0x376   :  { %7040 = vmatprep.subr.bf16.mxu1 %v9340_v17  ;;  %v9395_v18 = vld [vmem:[#allocation7 + $0x988] ss:$16 sps:$4 sm:$0xff]  }
 0x377   :  { %6998 = vmatpush1.bf16.msra.mxu0 %v9335_v41  ;;  %v9398_v17 = vld [vmem:[#allocation7 + $0xb88] ss:$16 sps:$4 sm:$0xff]   ;;  %v9403_v41 = vld [vmem:[#allocation7 + $0x96c] ss:$16 sps:$4 sm:$0xff]  }
 0x378   :  { %7041 = vmatpush1.bf16.msra.mxu1 %v9338_v0  ;;  %6999 = vmatprep.subr.bf16.mxu0 %v9343_v19  ;;  %v9406_v0 = vld [vmem:[#allocation7 + $0xb6c] ss:$16 sps:$4 sm:$0xff]   ;;  %v6603_v19 = vpop.f32.mrf.mxu1 }
 0x379   :  { %7042 = vmatprep.subr.bf16.mxu1 %v9346_v22  ;;  %v9920_v22 = vpop.f32.mrf.mxu0 }
 0x37b   :  { %7000 = vmatpush1.bf16.msra.mxu0 %v9341_v24  ;;  %v9401_v24 = vld [vmem:[#allocation7 + $0x968] ss:$16 sps:$4 sm:$0xff]  }
 0x37c   :  { %7043 = vmatpush1.bf16.msra.mxu1 %v9344_v26  ;;  %7001 = vmatprep.subr.bf16.mxu0 %v9349_v30  ;;  %v9922_v26 = vld [vmem:[#allocation9] sm:$0xf]  ;;  %v9404_v30 = vld [vmem:[#allocation7 + $0xb68] ss:$16 sps:$4 sm:$0xff]  }
 0x37d   :  { %7044 = vmatprep.subr.bf16.mxu1 %v9352_v28  ;;  %v9409_v28 = vld [vmem:[#allocation7 + $0x94c] ss:$16 sps:$4 sm:$0xff]  }
 0x37f   :  { %7002 = vmatpush1.bf16.msra.mxu0 %v9347_v21  ;;  %v9412_v21 = vld [vmem:[#allocation7 + $0xb4c] ss:$16 sps:$4 sm:$0xff]  }
 0x380   :  { %7045 = vmatpush1.bf16.msra.mxu1 %v9350_v42  ;;  %7003 = vmatprep.subr.bf16.mxu0 %v9355_v43  ;;  %v6605_v42 = vpop.f32.mrf.mxu1  ;;  %v6648_v43 = vpop.f32.mrf.mxu0 }
 0x381   :  { %7046 = vmatprep.subr.bf16.mxu1 %v9358_v59  ;;  %v4062_v59 = vrot.slane %v9922_v26, %v9699_v27  ;;  %v9416_v27 = vld [vmem:[#allocation7 + $0xb28] ss:$16 sps:$4 sm:$0xff]  }
 0x383   :  { %7004 = vmatpush1.bf16.msra.mxu0 %v9353_v38  ;;  %v9407_v38 = vld [vmem:[#allocation7 + $0x948] ss:$16 sps:$4 sm:$0xff]  }
 0x384   :  { %7047 = vmatpush1.bf16.msra.mxu1 %v9356_v4  ;;  %7005 = vmatprep.subr.bf16.mxu0 %v9361_v13  ;;  %v6685_v4 = vpop.f32.mrf.mxu1 }
 0x385   :  { %7048 = vmatprep.subr.bf16.mxu1 %v9364_v34  ;;  %v9410_v34 = vld [vmem:[#allocation7 + $0xb48] ss:$16 sps:$4 sm:$0xff]  }
 0x387   :  { %7006 = vmatpush1.bf16.msra.mxu0 %v9359_v35  ;;  %v9415_v35 = vld [vmem:[#allocation7 + $0x92c] ss:$16 sps:$4 sm:$0xff]  }
 0x388   :  { %7049 = vmatpush1.bf16.msra.mxu1 %v9362_v55  ;;  %7007 = vmatprep.subr.bf16.mxu0 %v9367_v63  ;;  %v4066_v55 = vrot.slane %v9922_v26, %v9755_v36  ;;  %v9418_v63 = vld [vmem:[#allocation7 + $0xb2c] ss:$16 sps:$4 sm:$0xff]   ;;  %v6518_v36 = vadd.f32 %v9908_v6, %v4062_v59 }
 0x389   :  { %7050 = vmatprep.subr.bf16.mxu1 %v9370_v47  ;;  %v6514_v47 = vadd.f32 %v9900_v20, %v4062_v59  ;;  %v9419_v20 = vld [vmem:[#allocation7 + $0x908] ss:$16 sps:$4 sm:$0xff]   ;;  %v9430_v6 = vld [vmem:[#allocation7 + $0xeec] ss:$16 sps:$4 sm:$0xff]  }
 0x38a   :  { %v9434_v59 = vld [vmem:[#allocation7 + $0xec8] ss:$16 sps:$4 sm:$0xff]  }
 0x38b   :  { %7008 = vmatpush1.bf16.msra.mxu0 %v9365_v50  ;;  %v9413_v50 = vld [vmem:[#allocation7 + $0x928] ss:$16 sps:$4 sm:$0xff]  }
 0x38c   :  { %7051 = vmatpush1.bf16.msra.mxu1 %v9368_v44  ;;  %7009 = vmatprep.subr.bf16.mxu0 %v9373_v52  ;;  %v6687_v44 = vpop.f32.mrf.mxu1 }
 0x38d   :  { %7052 = vmatprep.subr.bf16.mxu1 %v9376_v58  ;;  %v9421_v58 = vld [vmem:[#allocation7 + $0x90c] ss:$16 sps:$4 sm:$0xff]  }
 0x38f   :  { %7010 = vmatpush1.bf16.msra.mxu0 %v9371_v48  ;;  %v6516_v48 = vadd.f32 %v9904_v53, %v4066_v55  ;;  %v6561_v53 = vadd.f32 %v9910_v56, %v6518_v36  ;;  %v9451_v36 = vld [vmem:[#allocation7 + $0xc6c] ss:$16 sps:$4 sm:$0xff]  }
 0x390   :  { %7053 = vmatpush1.bf16.msra.mxu1 %v9374_v1  ;;  %7011 = vmatprep.subr.bf16.mxu0 %v9379_v3  ;;  %v6557_v1 = vadd.f32 %v9902_v51, %v6514_v47  ;;  %v9424_v3 = vld [vmem:[#allocation7 + $0xb0c] ss:$16 sps:$4 sm:$0xff]  }
 0x391   :  { %7054 = vmatprep.subr.bf16.mxu1 %v9382_v16  ;;  %v6559_v16 = vadd.f32 %v9906_v14, %v6516_v48 }
 0x392   :  { %v6728_v13 = vpop.f32.mrf.mxu0 }
 0x393   :  { %7012 = vmatpush2.bf16.msra.mxu0 %v9377_v31  ;;  %v6600_v31 = vadd.f32 %v6599_v9, %v6557_v1  ;;  %v6602_v51 = vadd.f32 %v6601_v2, %v6559_v16  ;;  %v9443_v1 = vld [vmem:[#allocation7 + $0xc88] ss:$16 sps:$4 sm:$0xff]   ;;  %v9454_v16 = vld [vmem:[#allocation7 + $0xe6c] ss:$16 sps:$4 sm:$0xff]  }
 0x394   :  { %7055 = vmatpush2.bf16.msra.mxu1 %v9380_v5  ;;  %7013 = vmatprep.subr.bf16.mxu0 %v9385_v49  ;;  %v6730_v52 = vpop.f32.mrf.mxu0  ;;  %v6520_v5 = vadd.f32 %v9912_v57, %v4066_v55  ;;  %v6689_v49 = vpop.f32.mrf.mxu1  ;;  %v9425_v57 = vld [vmem:[#allocation7 + $0xce8] ss:$16 sps:$4 sm:$0xff]  }
 0x395   :  { %7056 = vmatprep.subr.bf16.mxu1 %v9388_v23  ;;  %v6645_v9 = vadd.f32 %v9918_v37, %v6602_v51  ;;  %v9461_v51 = vld [vmem:[#allocation7 + $0xc28] ss:$16 sps:$4 sm:$0xff]  }
 0x396   :  { %v6732_v23 = vpop.f32.mrf.mxu0  ;;  %v6563_v14 = vadd.f32 %v9914_v7, %v6520_v5  ;;  %v9457_v5 = vld [vmem:[#allocation7 + $0xc4c] ss:$16 sps:$4 sm:$0xff]  }
 0x397   :  { %7014 = vmatpush2.bf16.msra.mxu0 %v9383_v54  ;;  %v9422_v54 = vld [vmem:[#allocation7 + $0xb08] ss:$16 sps:$4 sm:$0xff]   ;;  %v6688_v2 = vadd.f32 %v6687_v44, %v6645_v9  ;;  %v9445_v44 = vld [vmem:[#allocation7 + $0xc8c] ss:$16 sps:$4 sm:$0xff]  }
 0x398   :  { %7057 = vmatpush2.bf16.msra.mxu1 %v9386_v11  ;;  %7015 = vmatprep.subr.bf16.mxu0 %v9391_v46  ;;  %v9427_v11 = vld [vmem:[#allocation7 + $0xcec] ss:$16 sps:$4 sm:$0xff]   ;;  %v6643_v46 = vadd.f32 %v9916_v61, %v6600_v31  ;;  %v9449_v31 = vld [vmem:[#allocation7 + $0xc68] ss:$16 sps:$4 sm:$0xff]  }
 0x399   :  { %7058 = vmatprep.subr.bf16.mxu1 %v9394_v8  ;;  %v6604_v8 = vadd.f32 %v6603_v19, %v6561_v53  ;;  %v9466_v53 = vld [vmem:[#allocation7 + $0xe2c] ss:$16 sps:$4 sm:$0xff]   ;;  %v9470_v9 = vld [vmem:[#allocation7 + $0xe08] ss:$16 sps:$4 sm:$0xff]  }
 0x39b   :  { %7016 = vmatpush2.bf16.msra.mxu0 %v9389_v10  ;;  %v6686_v10 = vadd.f32 %v6685_v4, %v6643_v46  ;;  %v6647_v56 = vadd.f32 %v9920_v22, %v6604_v8  ;;  %v9464_v46 = vld [vmem:[#allocation7 + $0xe28] ss:$16 sps:$4 sm:$0xff]  }
 0x39c   :  { %7059 = vmatpush2.bf16.msra.mxu1 %v9392_v12  ;;  %7017 = vmatprep.subr.bf16.mxu0 %v9397_v25  ;;  %v6606_v12 = vadd.f32 %v6605_v42, %v6563_v14  ;;  %v6691_v25 = vpop.f32.mrf.mxu1  ;;  %v9472_v14 = vld [vmem:[#allocation7 + $0xe0c] ss:$16 sps:$4 sm:$0xff]   ;;  %v9467_v8 = vld [vmem:[#allocation7 + $0xc08] ss:$16 sps:$4 sm:$0xff]  }
 0x39d   :  { %7060 = vmatprep.subr.bf16.mxu1 %v9400_v15  ;;  %v6734_v15 = vpop.f32.mrf.mxu0  ;;  %v6729_v61 = vadd.f32 %v6728_v13, %v6686_v10  ;;  %v6690_v37 = vadd.f32 %v6689_v49, %v6647_v56  ;;  %v9460_v49 = vld [vmem:[#allocation7 + $0xe4c] ss:$16 sps:$4 sm:$0xff]  }
 0x39e   :  { %v6649_v7 = vadd.f32 %v6648_v43, %v6606_v12  ;;  %v9475_v10 = vld [vmem:[#allocation7 + $0xdec] ss:$16 sps:$4 sm:$0xff]  }
 0x39f   :  { %7018 = vmatpush2.bf16.msra.mxu0 %v9395_v18  ;;  %v9428_v18 = vld [vmem:[#allocation7 + $0xee8] ss:$16 sps:$4 sm:$0xff]   ;;  %v6733_v43 = vadd.f32 %v6732_v23, %v6690_v37  ;;  %v9478_v12 = vld [vmem:[#allocation7 + $0xdcc] ss:$16 sps:$4 sm:$0xff]  }
 0x3a0   :  { %7061 = vmatpush2.bf16.msra.mxu1 %v9398_v17  ;;  %7019 = vmatprep.subr.bf16.mxu0 %v9403_v41  ;;  %v9433_v17 = vld [vmem:[#allocation7 + $0xccc] ss:$16 sps:$4 sm:$0xff]   ;;  %v9455_v23 = vld [vmem:[#allocation7 + $0xc48] ss:$16 sps:$4 sm:$0xff]  }
 0x3a1   :  { %7062 = vmatprep.subr.bf16.mxu1 %v9406_v0  ;;  %v9436_v41 = vld [vmem:[#allocation7 + $0xecc] ss:$16 sps:$4 sm:$0xff]   ;;  %v9494_v37 = vld [vmem:[#allocation7 + $0xd08] ss:$16 sps:$4 sm:$0xff]  }
 0x3a2   :  { %v9484_v56 = vld [vmem:[#allocation7 + $0xd8c] ss:$16 sps:$4 sm:$0xff]  }
 0x3a3   :  { %7020 = vmatpush2.bf16.msra.mxu0 %v9401_v24  ;;  %v6731_v24 = vadd.f32 %v6730_v52, %v6688_v2  ;;  %v9482_v2 = vld [vmem:[#allocation7 + $0xd88] ss:$16 sps:$4 sm:$0xff]  }
 0x3a4   :  { %7063 = vmatpush2.bf16.msra.mxu1 %v9404_v30  ;;  %7021 = vmatprep.subr.bf16.mxu0 %v9409_v28  ;;  %v9431_v28 = vld [vmem:[#allocation7 + $0xcc8] ss:$16 sps:$4 sm:$0xff]  }
 0x3a5   :  { %7064 = vmatprep.subr.bf16.mxu1 %v9412_v21  ;;  %v6692_v21 = vadd.f32 %v6691_v25, %v6649_v7  ;;  %v9476_v25 = vld [vmem:[#allocation7 + $0xdc8] ss:$16 sps:$4 sm:$0xff]  }
 0x3a6   :  { %v9488_v7 = vld [vmem:[#allocation7 + $0xd48] ss:$16 sps:$4 sm:$0xff]  }
 0x3a7   :  { %7022 = vmatpush2.bf16.msra.mxu0 %v9407_v38  ;;  %v9439_v38 = vld [vmem:[#allocation7 + $0xcac] ss:$16 sps:$4 sm:$0xff]  }
 0x3a8   :  { %7065 = vmatpush2.bf16.msra.mxu1 %v9410_v34  ;;  %7023 = vmatprep.subr.bf16.mxu0 %v9415_v35 }
 0x3a9   :  { %7066 = vmatprep.subr.bf16.mxu1 %v9418_v63  ;;  %v9437_v63 = vld [vmem:[#allocation7 + $0xca8] ss:$16 sps:$4 sm:$0xff]  }
 0x3ab   :  { %7024 = vmatpush2.bf16.msra.mxu0 %v9413_v50  ;;  %v9440_v50 = vld [vmem:[#allocation7 + $0xea8] ss:$16 sps:$4 sm:$0xff]  }
 0x3ac   :  { %7067 = vmatpush2.bf16.msra.mxu1 %v9416_v27  ;;  %7025 = vmatprep.subr.bf16.mxu0 %v9421_v58  ;;  %v9448_v27 = vld [vmem:[#allocation7 + $0xe8c] ss:$16 sps:$4 sm:$0xff]  }
 0x3ad   :  { %7068 = vmatprep.subr.bf16.mxu1 %v9424_v3  ;;  %v9446_v3 = vld [vmem:[#allocation7 + $0xe88] ss:$16 sps:$4 sm:$0xff]  }
 0x3af   :  { %7026 = vmatpush2.bf16.msra.mxu0 %v9419_v20  ;;  %v9452_v20 = vld [vmem:[#allocation7 + $0xe68] ss:$16 sps:$4 sm:$0xff]  }
 0x3b0   :  { %7069 = vmatpush2.bf16.msra.mxu1 %v9422_v54  ;;  %7081 = vmatprep.subr.bf16.mxu0 %v9427_v11  ;;  %v9458_v54 = vld [vmem:[#allocation7 + $0xe48] ss:$16 sps:$4 sm:$0xff]   ;;  %v9463_v11 = vld [vmem:[#allocation7 + $0xc2c] ss:$16 sps:$4 sm:$0xff]  }
 0x3b1   :  { %7124 = vmatprep.subr.bf16.mxu1 %v9430_v6  ;;  %v9469_v6 = vld [vmem:[#allocation7 + $0xc0c] ss:$16 sps:$4 sm:$0xff]  }
 0x3b2   :  { %v6814_v19 = vpop.f32.mrf.mxu0  ;;  %7028 = vmatmul.mubr.bf16.vlgmr.msra.gmra.mxu0 %v9832_v29  ;;  %v9442_v29 = vld [vmem:[#allocation7 + $0xeac] ss:$16 sps:$4 sm:$0xff]  }
 0x3b3   :  { %v6771_v0 = vpop.f32.mrf.mxu1  ;;  %7071 = vmatmul.mubr.bf16.vlgmr.msra.gmra.mxu1 %v9852_v60  ;;  %7082 = vmatpush1.bf16.msra.mxu0 %v9425_v57  ;;  %v6735_v60 = vadd.f32 %v6734_v15, %v6692_v21  ;;  %v9473_v57 = vld [vmem:[#allocation7 + $0xde8] ss:$16 sps:$4 sm:$0xff]   ;;  %v9481_v15 = vld [vmem:[#allocation7 + $0xdac] ss:$16 sps:$4 sm:$0xff]  }
 0x3b4   :  { %v6772_v30 = vadd.f32 %v6771_v0, %v6729_v61  ;;  %7113 = vmatprep.mubr.bf16.mxu0 %v9875_v62  ;;  %7125 = vmatpush1.bf16.msra.mxu1 %v9428_v18  ;;  %v6816_v42 = vpop.f32.mrf.mxu0  ;;  %v9479_v18 = vld [vmem:[#allocation7 + $0xda8] ss:$16 sps:$4 sm:$0xff]   ;;  %v9487_v61 = vld [vmem:[#allocation7 + $0xd6c] ss:$16 sps:$4 sm:$0xff]  }
 0x3b5   :  { %v6773_v22 = vpop.f32.mrf.mxu1  ;;  %7083 = vmatprep.subr.bf16.mxu0 %v9433_v17  ;;  %7126 = vmatprep.subr.bf16.mxu1 %v9436_v41  ;;  %v9485_v17 = vld [vmem:[#allocation7 + $0xd68] ss:$16 sps:$4 sm:$0xff]   ;;  %v9490_v41 = vld [vmem:[#allocation7 + $0xd4c] ss:$16 sps:$4 sm:$0xff]  }
 0x3b6   :  { %v6815_v4 = vadd.f32 %v6814_v19, %v6772_v30  ;;  %v6774_v13 = vadd.f32 %v6773_v22, %v6731_v24  ;;  %v6818_v35 = vpop.f32.mrf.mxu0  ;;  %7156 = vmatprep.mubr.bf16.mxu1 %v9617_v33  ;;  %v9491_v0 = vld [vmem:[#allocation7 + $0xd28] ss:$16 sps:$4 sm:$0xff]   ;;  %v9496_v19 = vld [vmem:[#allocation7 + $0xd0c] ss:$16 sps:$4 sm:$0xff]  }
 0x3b7   :  { %v6775_v34 = vpop.f32.mrf.mxu1  ;;  %7084 = vmatpush1.bf16.msra.mxu0 %v9431_v28 }
 0x3b8   :  { %7167 = vst [vmem:[%s9978_s5] sm:$0xff] %v6815_v4  ;;  %v6817_v62 = vadd.f32 %v6816_v42, %v6774_v13  ;;  %v6776_v55 = vadd.f32 %v6775_v34, %v6733_v43  ;;  %7127 = vmatpush1.bf16.msra.mxu1 %v9434_v59  ;;  %7085 = vmatprep.subr.bf16.mxu0 %v9439_v38  ;;  %v6820_v58 = vpop.f32.mrf.mxu0 }
 0x3b9   :  { %v6777_v47 = vpop.f32.mrf.mxu1  ;;  %7128 = vmatprep.subr.bf16.mxu1 %v9442_v29 }
 0x3ba   :  { %7168 = vst [vmem:[%s9978_s5 + $0x8] sm:$0xff] %v6817_v62  ;;  %v6819_v52 = vadd.f32 %v6818_v35, %v6776_v55  ;;  %v6778_v33 = vadd.f32 %v6777_v47, %v6735_v60  ;;  %v4070_v35 = vrot.slane %v9922_v26, %v9715_v39 }
 0x3bb   :  { %7086 = vmatpush1.bf16.msra.mxu0 %v9437_v63 }
 0x3bc   :  { %7171 = vst [vmem:[%s9978_s5 + $0x20] sm:$0xff] %v6819_v52  ;;  %v6821_v48 = vadd.f32 %v6820_v58, %v6778_v33  ;;  %7129 = vmatpush1.bf16.msra.mxu1 %v9440_v50  ;;  %7087 = vmatprep.subr.bf16.mxu0 %v9445_v44 }
 0x3bd   :  { %7130 = vmatprep.subr.bf16.mxu1 %v9448_v27 }
 0x3be   :  { %7172 = vst [vmem:[%s9978_s5 + $0x28] sm:$0xff] %v6821_v48 }
 0x3bf   :  { %7088 = vmatpush1.bf16.msra.mxu0 %v9443_v1 }
 0x3c0   :  { %7131 = vmatpush1.bf16.msra.mxu1 %v9446_v3  ;;  %7089 = vmatprep.subr.bf16.mxu0 %v9451_v36 }
 0x3c1   :  { %7132 = vmatprep.subr.bf16.mxu1 %v9454_v16 }
 0x3c3   :  { %7090 = vmatpush1.bf16.msra.mxu0 %v9449_v31 }
 0x3c4   :  { %7133 = vmatpush1.bf16.msra.mxu1 %v9452_v20  ;;  %7091 = vmatprep.subr.bf16.mxu0 %v9457_v5 }
 0x3c5   :  { %7134 = vmatprep.subr.bf16.mxu1 %v9460_v49 }
 0x3c7   :  { %7092 = vmatpush1.bf16.msra.mxu0 %v9455_v23 }
 0x3c8   :  { %7135 = vmatpush1.bf16.msra.mxu1 %v9458_v54  ;;  %7093 = vmatprep.subr.bf16.mxu0 %v9463_v11 }
 0x3c9   :  { %7136 = vmatprep.subr.bf16.mxu1 %v9466_v53 }
 0x3cb   :  { %7094 = vmatpush1.bf16.msra.mxu0 %v9461_v51 }
 0x3cc   :  { %7137 = vmatpush1.bf16.msra.mxu1 %v9464_v46  ;;  %7095 = vmatprep.subr.bf16.mxu0 %v9469_v6 }
 0x3cd   :  { %7138 = vmatprep.subr.bf16.mxu1 %v9472_v14 }
 0x3cf   :  { %7096 = vmatpush1.bf16.msra.mxu0 %v9467_v8 }
 0x3d0   :  { %7139 = vmatpush1.bf16.msra.mxu1 %v9470_v9  ;;  %7097 = vmatprep.subr.bf16.mxu0 %v9475_v10 }
 0x3d3   :  { %7157 = vmatmul.mubr.bf16.vlgmr.msra.gmra.mxu1 %v9886_v45  ;;  %7098 = vmatpush2.bf16.msra.mxu0 %v9473_v57  ;;  %v9493_v45 = vld [vmem:[#allocation7 + $0xd2c] ss:$16 sps:$4 sm:$0xff]  }
 0x3d4   :  { %7099 = vmatprep.subr.bf16.mxu0 %v9478_v12 }
 0x3d7   :  { %7100 = vmatpush2.bf16.msra.mxu0 %v9476_v25 }
 0x3d8   :  { %7101 = vmatprep.subr.bf16.mxu0 %v9481_v15 }
 0x3db   :  { %7102 = vmatpush2.bf16.msra.mxu0 %v9479_v18 }
 0x3dc   :  { %7103 = vmatprep.subr.bf16.mxu0 %v9484_v56 }
 0x3df   :  { %7104 = vmatpush2.bf16.msra.mxu0 %v9482_v2 }
 0x3e0   :  { %7105 = vmatprep.subr.bf16.mxu0 %v9487_v61 }
 0x3e3   :  { %7106 = vmatpush2.bf16.msra.mxu0 %v9485_v17 }
 0x3e4   :  { %7107 = vmatprep.subr.bf16.mxu0 %v9490_v41 }
 0x3e7   :  { %7108 = vmatpush2.bf16.msra.mxu0 %v9488_v7 }
 0x3e8   :  { %7109 = vmatprep.subr.bf16.mxu0 %v9493_v45 }
 0x3eb   :  { %7110 = vmatpush2.bf16.msra.mxu0 %v9491_v0 }
 0x3ec   :  { %7111 = vmatprep.subr.bf16.mxu0 %v9496_v19 }
 0x3ef   :  { %7112 = vmatpush2.bf16.msra.mxu0 %v9494_v37 }
 0x3f2   :  { %7114 = vmatmul.mubr.bf16.vlgmr.msra.gmra.mxu0 %v9873_v32  ;;  %v6857_v30 = vpop.f32.mrf.mxu0  ;;  %v4074_v32 = vrot.slane %v9922_v26, %v9792_v40 }
 0x3f3   :  { %v6900_v24 = vpop.f32.mrf.mxu1  ;;  %v6858_v63 = vadd.f32 %v6857_v30, %v4070_v35 }
 0x3f4   :  { %v6859_v21 = vpop.f32.mrf.mxu0 }
 0x3f5   :  { %v6902_v28 = vpop.f32.mrf.mxu1  ;;  %v6860_v50 = vadd.f32 %v6859_v21, %v4074_v32  ;;  %v6901_v33 = vadd.f32 %v6900_v24, %v6858_v63 }
 0x3f6   :  { %v6861_v42 = vpop.f32.mrf.mxu0 }
 0x3f7   :  { %v6904_v22 = vpop.f32.mrf.mxu1  ;;  %v6862_v27 = vadd.f32 %v6861_v42, %v4070_v35  ;;  %v6903_v58 = vadd.f32 %v6902_v28, %v6860_v50 }
 0x3f8   :  { %v6863_v43 = vpop.f32.mrf.mxu0 }
 0x3f9   :  { %v6906_v59 = vpop.f32.mrf.mxu1  ;;  %v6864_v48 = vadd.f32 %v6863_v43, %v4074_v32  ;;  %v6905_v16 = vadd.f32 %v6904_v22, %v6862_v27 }
 0x3fb   :  { %v6907_v31 = vadd.f32 %v6906_v59, %v6864_v48 }
 0x432   :  { %v6943_v4 = vpop.f32.mrf.mxu0 }
 0x433   :  { %v6986_v38 = vpop.f32.mrf.mxu1  ;;  %v6944_v1 = vadd.f32 %v6943_v4, %v6901_v33 }
 0x434   :  { %v6945_v29 = vpop.f32.mrf.mxu0 }
 0x435   :  { %v6988_v13 = vpop.f32.mrf.mxu1  ;;  %v6946_v39 = vadd.f32 %v6945_v29, %v6903_v58  ;;  %v6987_v20 = vadd.f32 %v6986_v38, %v6944_v1 }
 0x436   :  { %v6947_v60 = vpop.f32.mrf.mxu0 }
 0x437   :  { %v6990_v34 = vpop.f32.mrf.mxu1  ;;  %v6948_v5 = vadd.f32 %v6947_v60, %v6905_v16  ;;  %v6989_v26 = vadd.f32 %v6988_v13, %v6946_v39 }
 0x438   :  { %v6949_v47 = vpop.f32.mrf.mxu0 }
 0x439   :  { %v6992_v62 = vpop.f32.mrf.mxu1  ;;  %v6950_v23 = vadd.f32 %v6949_v47, %v6907_v31  ;;  %v6991_v53 = vadd.f32 %v6990_v34, %v6948_v5 }
 0x43b   :  { %v6993_v6 = vadd.f32 %v6992_v62, %v6950_v23 }
 0x472   :  { %v7029_v44 = vpop.f32.mrf.mxu0 }
 0x473   :  { %v7072_v55 = vpop.f32.mrf.mxu1  ;;  %v7030_v54 = vadd.f32 %v7029_v44, %v6987_v20 }
 0x474   :  { %v7031_v3 = vpop.f32.mrf.mxu0 }
 0x475   :  { %v7074_v52 = vpop.f32.mrf.mxu1  ;;  %v7032_v51 = vadd.f32 %v7031_v3, %v6989_v26  ;;  %v7073_v14 = vadd.f32 %v7072_v55, %v7030_v54 }
 0x476   :  { %v7033_v49 = vpop.f32.mrf.mxu0 }
 0x477   :  { %v7076_v36 = vpop.f32.mrf.mxu1  ;;  %v7034_v8 = vadd.f32 %v7033_v49, %v6991_v53  ;;  %v7075_v57 = vadd.f32 %v7074_v52, %v7032_v51 }
 0x478   :  { %v7035_v46 = vpop.f32.mrf.mxu0 }
 0x479   :  { %v7078_v40 = vpop.f32.mrf.mxu1  ;;  %v7036_v12 = vadd.f32 %v7035_v46, %v6993_v6  ;;  %v7077_v18 = vadd.f32 %v7076_v36, %v7034_v8 }
 0x47b   :  { %v7079_v41 = vadd.f32 %v7078_v40, %v7036_v12 }
 0x493   :  { %v7158_v11 = vpop.f32.mrf.mxu1 }
 0x495   :  { %v7160_v9 = vpop.f32.mrf.mxu1 }
 0x497   :  { %v7162_v61 = vpop.f32.mrf.mxu1 }
 0x499   :  { %v7164_v24 = vpop.f32.mrf.mxu1 }
 0x4b2   :  { %v7115_v10 = vpop.f32.mrf.mxu0 }
 0x4b3   :  { %v7116_v25 = vadd.f32 %v7115_v10, %v7073_v14 }
 0x4b4   :  { %v7117_v15 = vpop.f32.mrf.mxu0 }
 0x4b5   :  { %v7159_v56 = vadd.f32 %v7158_v11, %v7116_v25  ;;  %v7118_v2 = vadd.f32 %v7117_v15, %v7075_v57 }
 0x4b6   :  { %v7119_v17 = vpop.f32.mrf.mxu0 }
 0x4b7   :  { %7169 = vst [vmem:[%s9978_s5 + $0x10] sm:$0xff] %v7159_v56  ;;  %v7161_v7 = vadd.f32 %v7160_v9, %v7118_v2  ;;  %v7120_v45 = vadd.f32 %v7119_v17, %v7077_v18 }
 0x4b8   :  { %v7121_v0 = vpop.f32.mrf.mxu0 }
 0x4b9   :  { %7170 = vst [vmem:[%s9978_s5 + $0x18] sm:$0xff] %v7161_v7  ;;  %v7163_v19 = vadd.f32 %v7162_v61, %v7120_v45  ;;  %v7122_v37 = vadd.f32 %v7121_v0, %v7079_v41 }
 0x4bb   :  { %7173 = vst [vmem:[%s9978_s5 + $0x30] sm:$0xff] %v7163_v19  ;;  %v7165_v30 = vadd.f32 %v7164_v24, %v7122_v37 }
 0x4bd   :  { %7174 = vst [vmem:[%s9978_s5 + $0x38] sm:$0xff] %v7165_v30 }
 0x4be   :  { %7179 = vsyncpa [#allocation3], 1 }
 0x4bf   :  { %7180 = vsyncpa [#allocation5], 1 }
 0x4c0   :  { %7181 = vsyncpa [#allocation8], 1 }

</bundles_post_ra>
